<compile_context>
chip_gen: v7x
topology: tpu7x:2x2x1
jax: 0.10.0
libtpu: 0.0.40
codegen_flags: <defaults>
</compile_context>

<pallas_src>
import functools

import jax
import jax.numpy as jnp
from jax import lax
from jax.experimental import pallas as pl
from jax.experimental.pallas import tpu as pltpu


# ----------------------------- Pallas kernel -----------------------------
def realnvp_kernel(x_ref, mask_ref, w1_ref, b1_ref, w2_ref, b2_ref,
                   w3s_ref, b3s_ref, w3t_ref, b3t_ref,
                   x_out_ref, ld_ref, *, inverse: bool):
    """One batch tile (batch on lanes); loops over all layers in-kernel."""
    L = mask_ref.shape[0]
    mxu_dt = w1_ref.dtype
    needs_cast = jnp.dtype(mxu_dt) != jnp.dtype(jnp.float32)
    cast = (lambda v: v.astype(mxu_dt)) if needs_cast else (lambda v: v)

    xT0 = x_ref[...]                                    # (D, Bt) f32, lane-dense
    ld0 = jnp.zeros((1, xT0.shape[1]), jnp.float32)     # (1, Bt) log_det accumulator

    def layer(l, carry):
        xT, ld = carry
        # Fused scale/shift MLP; weights pre-transposed so activations stay
        # lane-dense.  mask folded into W1 columns; wt*(1-mask) folded into W3s/b3s.
        h = jnp.dot(w1_ref[l], cast(xT),
                    preferred_element_type=jnp.float32) + b1_ref[l]      # (2H, Bt)
        h = jnp.maximum(h, 0.01 * h)                                     # LeakyReLU
        h = jnp.dot(w2_ref[l], cast(h),
                    preferred_element_type=jnp.float32) + b2_ref[l]      # (2H, Bt)
        h = jnp.maximum(h, 0.01 * h)
        hc = cast(h)
        # Separate s / t heads: avoids any non-128-aligned lane (or sublane) split.
        s = jnp.dot(w3s_ref[l], hc,
                    preferred_element_type=jnp.float32) + b3s_ref[l]     # (D, Bt)
        t = jnp.dot(w3t_ref[l], hc,
                    preferred_element_type=jnp.float32) + b3t_ref[l]     # (D, Bt)

        keep = mask_ref[l] > 0.5                         # (D, 1), broadcast on lanes
        if inverse:
            # block.inverse: x = x_mask + (1-m)*(x - t)/exp(s); s already *(1-m)*wt
            xT = jnp.where(keep, xT, (xT - t) * jnp.exp(-s))
            ld = ld - jnp.sum(s, axis=0, keepdims=True)  # sublane (XLU) reduce
        else:
            # block.forward: x = x_mask + (exp(s)*x + t)*(1-m)
            xT = jnp.where(keep, xT, jnp.exp(s) * xT + t)
            ld = ld + jnp.sum(s, axis=0, keepdims=True)
        return xT, ld

    xT_f, ld_f = lax.fori_loop(0, L, layer, (xT0, ld0), unroll=True)

    # Single epilogue, both stores lane-dense / unmasked.
    x_out_ref[...] = xT_f
    ld_ref[...] = ld_f


# ----------------------------- parameter packing -----------------------------
def _pack_params(params, mxu_dtype, inverse):
    """Transpose/fuse the s & t MLPs for the batch-on-lanes layout (done once)."""
    (mask, wt,
     sw1, sb1, sw2, sb2, sw3, sb3,
     tw1, tb1, tw2, tb2, tw3, tb3) = params
    L, D = mask.shape
    H = sw1.shape[-1]

    order = (lambda a: a[::-1]) if inverse else (lambda a: a)   # layer application order
    T = lambda a: jnp.swapaxes(a, -1, -2)

    mask_o = order(mask)                              # (L, D)
    gate = order(wt) * (1.0 - mask_o)                 # wt*(1-mask), folded into s-head
    mask_col = mask_o.reshape(L, D, 1)

    # Layer 1 (fused s|t), transposed: (L, 2H, D); mask folded into input columns.
    w1t = jnp.concatenate([T(order(sw1)), T(order(tw1))], axis=1) * mask_o[:, None, :]
    b1 = jnp.concatenate([order(sb1), order(tb1)], axis=-1).reshape(L, 2 * H, 1)

    # Layer 2 (block-diagonal s|t), transposed: (L, 2H, 2H).
    # NOTE: fusing is only worthwhile while 2H <= 128 (one MXU K/N tile); for larger
    # H run the s/t halves as two separate HxH matmuls instead.
    zH = jnp.zeros((L, H, H), jnp.float32)
    w2t = jnp.concatenate(
        [jnp.concatenate([T(order(sw2)), zH], axis=-1),
         jnp.concatenate([zH, T(order(tw2))], axis=-1)], axis=-2)
    b2 = jnp.concatenate([order(sb2), order(tb2)], axis=-1).reshape(L, 2 * H, 1)

    # Layer 3: separate s / t heads, transposed to (L, D, 2H).
    zDH = jnp.zeros((L, D, H), jnp.float32)
    w3s = jnp.concatenate([T(order(sw3)) * gate[:, :, None], zDH], axis=-1)
    b3s = (order(sb3) * gate).reshape(L, D, 1)
    w3t = jnp.concatenate([zDH, T(order(tw3))], axis=-1)
    b3t = order(tb3).reshape(L, D, 1)

    cast = lambda a: a.astype(mxu_dtype)
    # Biases / mask stay f32 (added after f32 accumulation).
    return (mask_col, cast(w1t), b1, cast(w2t), b2, cast(w3s), b3s, cast(w3t), b3t)


# ----------------------------- wrapper -----------------------------
def _resident_spec(arr):
    """Whole array resident in VMEM (block == full array, grid-invariant)."""
    zeros = (0,) * arr.ndim
    return pl.BlockSpec(tuple(arr.shape), lambda i: zeros)


def _padded_vmem_bytes(a):
    shape = list(a.shape)
    shape[-1] = -(-shape[-1] // 128) * 128
    if len(shape) >= 2:
        shape[-2] = -(-shape[-2] // 8) * 8
    n = 1
    for d in shape:
        n *= d
    return n * a.dtype.itemsize


def realnvp_apply(x, params, *, inverse=True, block_b=None, mxu_dtype=jnp.float32):
    """Apply the stacked RealNVP blocks (inverse: flow forward; else block.forward)."""
    packed = _pack_params(params, mxu_dtype, inverse)
    x = x.astype(jnp.float32)
    B, D = x.shape

    # Batch on the lane axis: transpose once in the wrapper (cheap XLA plumbing).
    xT = x.T                                           # (D, B)

    # Batch tile: lane-width multiple of 128, and >=2 tiles when possible so the
    # "parallel" grid axis feeds both v7x TensorCores (no effect on v5e/v6e).
    if block_b is None:
        block_b = B
        for cand in (128, 256, 512):
            if B % cand == 0 and B // cand >= 2:
                block_b = cand
    if block_b != B and (B % block_b != 0 or block_b % 128 != 0):
        block_b = B                                    # fall back to a single full tile
    grid = (B // block_b,)

    x_spec = pl.BlockSpec((D, block_b), lambda i: (0, i))
    in_specs = [x_spec] + [_resident_spec(a) for a in packed]
    out_specs = [
        x_spec,                                        # x_out^T, lane-dense
        pl.BlockSpec((1, block_b), lambda i: (0, i)),  # log_det (1, B), lane-dense
    ]

    # VMEM budget: resident (lane-padded) weights + double-buffered I/O tiles,
    # with headroom, capped at 32 MiB (safe on v5e/v6e/v7x).
    weight_bytes = sum(_padded_vmem_bytes(a) for a in packed)
    d_pad = -(-D // 8) * 8
    io_bytes = 2 * (2 * d_pad * block_b + 8 * block_b) * 4
    vmem_limit = int(min(32 * 2 ** 20, max(8 * 2 ** 20, 4 * (weight_bytes + io_bytes))))
    # TODO(synk): if resident weights exceed ~24 MiB (large L*H), stream per-layer
    # weights via an "arbitrary" layer grid axis (pl.Buffered) instead of residency
    # — v7x only has 64 MiB VMEM.
    assert weight_bytes < 24 * 2 ** 20, "weights too large for full VMEM residency"

    kernel = functools.partial(realnvp_kernel, inverse=inverse)

    xT_out, ld = pl.pallas_call(
        kernel,
        out_shape=(jax.ShapeDtypeStruct((D, B), jnp.float32),
                   jax.ShapeDtypeStruct((1, B), jnp.float32)),
        grid_spec=pltpu.PrefetchScalarGridSpec(
            num_scalar_prefetch=0,
            grid=grid,
            in_specs=in_specs,
            out_specs=out_specs,
        ),
        compiler_params=pltpu.CompilerParams(
            dimension_semantics=("parallel",),
            vmem_limit_bytes=vmem_limit),
    )(xT, *packed)

    return xT_out.T, ld[0]


# ----------------------- plain-JAX reference (for checking) -----------------------
def realnvp_reference(x, params, inverse=True):
    (mask, wt,
     sw1, sb1, sw2, sb2, sw3, sb3,
     tw1, tb1, tw2, tb2, tw3, tb3) = params
    L = mask.shape[0]

    def leaky(a):
        return jnp.where(a > 0, a, 0.01 * a)

    def mlp(z, w1, b1, w2, b2, w3, b3):
        h = leaky(z @ w1 + b1)
        h = leaky(h @ w2 + b2)
        return h @ w3 + b3

    log_det = jnp.zeros(x.shape[0], jnp.float32)
    order = reversed(range(L)) if inverse else range(L)
    for i in order:
        m = mask[i]
        xm = x * m
        s = mlp(xm, sw1[i], sb1[i], sw2[i], sb2[i], sw3[i], sb3[i]) * wt[i]
        t = mlp(xm, tw1[i], tb1[i], tw2[i], tb2[i], tw3[i], tb3[i])
        if inverse:
            x = xm + (1.0 - m) * (x - t) / jnp.exp(s)
            log_det = log_det + jnp.sum(-s * (1.0 - m), axis=-1)
        else:
            x = xm + (jnp.exp(s) * x + t) * (1.0 - m)
            log_det = log_det + jnp.sum(s * (1.0 - m), axis=-1)
    return x, log_det


# ----------------------- deterministic parameter init -----------------------
def init_params(key, num_layers, dim, hidden):
    def linear(k, fan_in, fan_out):
        kw, kb = jax.random.split(k)
        bound = 1.0 / jnp.sqrt(fan_in)
        w = jax.random.uniform(kw, (fan_in, fan_out), jnp.float32, -bound, bound)
        b = jax.random.uniform(kb, (fan_out,), jnp.float32, -bound, bound)
        return w, b

    keys = jax.random.split(key, num_layers * 7 + 1)
    mask = jnp.stack([
        jnp.asarray([(j + i) % 2 for j in range(dim)], jnp.float32)
        for i in range(num_layers)
    ])  # alternating binary split masks per layer

    sw1l, sb1l, sw2l, sb2l, sw3l, sb3l = [], [], [], [], [], []
    tw1l, tb1l, tw2l, tb2l, tw3l, tb3l = [], [], [], [], [], []
    wtl = []
    for i in range(num_layers):
        k = keys[i * 7:(i + 1) * 7]
        w, b = linear(k[0], dim, hidden);    sw1l.append(w); sb1l.append(b)
        w, b = linear(k[1], hidden, hidden); sw2l.append(w); sb2l.append(b)
        w, b = linear(k[2], hidden, dim);    sw3l.append(w); sb3l.append(b)
        w, b = linear(k[3], dim, hidden);    tw1l.append(w); tb1l.append(b)
        w, b = linear(k[4], hidden, hidden); tw2l.append(w); tb2l.append(b)
        w, b = linear(k[5], hidden, dim);    tw3l.append(w); tb3l.append(b)
        # torch.nn.Parameter(torch.Tensor(dim)) is uninitialized; use small values.
        wtl.append(0.05 * jax.random.normal(k[6], (dim,), jnp.float32))

    stack = lambda xs: jnp.stack(xs)
    return (mask, stack(wtl),
            stack(sw1l), stack(sb1l), stack(sw2l), stack(sb2l),
            stack(sw3l), stack(sb3l),
            stack(tw1l), stack(tb1l), stack(tw2l), stack(tb2l),
            stack(tw3l), stack(tb3l))


if __name__ == "__main__":
    B, D, H, L = 256, 8, 32, 8   # batch, input dim, mlp_neurons, num_layers

    key = jax.random.PRNGKey(0)
    kx, kp = jax.random.split(key)
    x = jax.random.normal(kx, (B, D), jnp.float32)
    params = init_params(kp, L, D, H)

    # 1) Flow forward = composition of RealNVP_block.inverse (layer L-1 .. 0), f32 path.
    x_ref_i, ld_ref_i = realnvp_reference(x, params, inverse=True)
    x_i, ld_i = jax.block_until_ready(realnvp_apply(x, params, inverse=True))
    assert x_i.shape == (B, D) and ld_i.shape == (B,)
    assert jnp.allclose(x_i, x_ref_i, rtol=1e-4, atol=1e-4)
    assert jnp.allclose(ld_i, ld_ref_i, rtol=1e-4, atol=1e-4)

    # 2) Stacked RealNVP_block.forward (layer 0 .. L-1); with L=1 this is exactly
    #    the PyTorch module's forward().  f32 path.
    x_ref_f, ld_ref_f = realnvp_reference(x, params, inverse=False)
    x_f, ld_f = jax.block_until_ready(realnvp_apply(x, params, inverse=False))
    assert jnp.allclose(x_f, x_ref_f, rtol=1e-4, atol=1e-4)
    assert jnp.allclose(ld_f, ld_ref_f, rtol=1e-4, atol=1e-4)

    # 3) bf16 weight/MXU-input option (v6e/v7x); loose check — bf16 casts compound
    #    across 3 matmuls x L layers.
    x_bf, ld_bf = jax.block_until_ready(
        realnvp_apply(x, params, inverse=True, mxu_dtype=jnp.bfloat16))
    assert jnp.allclose(x_bf, x_ref_i, rtol=1e-1, atol=1e-1)
    assert jnp.allclose(ld_bf, ld_ref_i, rtol=1e-1, atol=1e-1)

    print("KERNEL_OK")
</pallas_src>

<mosaic_0001>
module attributes {stable_mosaic.version = 11 : i64} {
  func.func @realnvp_kernel(%arg0: i32, %arg1: memref<8x128xf32, #tpu.memory_space<vmem>>, %arg2: memref<8x8x1xf32, #tpu.memory_space<vmem>>, %arg3: memref<8x64x8xf32, #tpu.memory_space<vmem>>, %arg4: memref<8x64x1xf32, #tpu.memory_space<vmem>>, %arg5: memref<8x64x64xf32, #tpu.memory_space<vmem>>, %arg6: memref<8x64x1xf32, #tpu.memory_space<vmem>>, %arg7: memref<8x8x64xf32, #tpu.memory_space<vmem>>, %arg8: memref<8x8x1xf32, #tpu.memory_space<vmem>>, %arg9: memref<8x8x64xf32, #tpu.memory_space<vmem>>, %arg10: memref<8x8x1xf32, #tpu.memory_space<vmem>>, %arg11: memref<8x128xf32, #tpu.memory_space<vmem>>, %arg12: memref<1x128xf32, #tpu.memory_space<vmem>>) attributes {dimension_semantics = [#tpu.dimension_semantics<parallel>], iteration_bounds = array<i64: 2>, scalar_prefetch = 0 : i64, scratch_operands = 0 : i64, tpu.core_type = #tpu.core_type<tc>, window_params = [{transform_indices = @transform_0, window_bounds = array<i64: 8, 128>}, {pipeline_mode = #tpu.pipeline_mode<synchronous>, transform_indices = @transform_1, window_bounds = array<i64: 8, 8, 1>}, {pipeline_mode = #tpu.pipeline_mode<synchronous>, transform_indices = @transform_2, window_bounds = array<i64: 8, 64, 8>}, {pipeline_mode = #tpu.pipeline_mode<synchronous>, transform_indices = @transform_3, window_bounds = array<i64: 8, 64, 1>}, {pipeline_mode = #tpu.pipeline_mode<synchronous>, transform_indices = @transform_4, window_bounds = array<i64: 8, 64, 64>}, {pipeline_mode = #tpu.pipeline_mode<synchronous>, transform_indices = @transform_5, window_bounds = array<i64: 8, 64, 1>}, {pipeline_mode = #tpu.pipeline_mode<synchronous>, transform_indices = @transform_6, window_bounds = array<i64: 8, 8, 64>}, {pipeline_mode = #tpu.pipeline_mode<synchronous>, transform_indices = @transform_7, window_bounds = array<i64: 8, 8, 1>}, {pipeline_mode = #tpu.pipeline_mode<synchronous>, transform_indices = @transform_8, window_bounds = array<i64: 8, 8, 64>}, {pipeline_mode = #tpu.pipeline_mode<synchronous>, transform_indices = @transform_9, window_bounds = array<i64: 8, 8, 1>}, {transform_indices = @transform_10, window_bounds = array<i64: 8, 128>}, {transform_indices = @transform_11, window_bounds = array<i64: 1, 128>}]} {
    %c0 = arith.constant 0 : index
    %c0_0 = arith.constant 0 : index
    %0 = vector.load %arg1[%c0, %c0_0] : memref<8x128xf32, #tpu.memory_space<vmem>>, vector<8x128xf32>
    %cst = arith.constant 0.000000e+00 : f32
    %1 = vector.broadcast %cst : f32 to vector<1x128xf32>
    %c0_i32 = arith.constant 0 : i32
    %2 = arith.index_cast %c0_i32 : i32 to index
    %c0_1 = arith.constant 0 : index
    %c0_2 = arith.constant 0 : index
    %3 = vector.load %arg3[%2, %c0_1, %c0_2] : memref<8x64x8xf32, #tpu.memory_space<vmem>>, vector<1x64x8xf32>
    %4 = vector.shape_cast %3 : vector<1x64x8xf32> to vector<64x8xf32>
    %cst_3 = arith.constant dense<0.000000e+00> : vector<64x128xf32>
    %5 = tpu.matmul %4, %0, %cst_3 {dimension_numbers = #tpu.dot_dimension_numbers<[1], [0], [0], [1], [0, 0, 1, 1], [], []>} : vector<64x8xf32>, vector<8x128xf32>, vector<64x128xf32> -> vector<64x128xf32>
    %6 = arith.index_cast %c0_i32 : i32 to index
    %c0_4 = arith.constant 0 : index
    %c0_5 = arith.constant 0 : index
    %7 = vector.load %arg4[%6, %c0_4, %c0_5] : memref<8x64x1xf32, #tpu.memory_space<vmem>>, vector<1x64x1xf32>
    %8 = vector.shape_cast %7 : vector<1x64x1xf32> to vector<64x1xf32>
    %9 = vector.broadcast %8 : vector<64x1xf32> to vector<64x128xf32>
    %10 = arith.addf %5, %9 : vector<64x128xf32>
    %cst_6 = arith.constant 0.00999999977 : f32
    %11 = vector.broadcast %cst_6 : f32 to vector<64x128xf32>
    %12 = arith.mulf %11, %10 : vector<64x128xf32>
    %13 = arith.maximumf %10, %12 : vector<64x128xf32>
    %14 = arith.index_cast %c0_i32 : i32 to index
    %c0_7 = arith.constant 0 : index
    %c0_8 = arith.constant 0 : index
    %15 = vector.load %arg5[%14, %c0_7, %c0_8] : memref<8x64x64xf32, #tpu.memory_space<vmem>>, vector<1x64x64xf32>
    %16 = vector.shape_cast %15 : vector<1x64x64xf32> to vector<64x64xf32>
    %cst_9 = arith.constant dense<0.000000e+00> : vector<64x128xf32>
    %17 = tpu.matmul %16, %13, %cst_9 {dimension_numbers = #tpu.dot_dimension_numbers<[1], [0], [0], [1], [0, 0, 1, 1], [], []>} : vector<64x64xf32>, vector<64x128xf32>, vector<64x128xf32> -> vector<64x128xf32>
    %18 = arith.index_cast %c0_i32 : i32 to index
    %c0_10 = arith.constant 0 : index
    %c0_11 = arith.constant 0 : index
    %19 = vector.load %arg6[%18, %c0_10, %c0_11] : memref<8x64x1xf32, #tpu.memory_space<vmem>>, vector<1x64x1xf32>
    %20 = vector.shape_cast %19 : vector<1x64x1xf32> to vector<64x1xf32>
    %21 = vector.broadcast %20 : vector<64x1xf32> to vector<64x128xf32>
    %22 = arith.addf %17, %21 : vector<64x128xf32>
    %cst_12 = arith.constant 0.00999999977 : f32
    %23 = vector.broadcast %cst_12 : f32 to vector<64x128xf32>
    %24 = arith.mulf %23, %22 : vector<64x128xf32>
    %25 = arith.maximumf %22, %24 : vector<64x128xf32>
    %26 = arith.index_cast %c0_i32 : i32 to index
    %c0_13 = arith.constant 0 : index
    %c0_14 = arith.constant 0 : index
    %27 = vector.load %arg7[%26, %c0_13, %c0_14] : memref<8x8x64xf32, #tpu.memory_space<vmem>>, vector<1x8x64xf32>
    %28 = vector.shape_cast %27 : vector<1x8x64xf32> to vector<8x64xf32>
    %cst_15 = arith.constant dense<0.000000e+00> : vector<8x128xf32>
    %29 = tpu.matmul %28, %25, %cst_15 {dimension_numbers = #tpu.dot_dimension_numbers<[1], [0], [0], [1], [0, 0, 1, 1], [], []>} : vector<8x64xf32>, vector<64x128xf32>, vector<8x128xf32> -> vector<8x128xf32>
    %30 = arith.index_cast %c0_i32 : i32 to index
    %c0_16 = arith.constant 0 : index
    %c0_17 = arith.constant 0 : index
    %31 = vector.load %arg8[%30, %c0_16, %c0_17] : memref<8x8x1xf32, #tpu.memory_space<vmem>>, vector<1x8x1xf32>
    %32 = vector.shape_cast %31 : vector<1x8x1xf32> to vector<8x1xf32>
    %33 = vector.broadcast %32 : vector<8x1xf32> to vector<8x128xf32>
    %34 = arith.addf %29, %33 : vector<8x128xf32>
    %35 = arith.index_cast %c0_i32 : i32 to index
    %c0_18 = arith.constant 0 : index
    %c0_19 = arith.constant 0 : index
    %36 = vector.load %arg9[%35, %c0_18, %c0_19] : memref<8x8x64xf32, #tpu.memory_space<vmem>>, vector<1x8x64xf32>
    %37 = vector.shape_cast %36 : vector<1x8x64xf32> to vector<8x64xf32>
    %cst_20 = arith.constant dense<0.000000e+00> : vector<8x128xf32>
    %38 = tpu.matmul %37, %25, %cst_20 {dimension_numbers = #tpu.dot_dimension_numbers<[1], [0], [0], [1], [0, 0, 1, 1], [], []>} : vector<8x64xf32>, vector<64x128xf32>, vector<8x128xf32> -> vector<8x128xf32>
    %39 = arith.index_cast %c0_i32 : i32 to index
    %c0_21 = arith.constant 0 : index
    %c0_22 = arith.constant 0 : index
    %40 = vector.load %arg10[%39, %c0_21, %c0_22] : memref<8x8x1xf32, #tpu.memory_space<vmem>>, vector<1x8x1xf32>
    %41 = vector.shape_cast %40 : vector<1x8x1xf32> to vector<8x1xf32>
    %42 = vector.broadcast %41 : vector<8x1xf32> to vector<8x128xf32>
    %43 = arith.addf %38, %42 : vector<8x128xf32>
    %44 = arith.index_cast %c0_i32 : i32 to index
    %c0_23 = arith.constant 0 : index
    %c0_24 = arith.constant 0 : index
    %45 = vector.load %arg2[%44, %c0_23, %c0_24] : memref<8x8x1xf32, #tpu.memory_space<vmem>>, vector<1x8x1xf32>
    %46 = vector.shape_cast %45 : vector<1x8x1xf32> to vector<8x1xf32>
    %cst_25 = arith.constant 5.000000e-01 : f32
    %47 = vector.broadcast %cst_25 : f32 to vector<8x1xf32>
    %48 = arith.cmpf ogt, %46, %47 : vector<8x1xf32>
    %49 = arith.subf %0, %43 : vector<8x128xf32>
    %cst_26 = arith.constant 0.000000e+00 : f32
    %50 = vector.broadcast %cst_26 : f32 to vector<8x128xf32>
    %51 = arith.subf %50, %34 : vector<8x128xf32>
    %52 = math.exp %51 : vector<8x128xf32>
    %53 = arith.mulf %49, %52 : vector<8x128xf32>
    %54 = vector.shape_cast %48 : vector<8x1xi1> to vector<8x1xi1>
    %55 = vector.broadcast %54 : vector<8x1xi1> to vector<8x128xi1>
    %56 = arith.select %55, %0, %53 : vector<8x128xi1>, vector<8x128xf32>
    %cst_27 = arith.constant dense<0.000000e+00> : vector<128xf32>
    %57 = vector.multi_reduction <add>, %34, %cst_27 [0] : vector<8x128xf32> to vector<128xf32>
    %58 = vector.shape_cast %57 : vector<128xf32> to vector<1x128xf32>
    %59 = arith.subf %1, %58 : vector<1x128xf32>
    %c1_i32 = arith.constant 1 : i32
    %60 = arith.index_cast %c1_i32 : i32 to index
    %c0_28 = arith.constant 0 : index
    %c0_29 = arith.constant 0 : index
    %61 = vector.load %arg3[%60, %c0_28, %c0_29] : memref<8x64x8xf32, #tpu.memory_space<vmem>>, vector<1x64x8xf32>
    %62 = vector.shape_cast %61 : vector<1x64x8xf32> to vector<64x8xf32>
    %cst_30 = arith.constant dense<0.000000e+00> : vector<64x128xf32>
    %63 = tpu.matmul %62, %56, %cst_30 {dimension_numbers = #tpu.dot_dimension_numbers<[1], [0], [0], [1], [0, 0, 1, 1], [], []>} : vector<64x8xf32>, vector<8x128xf32>, vector<64x128xf32> -> vector<64x128xf32>
    %64 = arith.index_cast %c1_i32 : i32 to index
    %c0_31 = arith.constant 0 : index
    %c0_32 = arith.constant 0 : index
    %65 = vector.load %arg4[%64, %c0_31, %c0_32] : memref<8x64x1xf32, #tpu.memory_space<vmem>>, vector<1x64x1xf32>
    %66 = vector.shape_cast %65 : vector<1x64x1xf32> to vector<64x1xf32>
    %67 = vector.broadcast %66 : vector<64x1xf32> to vector<64x128xf32>
    %68 = arith.addf %63, %67 : vector<64x128xf32>
    %cst_33 = arith.constant 0.00999999977 : f32
    %69 = vector.broadcast %cst_33 : f32 to vector<64x128xf32>
    %70 = arith.mulf %69, %68 : vector<64x128xf32>
    %71 = arith.maximumf %68, %70 : vector<64x128xf32>
    %72 = arith.index_cast %c1_i32 : i32 to index
    %c0_34 = arith.constant 0 : index
    %c0_35 = arith.constant 0 : index
    %73 = vector.load %arg5[%72, %c0_34, %c0_35] : memref<8x64x64xf32, #tpu.memory_space<vmem>>, vector<1x64x64xf32>
    %74 = vector.shape_cast %73 : vector<1x64x64xf32> to vector<64x64xf32>
    %cst_36 = arith.constant dense<0.000000e+00> : vector<64x128xf32>
    %75 = tpu.matmul %74, %71, %cst_36 {dimension_numbers = #tpu.dot_dimension_numbers<[1], [0], [0], [1], [0, 0, 1, 1], [], []>} : vector<64x64xf32>, vector<64x128xf32>, vector<64x128xf32> -> vector<64x128xf32>
    %76 = arith.index_cast %c1_i32 : i32 to index
    %c0_37 = arith.constant 0 : index
    %c0_38 = arith.constant 0 : index
    %77 = vector.load %arg6[%76, %c0_37, %c0_38] : memref<8x64x1xf32, #tpu.memory_space<vmem>>, vector<1x64x1xf32>
    %78 = vector.shape_cast %77 : vector<1x64x1xf32> to vector<64x1xf32>
    %79 = vector.broadcast %78 : vector<64x1xf32> to vector<64x128xf32>
    %80 = arith.addf %75, %79 : vector<64x128xf32>
    %cst_39 = arith.constant 0.00999999977 : f32
    %81 = vector.broadcast %cst_39 : f32 to vector<64x128xf32>
    %82 = arith.mulf %81, %80 : vector<64x128xf32>
    %83 = arith.maximumf %80, %82 : vector<64x128xf32>
    %84 = arith.index_cast %c1_i32 : i32 to index
    %c0_40 = arith.constant 0 : index
    %c0_41 = arith.constant 0 : index
    %85 = vector.load %arg7[%84, %c0_40, %c0_41] : memref<8x8x64xf32, #tpu.memory_space<vmem>>, vector<1x8x64xf32>
    %86 = vector.shape_cast %85 : vector<1x8x64xf32> to vector<8x64xf32>
    %cst_42 = arith.constant dense<0.000000e+00> : vector<8x128xf32>
    %87 = tpu.matmul %86, %83, %cst_42 {dimension_numbers = #tpu.dot_dimension_numbers<[1], [0], [0], [1], [0, 0, 1, 1], [], []>} : vector<8x64xf32>, vector<64x128xf32>, vector<8x128xf32> -> vector<8x128xf32>
    %88 = arith.index_cast %c1_i32 : i32 to index
    %c0_43 = arith.constant 0 : index
    %c0_44 = arith.constant 0 : index
    %89 = vector.load %arg8[%88, %c0_43, %c0_44] : memref<8x8x1xf32, #tpu.memory_space<vmem>>, vector<1x8x1xf32>
    %90 = vector.shape_cast %89 : vector<1x8x1xf32> to vector<8x1xf32>
    %91 = vector.broadcast %90 : vector<8x1xf32> to vector<8x128xf32>
    %92 = arith.addf %87, %91 : vector<8x128xf32>
    %93 = arith.index_cast %c1_i32 : i32 to index
    %c0_45 = arith.constant 0 : index
    %c0_46 = arith.constant 0 : index
    %94 = vector.load %arg9[%93, %c0_45, %c0_46] : memref<8x8x64xf32, #tpu.memory_space<vmem>>, vector<1x8x64xf32>
    %95 = vector.shape_cast %94 : vector<1x8x64xf32> to vector<8x64xf32>
    %cst_47 = arith.constant dense<0.000000e+00> : vector<8x128xf32>
    %96 = tpu.matmul %95, %83, %cst_47 {dimension_numbers = #tpu.dot_dimension_numbers<[1], [0], [0], [1], [0, 0, 1, 1], [], []>} : vector<8x64xf32>, vector<64x128xf32>, vector<8x128xf32> -> vector<8x128xf32>
    %97 = arith.index_cast %c1_i32 : i32 to index
    %c0_48 = arith.constant 0 : index
    %c0_49 = arith.constant 0 : index
    %98 = vector.load %arg10[%97, %c0_48, %c0_49] : memref<8x8x1xf32, #tpu.memory_space<vmem>>, vector<1x8x1xf32>
    %99 = vector.shape_cast %98 : vector<1x8x1xf32> to vector<8x1xf32>
    %100 = vector.broadcast %99 : vector<8x1xf32> to vector<8x128xf32>
    %101 = arith.addf %96, %100 : vector<8x128xf32>
    %102 = arith.index_cast %c1_i32 : i32 to index
    %c0_50 = arith.constant 0 : index
    %c0_51 = arith.constant 0 : index
    %103 = vector.load %arg2[%102, %c0_50, %c0_51] : memref<8x8x1xf32, #tpu.memory_space<vmem>>, vector<1x8x1xf32>
    %104 = vector.shape_cast %103 : vector<1x8x1xf32> to vector<8x1xf32>
    %cst_52 = arith.constant 5.000000e-01 : f32
    %105 = vector.broadcast %cst_52 : f32 to vector<8x1xf32>
    %106 = arith.cmpf ogt, %104, %105 : vector<8x1xf32>
    %107 = arith.subf %56, %101 : vector<8x128xf32>
    %cst_53 = arith.constant 0.000000e+00 : f32
    %108 = vector.broadcast %cst_53 : f32 to vector<8x128xf32>
    %109 = arith.subf %108, %92 : vector<8x128xf32>
    %110 = math.exp %109 : vector<8x128xf32>
    %111 = arith.mulf %107, %110 : vector<8x128xf32>
    %112 = vector.shape_cast %106 : vector<8x1xi1> to vector<8x1xi1>
    %113 = vector.broadcast %112 : vector<8x1xi1> to vector<8x128xi1>
    %114 = arith.select %113, %56, %111 : vector<8x128xi1>, vector<8x128xf32>
    %cst_54 = arith.constant dense<0.000000e+00> : vector<128xf32>
    %115 = vector.multi_reduction <add>, %92, %cst_54 [0] : vector<8x128xf32> to vector<128xf32>
    %116 = vector.shape_cast %115 : vector<128xf32> to vector<1x128xf32>
    %117 = arith.subf %59, %116 : vector<1x128xf32>
    %c2_i32 = arith.constant 2 : i32
    %118 = arith.index_cast %c2_i32 : i32 to index
    %c0_55 = arith.constant 0 : index
    %c0_56 = arith.constant 0 : index
    %119 = vector.load %arg3[%118, %c0_55, %c0_56] : memref<8x64x8xf32, #tpu.memory_space<vmem>>, vector<1x64x8xf32>
    %120 = vector.shape_cast %119 : vector<1x64x8xf32> to vector<64x8xf32>
    %cst_57 = arith.constant dense<0.000000e+00> : vector<64x128xf32>
    %121 = tpu.matmul %120, %114, %cst_57 {dimension_numbers = #tpu.dot_dimension_numbers<[1], [0], [0], [1], [0, 0, 1, 1], [], []>} : vector<64x8xf32>, vector<8x128xf32>, vector<64x128xf32> -> vector<64x128xf32>
    %122 = arith.index_cast %c2_i32 : i32 to index
    %c0_58 = arith.constant 0 : index
    %c0_59 = arith.constant 0 : index
    %123 = vector.load %arg4[%122, %c0_58, %c0_59] : memref<8x64x1xf32, #tpu.memory_space<vmem>>, vector<1x64x1xf32>
    %124 = vector.shape_cast %123 : vector<1x64x1xf32> to vector<64x1xf32>
    %125 = vector.broadcast %124 : vector<64x1xf32> to vector<64x128xf32>
    %126 = arith.addf %121, %125 : vector<64x128xf32>
    %cst_60 = arith.constant 0.00999999977 : f32
    %127 = vector.broadcast %cst_60 : f32 to vector<64x128xf32>
    %128 = arith.mulf %127, %126 : vector<64x128xf32>
    %129 = arith.maximumf %126, %128 : vector<64x128xf32>
    %130 = arith.index_cast %c2_i32 : i32 to index
    %c0_61 = arith.constant 0 : index
    %c0_62 = arith.constant 0 : index
    %131 = vector.load %arg5[%130, %c0_61, %c0_62] : memref<8x64x64xf32, #tpu.memory_space<vmem>>, vector<1x64x64xf32>
    %132 = vector.shape_cast %131 : vector<1x64x64xf32> to vector<64x64xf32>
    %cst_63 = arith.constant dense<0.000000e+00> : vector<64x128xf32>
    %133 = tpu.matmul %132, %129, %cst_63 {dimension_numbers = #tpu.dot_dimension_numbers<[1], [0], [0], [1], [0, 0, 1, 1], [], []>} : vector<64x64xf32>, vector<64x128xf32>, vector<64x128xf32> -> vector<64x128xf32>
    %134 = arith.index_cast %c2_i32 : i32 to index
    %c0_64 = arith.constant 0 : index
    %c0_65 = arith.constant 0 : index
    %135 = vector.load %arg6[%134, %c0_64, %c0_65] : memref<8x64x1xf32, #tpu.memory_space<vmem>>, vector<1x64x1xf32>
    %136 = vector.shape_cast %135 : vector<1x64x1xf32> to vector<64x1xf32>
    %137 = vector.broadcast %136 : vector<64x1xf32> to vector<64x128xf32>
    %138 = arith.addf %133, %137 : vector<64x128xf32>
    %cst_66 = arith.constant 0.00999999977 : f32
    %139 = vector.broadcast %cst_66 : f32 to vector<64x128xf32>
    %140 = arith.mulf %139, %138 : vector<64x128xf32>
    %141 = arith.maximumf %138, %140 : vector<64x128xf32>
    %142 = arith.index_cast %c2_i32 : i32 to index
    %c0_67 = arith.constant 0 : index
    %c0_68 = arith.constant 0 : index
    %143 = vector.load %arg7[%142, %c0_67, %c0_68] : memref<8x8x64xf32, #tpu.memory_space<vmem>>, vector<1x8x64xf32>
    %144 = vector.shape_cast %143 : vector<1x8x64xf32> to vector<8x64xf32>
    %cst_69 = arith.constant dense<0.000000e+00> : vector<8x128xf32>
    %145 = tpu.matmul %144, %141, %cst_69 {dimension_numbers = #tpu.dot_dimension_numbers<[1], [0], [0], [1], [0, 0, 1, 1], [], []>} : vector<8x64xf32>, vector<64x128xf32>, vector<8x128xf32> -> vector<8x128xf32>
    %146 = arith.index_cast %c2_i32 : i32 to index
    %c0_70 = arith.constant 0 : index
    %c0_71 = arith.constant 0 : index
    %147 = vector.load %arg8[%146, %c0_70, %c0_71] : memref<8x8x1xf32, #tpu.memory_space<vmem>>, vector<1x8x1xf32>
    %148 = vector.shape_cast %147 : vector<1x8x1xf32> to vector<8x1xf32>
    %149 = vector.broadcast %148 : vector<8x1xf32> to vector<8x128xf32>
    %150 = arith.addf %145, %149 : vector<8x128xf32>
    %151 = arith.index_cast %c2_i32 : i32 to index
    %c0_72 = arith.constant 0 : index
    %c0_73 = arith.constant 0 : index
    %152 = vector.load %arg9[%151, %c0_72, %c0_73] : memref<8x8x64xf32, #tpu.memory_space<vmem>>, vector<1x8x64xf32>
    %153 = vector.shape_cast %152 : vector<1x8x64xf32> to vector<8x64xf32>
    %cst_74 = arith.constant dense<0.000000e+00> : vector<8x128xf32>
    %154 = tpu.matmul %153, %141, %cst_74 {dimension_numbers = #tpu.dot_dimension_numbers<[1], [0], [0], [1], [0, 0, 1, 1], [], []>} : vector<8x64xf32>, vector<64x128xf32>, vector<8x128xf32> -> vector<8x128xf32>
    %155 = arith.index_cast %c2_i32 : i32 to index
    %c0_75 = arith.constant 0 : index
    %c0_76 = arith.constant 0 : index
    %156 = vector.load %arg10[%155, %c0_75, %c0_76] : memref<8x8x1xf32, #tpu.memory_space<vmem>>, vector<1x8x1xf32>
    %157 = vector.shape_cast %156 : vector<1x8x1xf32> to vector<8x1xf32>
    %158 = vector.broadcast %157 : vector<8x1xf32> to vector<8x128xf32>
    %159 = arith.addf %154, %158 : vector<8x128xf32>
    %160 = arith.index_cast %c2_i32 : i32 to index
    %c0_77 = arith.constant 0 : index
    %c0_78 = arith.constant 0 : index
    %161 = vector.load %arg2[%160, %c0_77, %c0_78] : memref<8x8x1xf32, #tpu.memory_space<vmem>>, vector<1x8x1xf32>
    %162 = vector.shape_cast %161 : vector<1x8x1xf32> to vector<8x1xf32>
    %cst_79 = arith.constant 5.000000e-01 : f32
    %163 = vector.broadcast %cst_79 : f32 to vector<8x1xf32>
    %164 = arith.cmpf ogt, %162, %163 : vector<8x1xf32>
    %165 = arith.subf %114, %159 : vector<8x128xf32>
    %cst_80 = arith.constant 0.000000e+00 : f32
    %166 = vector.broadcast %cst_80 : f32 to vector<8x128xf32>
    %167 = arith.subf %166, %150 : vector<8x128xf32>
    %168 = math.exp %167 : vector<8x128xf32>
    %169 = arith.mulf %165, %168 : vector<8x128xf32>
    %170 = vector.shape_cast %164 : vector<8x1xi1> to vector<8x1xi1>
    %171 = vector.broadcast %170 : vector<8x1xi1> to vector<8x128xi1>
    %172 = arith.select %171, %114, %169 : vector<8x128xi1>, vector<8x128xf32>
    %cst_81 = arith.constant dense<0.000000e+00> : vector<128xf32>
    %173 = vector.multi_reduction <add>, %150, %cst_81 [0] : vector<8x128xf32> to vector<128xf32>
    %174 = vector.shape_cast %173 : vector<128xf32> to vector<1x128xf32>
    %175 = arith.subf %117, %174 : vector<1x128xf32>
    %c3_i32 = arith.constant 3 : i32
    %176 = arith.index_cast %c3_i32 : i32 to index
    %c0_82 = arith.constant 0 : index
    %c0_83 = arith.constant 0 : index
    %177 = vector.load %arg3[%176, %c0_82, %c0_83] : memref<8x64x8xf32, #tpu.memory_space<vmem>>, vector<1x64x8xf32>
    %178 = vector.shape_cast %177 : vector<1x64x8xf32> to vector<64x8xf32>
    %cst_84 = arith.constant dense<0.000000e+00> : vector<64x128xf32>
    %179 = tpu.matmul %178, %172, %cst_84 {dimension_numbers = #tpu.dot_dimension_numbers<[1], [0], [0], [1], [0, 0, 1, 1], [], []>} : vector<64x8xf32>, vector<8x128xf32>, vector<64x128xf32> -> vector<64x128xf32>
    %180 = arith.index_cast %c3_i32 : i32 to index
    %c0_85 = arith.constant 0 : index
    %c0_86 = arith.constant 0 : index
    %181 = vector.load %arg4[%180, %c0_85, %c0_86] : memref<8x64x1xf32, #tpu.memory_space<vmem>>, vector<1x64x1xf32>
    %182 = vector.shape_cast %181 : vector<1x64x1xf32> to vector<64x1xf32>
    %183 = vector.broadcast %182 : vector<64x1xf32> to vector<64x128xf32>
    %184 = arith.addf %179, %183 : vector<64x128xf32>
    %cst_87 = arith.constant 0.00999999977 : f32
    %185 = vector.broadcast %cst_87 : f32 to vector<64x128xf32>
    %186 = arith.mulf %185, %184 : vector<64x128xf32>
    %187 = arith.maximumf %184, %186 : vector<64x128xf32>
    %188 = arith.index_cast %c3_i32 : i32 to index
    %c0_88 = arith.constant 0 : index
    %c0_89 = arith.constant 0 : index
    %189 = vector.load %arg5[%188, %c0_88, %c0_89] : memref<8x64x64xf32, #tpu.memory_space<vmem>>, vector<1x64x64xf32>
    %190 = vector.shape_cast %189 : vector<1x64x64xf32> to vector<64x64xf32>
    %cst_90 = arith.constant dense<0.000000e+00> : vector<64x128xf32>
    %191 = tpu.matmul %190, %187, %cst_90 {dimension_numbers = #tpu.dot_dimension_numbers<[1], [0], [0], [1], [0, 0, 1, 1], [], []>} : vector<64x64xf32>, vector<64x128xf32>, vector<64x128xf32> -> vector<64x128xf32>
    %192 = arith.index_cast %c3_i32 : i32 to index
    %c0_91 = arith.constant 0 : index
    %c0_92 = arith.constant 0 : index
    %193 = vector.load %arg6[%192, %c0_91, %c0_92] : memref<8x64x1xf32, #tpu.memory_space<vmem>>, vector<1x64x1xf32>
    %194 = vector.shape_cast %193 : vector<1x64x1xf32> to vector<64x1xf32>
    %195 = vector.broadcast %194 : vector<64x1xf32> to vector<64x128xf32>
    %196 = arith.addf %191, %195 : vector<64x128xf32>
    %cst_93 = arith.constant 0.00999999977 : f32
    %197 = vector.broadcast %cst_93 : f32 to vector<64x128xf32>
    %198 = arith.mulf %197, %196 : vector<64x128xf32>
    %199 = arith.maximumf %196, %198 : vector<64x128xf32>
    %200 = arith.index_cast %c3_i32 : i32 to index
    %c0_94 = arith.constant 0 : index
    %c0_95 = arith.constant 0 : index
    %201 = vector.load %arg7[%200, %c0_94, %c0_95] : memref<8x8x64xf32, #tpu.memory_space<vmem>>, vector<1x8x64xf32>
    %202 = vector.shape_cast %201 : vector<1x8x64xf32> to vector<8x64xf32>
    %cst_96 = arith.constant dense<0.000000e+00> : vector<8x128xf32>
    %203 = tpu.matmul %202, %199, %cst_96 {dimension_numbers = #tpu.dot_dimension_numbers<[1], [0], [0], [1], [0, 0, 1, 1], [], []>} : vector<8x64xf32>, vector<64x128xf32>, vector<8x128xf32> -> vector<8x128xf32>
    %204 = arith.index_cast %c3_i32 : i32 to index
    %c0_97 = arith.constant 0 : index
    %c0_98 = arith.constant 0 : index
    %205 = vector.load %arg8[%204, %c0_97, %c0_98] : memref<8x8x1xf32, #tpu.memory_space<vmem>>, vector<1x8x1xf32>
    %206 = vector.shape_cast %205 : vector<1x8x1xf32> to vector<8x1xf32>
    %207 = vector.broadcast %206 : vector<8x1xf32> to vector<8x128xf32>
    %208 = arith.addf %203, %207 : vector<8x128xf32>
    %209 = arith.index_cast %c3_i32 : i32 to index
    %c0_99 = arith.constant 0 : index
    %c0_100 = arith.constant 0 : index
    %210 = vector.load %arg9[%209, %c0_99, %c0_100] : memref<8x8x64xf32, #tpu.memory_space<vmem>>, vector<1x8x64xf32>
    %211 = vector.shape_cast %210 : vector<1x8x64xf32> to vector<8x64xf32>
    %cst_101 = arith.constant dense<0.000000e+00> : vector<8x128xf32>
    %212 = tpu.matmul %211, %199, %cst_101 {dimension_numbers = #tpu.dot_dimension_numbers<[1], [0], [0], [1], [0, 0, 1, 1], [], []>} : vector<8x64xf32>, vector<64x128xf32>, vector<8x128xf32> -> vector<8x128xf32>
    %213 = arith.index_cast %c3_i32 : i32 to index
    %c0_102 = arith.constant 0 : index
    %c0_103 = arith.constant 0 : index
    %214 = vector.load %arg10[%213, %c0_102, %c0_103] : memref<8x8x1xf32, #tpu.memory_space<vmem>>, vector<1x8x1xf32>
    %215 = vector.shape_cast %214 : vector<1x8x1xf32> to vector<8x1xf32>
    %216 = vector.broadcast %215 : vector<8x1xf32> to vector<8x128xf32>
    %217 = arith.addf %212, %216 : vector<8x128xf32>
    %218 = arith.index_cast %c3_i32 : i32 to index
    %c0_104 = arith.constant 0 : index
    %c0_105 = arith.constant 0 : index
    %219 = vector.load %arg2[%218, %c0_104, %c0_105] : memref<8x8x1xf32, #tpu.memory_space<vmem>>, vector<1x8x1xf32>
    %220 = vector.shape_cast %219 : vector<1x8x1xf32> to vector<8x1xf32>
    %cst_106 = arith.constant 5.000000e-01 : f32
    %221 = vector.broadcast %cst_106 : f32 to vector<8x1xf32>
    %222 = arith.cmpf ogt, %220, %221 : vector<8x1xf32>
    %223 = arith.subf %172, %217 : vector<8x128xf32>
    %cst_107 = arith.constant 0.000000e+00 : f32
    %224 = vector.broadcast %cst_107 : f32 to vector<8x128xf32>
    %225 = arith.subf %224, %208 : vector<8x128xf32>
    %226 = math.exp %225 : vector<8x128xf32>
    %227 = arith.mulf %223, %226 : vector<8x128xf32>
    %228 = vector.shape_cast %222 : vector<8x1xi1> to vector<8x1xi1>
    %229 = vector.broadcast %228 : vector<8x1xi1> to vector<8x128xi1>
    %230 = arith.select %229, %172, %227 : vector<8x128xi1>, vector<8x128xf32>
    %cst_108 = arith.constant dense<0.000000e+00> : vector<128xf32>
    %231 = vector.multi_reduction <add>, %208, %cst_108 [0] : vector<8x128xf32> to vector<128xf32>
    %232 = vector.shape_cast %231 : vector<128xf32> to vector<1x128xf32>
    %233 = arith.subf %175, %232 : vector<1x128xf32>
    %c4_i32 = arith.constant 4 : i32
    %234 = arith.index_cast %c4_i32 : i32 to index
    %c0_109 = arith.constant 0 : index
    %c0_110 = arith.constant 0 : index
    %235 = vector.load %arg3[%234, %c0_109, %c0_110] : memref<8x64x8xf32, #tpu.memory_space<vmem>>, vector<1x64x8xf32>
    %236 = vector.shape_cast %235 : vector<1x64x8xf32> to vector<64x8xf32>
    %cst_111 = arith.constant dense<0.000000e+00> : vector<64x128xf32>
    %237 = tpu.matmul %236, %230, %cst_111 {dimension_numbers = #tpu.dot_dimension_numbers<[1], [0], [0], [1], [0, 0, 1, 1], [], []>} : vector<64x8xf32>, vector<8x128xf32>, vector<64x128xf32> -> vector<64x128xf32>
    %238 = arith.index_cast %c4_i32 : i32 to index
    %c0_112 = arith.constant 0 : index
    %c0_113 = arith.constant 0 : index
    %239 = vector.load %arg4[%238, %c0_112, %c0_113] : memref<8x64x1xf32, #tpu.memory_space<vmem>>, vector<1x64x1xf32>
    %240 = vector.shape_cast %239 : vector<1x64x1xf32> to vector<64x1xf32>
    %241 = vector.broadcast %240 : vector<64x1xf32> to vector<64x128xf32>
    %242 = arith.addf %237, %241 : vector<64x128xf32>
    %cst_114 = arith.constant 0.00999999977 : f32
    %243 = vector.broadcast %cst_114 : f32 to vector<64x128xf32>
    %244 = arith.mulf %243, %242 : vector<64x128xf32>
    %245 = arith.maximumf %242, %244 : vector<64x128xf32>
    %246 = arith.index_cast %c4_i32 : i32 to index
    %c0_115 = arith.constant 0 : index
    %c0_116 = arith.constant 0 : index
    %247 = vector.load %arg5[%246, %c0_115, %c0_116] : memref<8x64x64xf32, #tpu.memory_space<vmem>>, vector<1x64x64xf32>
    %248 = vector.shape_cast %247 : vector<1x64x64xf32> to vector<64x64xf32>
    %cst_117 = arith.constant dense<0.000000e+00> : vector<64x128xf32>
    %249 = tpu.matmul %248, %245, %cst_117 {dimension_numbers = #tpu.dot_dimension_numbers<[1], [0], [0], [1], [0, 0, 1, 1], [], []>} : vector<64x64xf32>, vector<64x128xf32>, vector<64x128xf32> -> vector<64x128xf32>
    %250 = arith.index_cast %c4_i32 : i32 to index
    %c0_118 = arith.constant 0 : index
    %c0_119 = arith.constant 0 : index
    %251 = vector.load %arg6[%250, %c0_118, %c0_119] : memref<8x64x1xf32, #tpu.memory_space<vmem>>, vector<1x64x1xf32>
    %252 = vector.shape_cast %251 : vector<1x64x1xf32> to vector<64x1xf32>
    %253 = vector.broadcast %252 : vector<64x1xf32> to vector<64x128xf32>
    %254 = arith.addf %249, %253 : vector<64x128xf32>
    %cst_120 = arith.constant 0.00999999977 : f32
    %255 = vector.broadcast %cst_120 : f32 to vector<64x128xf32>
    %256 = arith.mulf %255, %254 : vector<64x128xf32>
    %257 = arith.maximumf %254, %256 : vector<64x128xf32>
    %258 = arith.index_cast %c4_i32 : i32 to index
    %c0_121 = arith.constant 0 : index
    %c0_122 = arith.constant 0 : index
    %259 = vector.load %arg7[%258, %c0_121, %c0_122] : memref<8x8x64xf32, #tpu.memory_space<vmem>>, vector<1x8x64xf32>
    %260 = vector.shape_cast %259 : vector<1x8x64xf32> to vector<8x64xf32>
    %cst_123 = arith.constant dense<0.000000e+00> : vector<8x128xf32>
    %261 = tpu.matmul %260, %257, %cst_123 {dimension_numbers = #tpu.dot_dimension_numbers<[1], [0], [0], [1], [0, 0, 1, 1], [], []>} : vector<8x64xf32>, vector<64x128xf32>, vector<8x128xf32> -> vector<8x128xf32>
    %262 = arith.index_cast %c4_i32 : i32 to index
    %c0_124 = arith.constant 0 : index
    %c0_125 = arith.constant 0 : index
    %263 = vector.load %arg8[%262, %c0_124, %c0_125] : memref<8x8x1xf32, #tpu.memory_space<vmem>>, vector<1x8x1xf32>
    %264 = vector.shape_cast %263 : vector<1x8x1xf32> to vector<8x1xf32>
    %265 = vector.broadcast %264 : vector<8x1xf32> to vector<8x128xf32>
    %266 = arith.addf %261, %265 : vector<8x128xf32>
    %267 = arith.index_cast %c4_i32 : i32 to index
    %c0_126 = arith.constant 0 : index
    %c0_127 = arith.constant 0 : index
    %268 = vector.load %arg9[%267, %c0_126, %c0_127] : memref<8x8x64xf32, #tpu.memory_space<vmem>>, vector<1x8x64xf32>
    %269 = vector.shape_cast %268 : vector<1x8x64xf32> to vector<8x64xf32>
    %cst_128 = arith.constant dense<0.000000e+00> : vector<8x128xf32>
    %270 = tpu.matmul %269, %257, %cst_128 {dimension_numbers = #tpu.dot_dimension_numbers<[1], [0], [0], [1], [0, 0, 1, 1], [], []>} : vector<8x64xf32>, vector<64x128xf32>, vector<8x128xf32> -> vector<8x128xf32>
    %271 = arith.index_cast %c4_i32 : i32 to index
    %c0_129 = arith.constant 0 : index
    %c0_130 = arith.constant 0 : index
    %272 = vector.load %arg10[%271, %c0_129, %c0_130] : memref<8x8x1xf32, #tpu.memory_space<vmem>>, vector<1x8x1xf32>
    %273 = vector.shape_cast %272 : vector<1x8x1xf32> to vector<8x1xf32>
    %274 = vector.broadcast %273 : vector<8x1xf32> to vector<8x128xf32>
    %275 = arith.addf %270, %274 : vector<8x128xf32>
    %276 = arith.index_cast %c4_i32 : i32 to index
    %c0_131 = arith.constant 0 : index
    %c0_132 = arith.constant 0 : index
    %277 = vector.load %arg2[%276, %c0_131, %c0_132] : memref<8x8x1xf32, #tpu.memory_space<vmem>>, vector<1x8x1xf32>
    %278 = vector.shape_cast %277 : vector<1x8x1xf32> to vector<8x1xf32>
    %cst_133 = arith.constant 5.000000e-01 : f32
    %279 = vector.broadcast %cst_133 : f32 to vector<8x1xf32>
    %280 = arith.cmpf ogt, %278, %279 : vector<8x1xf32>
    %281 = arith.subf %230, %275 : vector<8x128xf32>
    %cst_134 = arith.constant 0.000000e+00 : f32
    %282 = vector.broadcast %cst_134 : f32 to vector<8x128xf32>
    %283 = arith.subf %282, %266 : vector<8x128xf32>
    %284 = math.exp %283 : vector<8x128xf32>
    %285 = arith.mulf %281, %284 : vector<8x128xf32>
    %286 = vector.shape_cast %280 : vector<8x1xi1> to vector<8x1xi1>
    %287 = vector.broadcast %286 : vector<8x1xi1> to vector<8x128xi1>
    %288 = arith.select %287, %230, %285 : vector<8x128xi1>, vector<8x128xf32>
    %cst_135 = arith.constant dense<0.000000e+00> : vector<128xf32>
    %289 = vector.multi_reduction <add>, %266, %cst_135 [0] : vector<8x128xf32> to vector<128xf32>
    %290 = vector.shape_cast %289 : vector<128xf32> to vector<1x128xf32>
    %291 = arith.subf %233, %290 : vector<1x128xf32>
    %c5_i32 = arith.constant 5 : i32
    %292 = arith.index_cast %c5_i32 : i32 to index
    %c0_136 = arith.constant 0 : index
    %c0_137 = arith.constant 0 : index
    %293 = vector.load %arg3[%292, %c0_136, %c0_137] : memref<8x64x8xf32, #tpu.memory_space<vmem>>, vector<1x64x8xf32>
    %294 = vector.shape_cast %293 : vector<1x64x8xf32> to vector<64x8xf32>
    %cst_138 = arith.constant dense<0.000000e+00> : vector<64x128xf32>
    %295 = tpu.matmul %294, %288, %cst_138 {dimension_numbers = #tpu.dot_dimension_numbers<[1], [0], [0], [1], [0, 0, 1, 1], [], []>} : vector<64x8xf32>, vector<8x128xf32>, vector<64x128xf32> -> vector<64x128xf32>
    %296 = arith.index_cast %c5_i32 : i32 to index
    %c0_139 = arith.constant 0 : index
    %c0_140 = arith.constant 0 : index
    %297 = vector.load %arg4[%296, %c0_139, %c0_140] : memref<8x64x1xf32, #tpu.memory_space<vmem>>, vector<1x64x1xf32>
    %298 = vector.shape_cast %297 : vector<1x64x1xf32> to vector<64x1xf32>
    %299 = vector.broadcast %298 : vector<64x1xf32> to vector<64x128xf32>
    %300 = arith.addf %295, %299 : vector<64x128xf32>
    %cst_141 = arith.constant 0.00999999977 : f32
    %301 = vector.broadcast %cst_141 : f32 to vector<64x128xf32>
    %302 = arith.mulf %301, %300 : vector<64x128xf32>
    %303 = arith.maximumf %300, %302 : vector<64x128xf32>
    %304 = arith.index_cast %c5_i32 : i32 to index
    %c0_142 = arith.constant 0 : index
    %c0_143 = arith.constant 0 : index
    %305 = vector.load %arg5[%304, %c0_142, %c0_143] : memref<8x64x64xf32, #tpu.memory_space<vmem>>, vector<1x64x64xf32>
    %306 = vector.shape_cast %305 : vector<1x64x64xf32> to vector<64x64xf32>
    %cst_144 = arith.constant dense<0.000000e+00> : vector<64x128xf32>
    %307 = tpu.matmul %306, %303, %cst_144 {dimension_numbers = #tpu.dot_dimension_numbers<[1], [0], [0], [1], [0, 0, 1, 1], [], []>} : vector<64x64xf32>, vector<64x128xf32>, vector<64x128xf32> -> vector<64x128xf32>
    %308 = arith.index_cast %c5_i32 : i32 to index
    %c0_145 = arith.constant 0 : index
    %c0_146 = arith.constant 0 : index
    %309 = vector.load %arg6[%308, %c0_145, %c0_146] : memref<8x64x1xf32, #tpu.memory_space<vmem>>, vector<1x64x1xf32>
    %310 = vector.shape_cast %309 : vector<1x64x1xf32> to vector<64x1xf32>
    %311 = vector.broadcast %310 : vector<64x1xf32> to vector<64x128xf32>
    %312 = arith.addf %307, %311 : vector<64x128xf32>
    %cst_147 = arith.constant 0.00999999977 : f32
    %313 = vector.broadcast %cst_147 : f32 to vector<64x128xf32>
    %314 = arith.mulf %313, %312 : vector<64x128xf32>
    %315 = arith.maximumf %312, %314 : vector<64x128xf32>
    %316 = arith.index_cast %c5_i32 : i32 to index
    %c0_148 = arith.constant 0 : index
    %c0_149 = arith.constant 0 : index
    %317 = vector.load %arg7[%316, %c0_148, %c0_149] : memref<8x8x64xf32, #tpu.memory_space<vmem>>, vector<1x8x64xf32>
    %318 = vector.shape_cast %317 : vector<1x8x64xf32> to vector<8x64xf32>
    %cst_150 = arith.constant dense<0.000000e+00> : vector<8x128xf32>
    %319 = tpu.matmul %318, %315, %cst_150 {dimension_numbers = #tpu.dot_dimension_numbers<[1], [0], [0], [1], [0, 0, 1, 1], [], []>} : vector<8x64xf32>, vector<64x128xf32>, vector<8x128xf32> -> vector<8x128xf32>
    %320 = arith.index_cast %c5_i32 : i32 to index
    %c0_151 = arith.constant 0 : index
    %c0_152 = arith.constant 0 : index
    %321 = vector.load %arg8[%320, %c0_151, %c0_152] : memref<8x8x1xf32, #tpu.memory_space<vmem>>, vector<1x8x1xf32>
    %322 = vector.shape_cast %321 : vector<1x8x1xf32> to vector<8x1xf32>
    %323 = vector.broadcast %322 : vector<8x1xf32> to vector<8x128xf32>
    %324 = arith.addf %319, %323 : vector<8x128xf32>
    %325 = arith.index_cast %c5_i32 : i32 to index
    %c0_153 = arith.constant 0 : index
    %c0_154 = arith.constant 0 : index
    %326 = vector.load %arg9[%325, %c0_153, %c0_154] : memref<8x8x64xf32, #tpu.memory_space<vmem>>, vector<1x8x64xf32>
    %327 = vector.shape_cast %326 : vector<1x8x64xf32> to vector<8x64xf32>
    %cst_155 = arith.constant dense<0.000000e+00> : vector<8x128xf32>
    %328 = tpu.matmul %327, %315, %cst_155 {dimension_numbers = #tpu.dot_dimension_numbers<[1], [0], [0], [1], [0, 0, 1, 1], [], []>} : vector<8x64xf32>, vector<64x128xf32>, vector<8x128xf32> -> vector<8x128xf32>
    %329 = arith.index_cast %c5_i32 : i32 to index
    %c0_156 = arith.constant 0 : index
    %c0_157 = arith.constant 0 : index
    %330 = vector.load %arg10[%329, %c0_156, %c0_157] : memref<8x8x1xf32, #tpu.memory_space<vmem>>, vector<1x8x1xf32>
    %331 = vector.shape_cast %330 : vector<1x8x1xf32> to vector<8x1xf32>
    %332 = vector.broadcast %331 : vector<8x1xf32> to vector<8x128xf32>
    %333 = arith.addf %328, %332 : vector<8x128xf32>
    %334 = arith.index_cast %c5_i32 : i32 to index
    %c0_158 = arith.constant 0 : index
    %c0_159 = arith.constant 0 : index
    %335 = vector.load %arg2[%334, %c0_158, %c0_159] : memref<8x8x1xf32, #tpu.memory_space<vmem>>, vector<1x8x1xf32>
    %336 = vector.shape_cast %335 : vector<1x8x1xf32> to vector<8x1xf32>
    %cst_160 = arith.constant 5.000000e-01 : f32
    %337 = vector.broadcast %cst_160 : f32 to vector<8x1xf32>
    %338 = arith.cmpf ogt, %336, %337 : vector<8x1xf32>
    %339 = arith.subf %288, %333 : vector<8x128xf32>
    %cst_161 = arith.constant 0.000000e+00 : f32
    %340 = vector.broadcast %cst_161 : f32 to vector<8x128xf32>
    %341 = arith.subf %340, %324 : vector<8x128xf32>
    %342 = math.exp %341 : vector<8x128xf32>
    %343 = arith.mulf %339, %342 : vector<8x128xf32>
    %344 = vector.shape_cast %338 : vector<8x1xi1> to vector<8x1xi1>
    %345 = vector.broadcast %344 : vector<8x1xi1> to vector<8x128xi1>
    %346 = arith.select %345, %288, %343 : vector<8x128xi1>, vector<8x128xf32>
    %cst_162 = arith.constant dense<0.000000e+00> : vector<128xf32>
    %347 = vector.multi_reduction <add>, %324, %cst_162 [0] : vector<8x128xf32> to vector<128xf32>
    %348 = vector.shape_cast %347 : vector<128xf32> to vector<1x128xf32>
    %349 = arith.subf %291, %348 : vector<1x128xf32>
    %c6_i32 = arith.constant 6 : i32
    %350 = arith.index_cast %c6_i32 : i32 to index
    %c0_163 = arith.constant 0 : index
    %c0_164 = arith.constant 0 : index
    %351 = vector.load %arg3[%350, %c0_163, %c0_164] : memref<8x64x8xf32, #tpu.memory_space<vmem>>, vector<1x64x8xf32>
    %352 = vector.shape_cast %351 : vector<1x64x8xf32> to vector<64x8xf32>
    %cst_165 = arith.constant dense<0.000000e+00> : vector<64x128xf32>
    %353 = tpu.matmul %352, %346, %cst_165 {dimension_numbers = #tpu.dot_dimension_numbers<[1], [0], [0], [1], [0, 0, 1, 1], [], []>} : vector<64x8xf32>, vector<8x128xf32>, vector<64x128xf32> -> vector<64x128xf32>
    %354 = arith.index_cast %c6_i32 : i32 to index
    %c0_166 = arith.constant 0 : index
    %c0_167 = arith.constant 0 : index
    %355 = vector.load %arg4[%354, %c0_166, %c0_167] : memref<8x64x1xf32, #tpu.memory_space<vmem>>, vector<1x64x1xf32>
    %356 = vector.shape_cast %355 : vector<1x64x1xf32> to vector<64x1xf32>
    %357 = vector.broadcast %356 : vector<64x1xf32> to vector<64x128xf32>
    %358 = arith.addf %353, %357 : vector<64x128xf32>
    %cst_168 = arith.constant 0.00999999977 : f32
    %359 = vector.broadcast %cst_168 : f32 to vector<64x128xf32>
    %360 = arith.mulf %359, %358 : vector<64x128xf32>
    %361 = arith.maximumf %358, %360 : vector<64x128xf32>
    %362 = arith.index_cast %c6_i32 : i32 to index
    %c0_169 = arith.constant 0 : index
    %c0_170 = arith.constant 0 : index
    %363 = vector.load %arg5[%362, %c0_169, %c0_170] : memref<8x64x64xf32, #tpu.memory_space<vmem>>, vector<1x64x64xf32>
    %364 = vector.shape_cast %363 : vector<1x64x64xf32> to vector<64x64xf32>
    %cst_171 = arith.constant dense<0.000000e+00> : vector<64x128xf32>
    %365 = tpu.matmul %364, %361, %cst_171 {dimension_numbers = #tpu.dot_dimension_numbers<[1], [0], [0], [1], [0, 0, 1, 1], [], []>} : vector<64x64xf32>, vector<64x128xf32>, vector<64x128xf32> -> vector<64x128xf32>
    %366 = arith.index_cast %c6_i32 : i32 to index
    %c0_172 = arith.constant 0 : index
    %c0_173 = arith.constant 0 : index
    %367 = vector.load %arg6[%366, %c0_172, %c0_173] : memref<8x64x1xf32, #tpu.memory_space<vmem>>, vector<1x64x1xf32>
    %368 = vector.shape_cast %367 : vector<1x64x1xf32> to vector<64x1xf32>
    %369 = vector.broadcast %368 : vector<64x1xf32> to vector<64x128xf32>
    %370 = arith.addf %365, %369 : vector<64x128xf32>
    %cst_174 = arith.constant 0.00999999977 : f32
    %371 = vector.broadcast %cst_174 : f32 to vector<64x128xf32>
    %372 = arith.mulf %371, %370 : vector<64x128xf32>
    %373 = arith.maximumf %370, %372 : vector<64x128xf32>
    %374 = arith.index_cast %c6_i32 : i32 to index
    %c0_175 = arith.constant 0 : index
    %c0_176 = arith.constant 0 : index
    %375 = vector.load %arg7[%374, %c0_175, %c0_176] : memref<8x8x64xf32, #tpu.memory_space<vmem>>, vector<1x8x64xf32>
    %376 = vector.shape_cast %375 : vector<1x8x64xf32> to vector<8x64xf32>
    %cst_177 = arith.constant dense<0.000000e+00> : vector<8x128xf32>
    %377 = tpu.matmul %376, %373, %cst_177 {dimension_numbers = #tpu.dot_dimension_numbers<[1], [0], [0], [1], [0, 0, 1, 1], [], []>} : vector<8x64xf32>, vector<64x128xf32>, vector<8x128xf32> -> vector<8x128xf32>
    %378 = arith.index_cast %c6_i32 : i32 to index
    %c0_178 = arith.constant 0 : index
    %c0_179 = arith.constant 0 : index
    %379 = vector.load %arg8[%378, %c0_178, %c0_179] : memref<8x8x1xf32, #tpu.memory_space<vmem>>, vector<1x8x1xf32>
    %380 = vector.shape_cast %379 : vector<1x8x1xf32> to vector<8x1xf32>
    %381 = vector.broadcast %380 : vector<8x1xf32> to vector<8x128xf32>
    %382 = arith.addf %377, %381 : vector<8x128xf32>
    %383 = arith.index_cast %c6_i32 : i32 to index
    %c0_180 = arith.constant 0 : index
    %c0_181 = arith.constant 0 : index
    %384 = vector.load %arg9[%383, %c0_180, %c0_181] : memref<8x8x64xf32, #tpu.memory_space<vmem>>, vector<1x8x64xf32>
    %385 = vector.shape_cast %384 : vector<1x8x64xf32> to vector<8x64xf32>
    %cst_182 = arith.constant dense<0.000000e+00> : vector<8x128xf32>
    %386 = tpu.matmul %385, %373, %cst_182 {dimension_numbers = #tpu.dot_dimension_numbers<[1], [0], [0], [1], [0, 0, 1, 1], [], []>} : vector<8x64xf32>, vector<64x128xf32>, vector<8x128xf32> -> vector<8x128xf32>
    %387 = arith.index_cast %c6_i32 : i32 to index
    %c0_183 = arith.constant 0 : index
    %c0_184 = arith.constant 0 : index
    %388 = vector.load %arg10[%387, %c0_183, %c0_184] : memref<8x8x1xf32, #tpu.memory_space<vmem>>, vector<1x8x1xf32>
    %389 = vector.shape_cast %388 : vector<1x8x1xf32> to vector<8x1xf32>
    %390 = vector.broadcast %389 : vector<8x1xf32> to vector<8x128xf32>
    %391 = arith.addf %386, %390 : vector<8x128xf32>
    %392 = arith.index_cast %c6_i32 : i32 to index
    %c0_185 = arith.constant 0 : index
    %c0_186 = arith.constant 0 : index
    %393 = vector.load %arg2[%392, %c0_185, %c0_186] : memref<8x8x1xf32, #tpu.memory_space<vmem>>, vector<1x8x1xf32>
    %394 = vector.shape_cast %393 : vector<1x8x1xf32> to vector<8x1xf32>
    %cst_187 = arith.constant 5.000000e-01 : f32
    %395 = vector.broadcast %cst_187 : f32 to vector<8x1xf32>
    %396 = arith.cmpf ogt, %394, %395 : vector<8x1xf32>
    %397 = arith.subf %346, %391 : vector<8x128xf32>
    %cst_188 = arith.constant 0.000000e+00 : f32
    %398 = vector.broadcast %cst_188 : f32 to vector<8x128xf32>
    %399 = arith.subf %398, %382 : vector<8x128xf32>
    %400 = math.exp %399 : vector<8x128xf32>
    %401 = arith.mulf %397, %400 : vector<8x128xf32>
    %402 = vector.shape_cast %396 : vector<8x1xi1> to vector<8x1xi1>
    %403 = vector.broadcast %402 : vector<8x1xi1> to vector<8x128xi1>
    %404 = arith.select %403, %346, %401 : vector<8x128xi1>, vector<8x128xf32>
    %cst_189 = arith.constant dense<0.000000e+00> : vector<128xf32>
    %405 = vector.multi_reduction <add>, %382, %cst_189 [0] : vector<8x128xf32> to vector<128xf32>
    %406 = vector.shape_cast %405 : vector<128xf32> to vector<1x128xf32>
    %407 = arith.subf %349, %406 : vector<1x128xf32>
    %c7_i32 = arith.constant 7 : i32
    %408 = arith.index_cast %c7_i32 : i32 to index
    %c0_190 = arith.constant 0 : index
    %c0_191 = arith.constant 0 : index
    %409 = vector.load %arg3[%408, %c0_190, %c0_191] : memref<8x64x8xf32, #tpu.memory_space<vmem>>, vector<1x64x8xf32>
    %410 = vector.shape_cast %409 : vector<1x64x8xf32> to vector<64x8xf32>
    %cst_192 = arith.constant dense<0.000000e+00> : vector<64x128xf32>
    %411 = tpu.matmul %410, %404, %cst_192 {dimension_numbers = #tpu.dot_dimension_numbers<[1], [0], [0], [1], [0, 0, 1, 1], [], []>} : vector<64x8xf32>, vector<8x128xf32>, vector<64x128xf32> -> vector<64x128xf32>
    %412 = arith.index_cast %c7_i32 : i32 to index
    %c0_193 = arith.constant 0 : index
    %c0_194 = arith.constant 0 : index
    %413 = vector.load %arg4[%412, %c0_193, %c0_194] : memref<8x64x1xf32, #tpu.memory_space<vmem>>, vector<1x64x1xf32>
    %414 = vector.shape_cast %413 : vector<1x64x1xf32> to vector<64x1xf32>
    %415 = vector.broadcast %414 : vector<64x1xf32> to vector<64x128xf32>
    %416 = arith.addf %411, %415 : vector<64x128xf32>
    %cst_195 = arith.constant 0.00999999977 : f32
    %417 = vector.broadcast %cst_195 : f32 to vector<64x128xf32>
    %418 = arith.mulf %417, %416 : vector<64x128xf32>
    %419 = arith.maximumf %416, %418 : vector<64x128xf32>
    %420 = arith.index_cast %c7_i32 : i32 to index
    %c0_196 = arith.constant 0 : index
    %c0_197 = arith.constant 0 : index
    %421 = vector.load %arg5[%420, %c0_196, %c0_197] : memref<8x64x64xf32, #tpu.memory_space<vmem>>, vector<1x64x64xf32>
    %422 = vector.shape_cast %421 : vector<1x64x64xf32> to vector<64x64xf32>
    %cst_198 = arith.constant dense<0.000000e+00> : vector<64x128xf32>
    %423 = tpu.matmul %422, %419, %cst_198 {dimension_numbers = #tpu.dot_dimension_numbers<[1], [0], [0], [1], [0, 0, 1, 1], [], []>} : vector<64x64xf32>, vector<64x128xf32>, vector<64x128xf32> -> vector<64x128xf32>
    %424 = arith.index_cast %c7_i32 : i32 to index
    %c0_199 = arith.constant 0 : index
    %c0_200 = arith.constant 0 : index
    %425 = vector.load %arg6[%424, %c0_199, %c0_200] : memref<8x64x1xf32, #tpu.memory_space<vmem>>, vector<1x64x1xf32>
    %426 = vector.shape_cast %425 : vector<1x64x1xf32> to vector<64x1xf32>
    %427 = vector.broadcast %426 : vector<64x1xf32> to vector<64x128xf32>
    %428 = arith.addf %423, %427 : vector<64x128xf32>
    %cst_201 = arith.constant 0.00999999977 : f32
    %429 = vector.broadcast %cst_201 : f32 to vector<64x128xf32>
    %430 = arith.mulf %429, %428 : vector<64x128xf32>
    %431 = arith.maximumf %428, %430 : vector<64x128xf32>
    %432 = arith.index_cast %c7_i32 : i32 to index
    %c0_202 = arith.constant 0 : index
    %c0_203 = arith.constant 0 : index
    %433 = vector.load %arg7[%432, %c0_202, %c0_203] : memref<8x8x64xf32, #tpu.memory_space<vmem>>, vector<1x8x64xf32>
    %434 = vector.shape_cast %433 : vector<1x8x64xf32> to vector<8x64xf32>
    %cst_204 = arith.constant dense<0.000000e+00> : vector<8x128xf32>
    %435 = tpu.matmul %434, %431, %cst_204 {dimension_numbers = #tpu.dot_dimension_numbers<[1], [0], [0], [1], [0, 0, 1, 1], [], []>} : vector<8x64xf32>, vector<64x128xf32>, vector<8x128xf32> -> vector<8x128xf32>
    %436 = arith.index_cast %c7_i32 : i32 to index
    %c0_205 = arith.constant 0 : index
    %c0_206 = arith.constant 0 : index
    %437 = vector.load %arg8[%436, %c0_205, %c0_206] : memref<8x8x1xf32, #tpu.memory_space<vmem>>, vector<1x8x1xf32>
    %438 = vector.shape_cast %437 : vector<1x8x1xf32> to vector<8x1xf32>
    %439 = vector.broadcast %438 : vector<8x1xf32> to vector<8x128xf32>
    %440 = arith.addf %435, %439 : vector<8x128xf32>
    %441 = arith.index_cast %c7_i32 : i32 to index
    %c0_207 = arith.constant 0 : index
    %c0_208 = arith.constant 0 : index
    %442 = vector.load %arg9[%441, %c0_207, %c0_208] : memref<8x8x64xf32, #tpu.memory_space<vmem>>, vector<1x8x64xf32>
    %443 = vector.shape_cast %442 : vector<1x8x64xf32> to vector<8x64xf32>
    %cst_209 = arith.constant dense<0.000000e+00> : vector<8x128xf32>
    %444 = tpu.matmul %443, %431, %cst_209 {dimension_numbers = #tpu.dot_dimension_numbers<[1], [0], [0], [1], [0, 0, 1, 1], [], []>} : vector<8x64xf32>, vector<64x128xf32>, vector<8x128xf32> -> vector<8x128xf32>
    %445 = arith.index_cast %c7_i32 : i32 to index
    %c0_210 = arith.constant 0 : index
    %c0_211 = arith.constant 0 : index
    %446 = vector.load %arg10[%445, %c0_210, %c0_211] : memref<8x8x1xf32, #tpu.memory_space<vmem>>, vector<1x8x1xf32>
    %447 = vector.shape_cast %446 : vector<1x8x1xf32> to vector<8x1xf32>
    %448 = vector.broadcast %447 : vector<8x1xf32> to vector<8x128xf32>
    %449 = arith.addf %444, %448 : vector<8x128xf32>
    %450 = arith.index_cast %c7_i32 : i32 to index
    %c0_212 = arith.constant 0 : index
    %c0_213 = arith.constant 0 : index
    %451 = vector.load %arg2[%450, %c0_212, %c0_213] : memref<8x8x1xf32, #tpu.memory_space<vmem>>, vector<1x8x1xf32>
    %452 = vector.shape_cast %451 : vector<1x8x1xf32> to vector<8x1xf32>
    %cst_214 = arith.constant 5.000000e-01 : f32
    %453 = vector.broadcast %cst_214 : f32 to vector<8x1xf32>
    %454 = arith.cmpf ogt, %452, %453 : vector<8x1xf32>
    %455 = arith.subf %404, %449 : vector<8x128xf32>
    %cst_215 = arith.constant 0.000000e+00 : f32
    %456 = vector.broadcast %cst_215 : f32 to vector<8x128xf32>
    %457 = arith.subf %456, %440 : vector<8x128xf32>
    %458 = math.exp %457 : vector<8x128xf32>
    %459 = arith.mulf %455, %458 : vector<8x128xf32>
    %460 = vector.shape_cast %454 : vector<8x1xi1> to vector<8x1xi1>
    %461 = vector.broadcast %460 : vector<8x1xi1> to vector<8x128xi1>
    %462 = arith.select %461, %404, %459 : vector<8x128xi1>, vector<8x128xf32>
    %cst_216 = arith.constant dense<0.000000e+00> : vector<128xf32>
    %463 = vector.multi_reduction <add>, %440, %cst_216 [0] : vector<8x128xf32> to vector<128xf32>
    %464 = vector.shape_cast %463 : vector<128xf32> to vector<1x128xf32>
    %465 = arith.subf %407, %464 : vector<1x128xf32>
    %c8_i32 = arith.constant 8 : i32
    %c0_217 = arith.constant 0 : index
    %c0_218 = arith.constant 0 : index
    %466 = vector.load %arg11[%c0_217, %c0_218] : memref<8x128xf32, #tpu.memory_space<vmem>>, vector<8x128xf32>
    tpu.vector_store %arg11[%c0_217, %c0_218], %462 {strides = array<i32>} : memref<8x128xf32, #tpu.memory_space<vmem>>, vector<8x128xf32>,
    %c0_219 = arith.constant 0 : index
    %c0_220 = arith.constant 0 : index
    %467 = vector.load %arg12[%c0_219, %c0_220] : memref<1x128xf32, #tpu.memory_space<vmem>>, vector<1x128xf32>
    tpu.vector_store %arg12[%c0_219, %c0_220], %465 {strides = array<i32>} : memref<1x128xf32, #tpu.memory_space<vmem>>, vector<1x128xf32>,
    return
  }
  func.func @transform_0(%arg0: i32) -> (i32, i32) {
    %c0_i32 = arith.constant 0 : i32
    %c0_i32_0 = arith.constant 0 : i32
    return %c0_i32, %arg0 : i32, i32
  }
  func.func @transform_1(%arg0: i32) -> (i32, i32, i32) {
    %c0_i32 = arith.constant 0 : i32
    %c0_i32_0 = arith.constant 0 : i32
    %c0_i32_1 = arith.constant 0 : i32
    %c0_i32_2 = arith.constant 0 : i32
    return %c0_i32, %c0_i32_0, %c0_i32_1 : i32, i32, i32
  }
  func.func @transform_2(%arg0: i32) -> (i32, i32, i32) {
    %c0_i32 = arith.constant 0 : i32
    %c0_i32_0 = arith.constant 0 : i32
    %c0_i32_1 = arith.constant 0 : i32
    %c0_i32_2 = arith.constant 0 : i32
    return %c0_i32, %c0_i32_0, %c0_i32_1 : i32, i32, i32
  }
  func.func @transform_3(%arg0: i32) -> (i32, i32, i32) {
    %c0_i32 = arith.constant 0 : i32
    %c0_i32_0 = arith.constant 0 : i32
    %c0_i32_1 = arith.constant 0 : i32
    %c0_i32_2 = arith.constant 0 : i32
    return %c0_i32, %c0_i32_0, %c0_i32_1 : i32, i32, i32
  }
  func.func @transform_4(%arg0: i32) -> (i32, i32, i32) {
    %c0_i32 = arith.constant 0 : i32
    %c0_i32_0 = arith.constant 0 : i32
    %c0_i32_1 = arith.constant 0 : i32
    %c0_i32_2 = arith.constant 0 : i32
    return %c0_i32, %c0_i32_0, %c0_i32_1 : i32, i32, i32
  }
  func.func @transform_5(%arg0: i32) -> (i32, i32, i32) {
    %c0_i32 = arith.constant 0 : i32
    %c0_i32_0 = arith.constant 0 : i32
    %c0_i32_1 = arith.constant 0 : i32
    %c0_i32_2 = arith.constant 0 : i32
    return %c0_i32, %c0_i32_0, %c0_i32_1 : i32, i32, i32
  }
  func.func @transform_6(%arg0: i32) -> (i32, i32, i32) {
    %c0_i32 = arith.constant 0 : i32
    %c0_i32_0 = arith.constant 0 : i32
    %c0_i32_1 = arith.constant 0 : i32
    %c0_i32_2 = arith.constant 0 : i32
    return %c0_i32, %c0_i32_0, %c0_i32_1 : i32, i32, i32
  }
  func.func @transform_7(%arg0: i32) -> (i32, i32, i32) {
    %c0_i32 = arith.constant 0 : i32
    %c0_i32_0 = arith.constant 0 : i32
    %c0_i32_1 = arith.constant 0 : i32
    %c0_i32_2 = arith.constant 0 : i32
    return %c0_i32, %c0_i32_0, %c0_i32_1 : i32, i32, i32
  }
  func.func @transform_8(%arg0: i32) -> (i32, i32, i32) {
    %c0_i32 = arith.constant 0 : i32
    %c0_i32_0 = arith.constant 0 : i32
    %c0_i32_1 = arith.constant 0 : i32
    %c0_i32_2 = arith.constant 0 : i32
    return %c0_i32, %c0_i32_0, %c0_i32_1 : i32, i32, i32
  }
  func.func @transform_9(%arg0: i32) -> (i32, i32, i32) {
    %c0_i32 = arith.constant 0 : i32
    %c0_i32_0 = arith.constant 0 : i32
    %c0_i32_1 = arith.constant 0 : i32
    %c0_i32_2 = arith.constant 0 : i32
    return %c0_i32, %c0_i32_0, %c0_i32_1 : i32, i32, i32
  }
  func.func @transform_10(%arg0: i32) -> (i32, i32) {
    %c0_i32 = arith.constant 0 : i32
    %c0_i32_0 = arith.constant 0 : i32
    return %c0_i32, %arg0 : i32, i32
  }
  func.func @transform_11(%arg0: i32) -> (i32, i32) {
    %c0_i32 = arith.constant 0 : i32
    %c0_i32_0 = arith.constant 0 : i32
    return %c0_i32, %arg0 : i32, i32
  }
}

</mosaic_0001>

<bundles_post_ra>
// kernel: tpu_custom_call.1
= control target key start
LH: loop header
LB: loop body
LE: loop exit
PB: predicated region body
PF: predicated region fallthrough
CT: control target
= control target key end

     0   :  { %s8702_s0 = inlined_call_operand.vmem [shape: f32[8,256], index: 0, kind: input, shape index: {}]   ;;  %s8703_s1 = inlined_call_operand.vmem [shape: f32[8,8,1], index: 1, kind: input, shape index: {}]   ;;  %s8704_s2 = inlined_call_operand.vmem [shape: f32[8,64,8], index: 2, kind: input, shape index: {}]   ;;  %s8705_s3 = inlined_call_operand.vmem [shape: f32[8,64,1], index: 3, kind: input, shape index: {}]   ;;  %s8706_s4 = inlined_call_operand.vmem [shape: f32[8,64,64], index: 4, kind: input, shape index: {}]   ;;  %s8707_s5 = inlined_call_operand.vmem [shape: f32[8,64,1], index: 5, kind: input, shape index: {}]   ;;  %s8708_s6 = inlined_call_operand.vmem [shape: f32[8,8,64], index: 6, kind: input, shape index: {}]   ;;  %s8709_s7 = inlined_call_operand.vmem [shape: f32[8,8,1], index: 7, kind: input, shape index: {}]   ;;  %s8710_s8 = inlined_call_operand.vmem [shape: f32[8,8,64], index: 8, kind: input, shape index: {}]   ;;  %s8711_s9 = inlined_call_operand.vmem [shape: f32[8,8,1], index: 9, kind: input, shape index: {}]   ;;  %s8712_s10 = inlined_call_operand.hbm [shape: f32[8,256], index: 10, kind: output, shape index: {0}]   ;;  %s8713_s11 = inlined_call_operand.hbm [shape: f32[1,256], index: 11, kind: output, shape index: {1}]  }
   0x1   :  { %8718 = sst [smem:[#allocation9_spill]] %s8702_s0 }
   0x2   :  { %8719 = sst [smem:[#allocation10_spill]] %s8703_s1 }
   0x3   :  { %17 = vsyncpa [#allocation3], 0 }
   0x4   :  { %19 = vsyncpa [#allocation3 + $0x1], 0 }
   0x5   :  { %20 = vsyncpa [#allocation5], 0 }
   0x6   :  { %22 = vsyncpa [#allocation5 + $0x1], 0  ;;  %s7181_s17 = smov 0   ;;  %s7183_s18 = smov 0  }
   0x7   :  { %s7185_s19 = smov 0   ;;  %s7187_s20 = smov 0  }
   0x8 LB: > { %s7202_s21 = sadd.s32 4294967295, %s7113_s20   ;;  %s5234_s22 = sadd.s32 4294967294, %s7113_s20   ;;  %s7113_s20 = sphi %s7187_s20, %s8733_s20   ;;  %s7109_s19 = sphi %s7185_s19, %s8732_s19   ;;  %s7105_s18 = sphi %s7183_s18, %s8731_s18   ;;  %s7101_s17 = sphi %s7181_s17, %s8730_s17  }
   0x9   : > { %s7206_s23 = sadd.s32 1, %s7113_s20   ;;  %s250_s24 = sadd.s32 1, %s7109_s19 }
   0xa   : > { %s247_s25 = ssub.s32 %s7113_s20, %s7206_s23  ;;  %p260_p0 = scmp.ne.s32.totalorder %s7109_s19, %s7105_s18 }
   0xb   : > { %p248_p1 = scmp.eq.s32.totalorder %s247_s25, 0  ;;  %p261_p2 = scmp.eq.s32.totalorder %s7202_s21, 1 }
   0xc   : > { %p266_p3 = scmp.ne.s32.totalorder %s7105_s18, %s7101_s17  ;;  %p267_p4 = scmp.eq.s32.totalorder %s5234_s22, 1 }
   0xd   : > { %s7217_s26 = scalar_select %p248_p1, %s7109_s19, %s250_s24  }
   0xe   : > { %p7219_p5 = por %p261_p2, %p260_p0  ;;  %p7223_p6 = por %p267_p4, %p266_p3 }
   0xf   : > { %8720 = sst [smem:[#allocation8_spill]] %s7217_s26  ;;  %p5237_p7 = scmp.ge.s32.totalorder %s7113_s20, 1 }
  0x10   : > { %p345_p8 = scmp.lt.s32.totalorder %s7113_s20, 3 }
  0x12   : > { %p346_p9 = pnand %p5237_p7, %p345_p8 }
  0x13   : > { %v403_v0 = vld [vmem:[%s8705_s3 + $0x10] sm:$0xff] (!%p346_p9)  ;;  %v401_v1 = vld [vmem:[%s8705_s3] sm:$0xff] (!%p346_p9)  ;;  %p388_p10 = scmp.lt.s32.totalorder (!%p346_p9), %s7202_s21, 1  ;;  %vm449_vm0 = vcmask (!%p346_p9), 64512   ;;  %v7115_v2 = vmov (!%p346_p9), 0   ;;  %v404_v4 = vld [vmem:[%s8705_s3 + $0x18] sm:$0xff] (!%p346_p9) }
  0x14   : > { %349 = sbr.rel (%p346_p9) target bundleno = 5723 (0x165b), region = 60  ;;  %7001 = vset.pattern.permute.xlu1 (!%p346_p9), %v7115_v2  ;;  %7000 = vset.pattern.permute.xlu0 (!%p346_p9), %v7115_v2  ;;  %v393_v3 = vld [vmem:[%s8704_s2] sm:$0xff] (!%p346_p9)  ;;  %v402_v5 = vld [vmem:[%s8705_s3 + $0x8] sm:$0xff] (!%p346_p9)  ;;  %s8723_s0 = sld [smem:[#allocation9_spill]] (!%p346_p9)  ;;  %v395_v10 = vld [vmem:[%s8704_s2 + $0x10] sm:$0xff] (!%p346_p9)  ;;  %vm651_vm4 = vcmask (!%p346_p9), 523264  }
  0x15   : > { %421 = vperm.xlu1 (!%p346_p9), %7001, %v403_v0   ;;  %411 = vperm.xlu0 (!%p346_p9), %7000, %v401_v1   ;;  %v394_v7 = vld [vmem:[%s8704_s2 + $0x8] sm:$0xff] (!%p346_p9)  ;;  %v405_v9 = vld [vmem:[%s8705_s3 + $0x20] sm:$0xff] (!%p346_p9)  ;;  %v396_v11 = vld [vmem:[%s8704_s2 + $0x18] sm:$0xff] (!%p346_p9)  ;;  %s8724_s1 = sld [smem:[#allocation10_spill]] (!%p346_p9)  ;;  %vm7117_vm10 = vmmov (!%p346_p9), 0   ;;  %s8608_s13 = sand.u32 (!%p346_p9), 1, %s7105_s18  }
  0x16   : > { %5994 = vmatprep.mubr.msk.f32.mxu1 (!%p346_p9), %vm449_vm0, %v393_v3  ;;  %v406_v8 = vld [vmem:[%s8705_s3 + $0x28] sm:$0xff] (!%p346_p9)  ;;  %v408_v12 = vld [vmem:[%s8705_s3 + $0x38] sm:$0xff] (!%p346_p9)  ;;  %v407_v13 = vld [vmem:[%s8705_s3 + $0x30] sm:$0xff] (!%p346_p9)  ;;  %s5238_s14 = sshll.u32 (!%p346_p9), %s8608_s13, 3  ;;  %s5645_s15 = sshll.u32 (!%p346_p9), %s7202_s21, 4 }
  0x17   : > { %v397_v14 = vld [vmem:[%s8704_s2 + $0x20] sm:$0xff] (!%p346_p9)  ;;  %v398_v15 = vld [vmem:[%s8704_s2 + $0x28] sm:$0xff] (!%p346_p9)  ;;  %v399_v18 = vld [vmem:[%s8704_s2 + $0x30] sm:$0xff] (!%p346_p9)  ;;  %s387_s22 = scalar_lea.vmem (!%p346_p9), [#allocation4], %s8608_s13 }
  0x18   : > { %v604_v16 = vld [vmem:[%s8707_s5 + $0x8] sm:$0xff] (!%p346_p9)  ;;  %v603_v17 = vld [vmem:[%s8707_s5] sm:$0xff] (!%p346_p9)  ;;  %v400_v19 = vld [vmem:[%s8704_s2 + $0x38] sm:$0xff] (!%p346_p9)  ;;  %s5147_s24 = sshll.u32 (!%p346_p9), %s387_s22, 4  ;;  %s8621_s24 = int_to_ptr.vmem [resolvable:$true] %s5147_s24 }
  0x19   : > { %426 = vperm.xlu1 (!%p346_p9), %7001, %v404_v4   ;;  %416 = vperm.xlu0 (!%p346_p9), %7000, %v402_v5   ;;  %v606_v20 = vld [vmem:[%s8707_s5 + $0x18] sm:$0xff] (!%p346_p9)  ;;  %v605_v21 = vld [vmem:[%s8707_s5 + $0x10] sm:$0xff] (!%p346_p9)  ;;  %v608_v22 = vld [vmem:[%s8707_s5 + $0x28] sm:$0xff] (!%p346_p9)  ;;  %s7019_s25 = scalar_lea.vmem (!%p346_p9), %s8621_s24, 16 }
  0x1a   : > { %v607_v23 = vld [vmem:[%s8707_s5 + $0x20] sm:$0xff] (!%p346_p9)  ;;  %v610_v24 = vld [vmem:[%s8707_s5 + $0x38] sm:$0xff] (!%p346_p9)  ;;  %v609_v25 = vld [vmem:[%s8707_s5 + $0x30] sm:$0xff] (!%p346_p9)  ;;  %p7020_p11 = scmp.ne.s32.totalorder (!%p346_p9), %s8621_s24, %s7019_s25 }
  0x1b   : > { %s389_s16 = scalar_select %p388_p10, %s7202_s21, 1  ;;  %v957_v26 = vld [vmem:[%s8724_s1] sm:$0xff]  ;;  %v5268_v31 = vld [vmem:[%s8705_s3 + $0x50] sm:$0xff]  ;;  %v5267_v32 = vld [vmem:[%s8705_s3 + $0x48] sm:$0xff] }
  0x1c   : > { %v878_v27 = vld [vmem:[%s8711_s9] sm:$0xff]  ;;  %vm958_vm1 = vcmp.gt.f32.partialorder %v957_v26, 0.5  ;;  %v5269_v34 = vld [vmem:[%s8705_s3 + $0x58] sm:$0xff]  ;;  %v5272_v35 = vld [vmem:[%s8705_s3 + $0x70] sm:$0xff]  ;;  %p7021_p12 = pnand %p7020_p11, %p7219_p5 }
  0x1d   : > { %s5239_s30 = sshll.u32 %s389_s16, 3  ;;  %436 = vperm.xlu1 %7001, %v406_v8   ;;  %431 = vperm.xlu0 %7000, %v405_v9   ;;  %v798_v28 = vld [vmem:[%s8709_s7] sm:$0xff]  ;;  %v964_v30 = vsel %vm958_vm1, 1, %v7115_v2  ;;  %v5271_v36 = vld [vmem:[%s8705_s3 + $0x68] sm:$0xff]  ;;  %v5273_v38 = vld [vmem:[%s8705_s3 + $0x78] sm:$0xff] }
  0x1e   : > { %s7252_s26 = scalar_lea.vmem %s8723_s0, %s5239_s30  ;;  %v5266_v29 = vld [vmem:[%s8705_s3 + $0x40] sm:$0xff]  ;;  %v5292_v39 = vld [vmem:[%s8707_s5 + $0x50] sm:$0xff]  ;;  %v5291_v40 = vld [vmem:[%s8707_s5 + $0x48] sm:$0xff]  ;;  %s8625_s30 = scalar_lea.vmem [#allocation2], %s5238_s14 }
  0x1f   : > { %v392_v6 = vld [vmem:[%s7252_s26] sm:$0xff]  ;;  %v5293_v42 = vld [vmem:[%s8707_s5 + $0x58] sm:$0xff]  ;;  %v5296_v43 = vld [vmem:[%s8707_s5 + $0x70] sm:$0xff]  ;;  %s5122_s0 = scalar_lea.sflag [#allocation5], %s8608_s13  ;;  %p7022_p13 = pneg %p7021_p12 }
  0x20   : > { %5992 = vmatprep.subr.mxu1 %v392_v6  ;;  %v5270_v33 = vld [vmem:[%s8705_s3 + $0x60] sm:$0xff]  ;;  %v5295_v44 = vld [vmem:[%s8707_s5 + $0x68] sm:$0xff]  ;;  %v5297_v47 = vld [vmem:[%s8707_s5 + $0x78] sm:$0xff] }
  0x21   : > { %5993 = vmatpush3.msra.mxu1 %v392_v6  ;;  %446 = vperm.xlu1 %7001, %v408_v12   ;;  %v5290_v37 = vld [vmem:[%s8707_s5 + $0x40] sm:$0xff]  ;;  %v5312_v45 = vld [vmem:[%s8724_s1 + $0x8] sm:$0xff]  ;;  %v5324_v52 = vld [vmem:[%s8705_s3 + $0x98] sm:$0xff] }
  0x22   : > { %5995 = vmatmul.mubr.msk.f32.vlgmr.msra.gmra.mrb[0].mxu1 %vm449_vm0, %v394_v7  ;;  %441 = vperm.xlu0 %7000, %v407_v13   ;;  %v5294_v41 = vld [vmem:[%s8707_s5 + $0x60] sm:$0xff]  ;;  %v5307_v46 = vld [vmem:[%s8709_s7 + $0x8] sm:$0xff]  ;;  %vm1549_vm2 = vcmp.gt.f32.partialorder %v5312_v45, 0.5  ;;  %v5323_v53 = vld [vmem:[%s8705_s3 + $0x90] sm:$0xff] }
  0x23   : > { %5997 = vmatprep.mubr.msk.f32.mxu1 %vm449_vm0, %v395_v10  ;;  %v1555_v48 = vsel %vm1549_vm2, 1, %v7115_v2  ;;  %v5310_v49 = vld [vmem:[%s8711_s9 + $0x8] sm:$0xff]  ;;  %v5321_v51 = vld [vmem:[%s8705_s3 + $0x80] sm:$0xff]  ;;  %v5328_v56 = vld [vmem:[%s8705_s3 + $0xb8] sm:$0xff] }
  0x24   : > { %v5322_v50 = vld [vmem:[%s8705_s3 + $0x88] sm:$0xff]  ;;  %v5325_v55 = vld [vmem:[%s8705_s3 + $0xa0] sm:$0xff]  ;;  %v5327_v57 = vld [vmem:[%s8705_s3 + $0xb0] sm:$0xff] }
  0x25   : > { %618 = vperm.xlu1 %7001, %v604_v16   ;;  %v5326_v54 = vld [vmem:[%s8705_s3 + $0xa8] sm:$0xff]  ;;  %v5345_v59 = vld [vmem:[%s8707_s5 + $0x80] sm:$0xff]  ;;  %v5348_v60 = vld [vmem:[%s8707_s5 + $0x98] sm:$0xff] }
  0x26   : > { %5998 = vmatmul.mubr.msk.f32.gmra.mrb[2].mxu1 %vm449_vm0, %v396_v11  ;;  %613 = vperm.xlu0 %7000, %v603_v17   ;;  %v5346_v58 = vld [vmem:[%s8707_s5 + $0x88] sm:$0xff]  ;;  %v5347_v61 = vld [vmem:[%s8707_s5 + $0x90] sm:$0xff]  ;;  %v5349_v63 = vld [vmem:[%s8707_s5 + $0xa0] sm:$0xff] }
  0x27   : > { %6000 = vmatprep.mubr.msk.f32.mxu1 %vm449_vm0, %v397_v14  ;;  %v5350_v62 = vld [vmem:[%s8707_s5 + $0xa8] sm:$0xff]  ;;  %v5352_v0 = vld [vmem:[%s8707_s5 + $0xb8] sm:$0xff]  ;;  %v5351_v1 = vld [vmem:[%s8707_s5 + $0xb0] sm:$0xff] }
  0x28   : > { %v5367_v3 = vld [vmem:[%s8724_s1 + $0x10] sm:$0xff]  ;;  %v5376_v6 = vld [vmem:[%s8705_s3 + $0xc0] sm:$0xff]  ;;  %v5377_v9 = vld [vmem:[%s8705_s3 + $0xc8] sm:$0xff] }
  0x29   : > { %628 = vperm.xlu1 %7001, %v606_v20   ;;  %v5365_v4 = vld [vmem:[%s8711_s9 + $0x10] sm:$0xff]  ;;  %vm2140_vm3 = vcmp.gt.f32.partialorder %v5367_v3, 0.5  ;;  %v595_v10 = vld [vmem:[%s8706_s4] sm:$0xff]  ;;  %v5379_v12 = vld [vmem:[%s8705_s3 + $0xd8] sm:$0xff] }
  0x2a   : > { %6001 = vmatmul.mubr.msk.f32.gmra.mrb[4].mxu1 %vm449_vm0, %v398_v15  ;;  %623 = vperm.xlu0 %7000, %v605_v21   ;;  %v5362_v5 = vld [vmem:[%s8709_s7 + $0x10] sm:$0xff]  ;;  %v2146_v7 = vsel %vm2140_vm3, 1, %v7115_v2  ;;  %v5380_v11 = vld [vmem:[%s8705_s3 + $0xe0] sm:$0xff]  ;;  %v5381_v14 = vld [vmem:[%s8705_s3 + $0xe8] sm:$0xff] }
  0x2b   : > { %6003 = vmatprep.mubr.msk.f32.mxu1 %vm449_vm0, %v399_v18  ;;  %v5378_v8 = vld [vmem:[%s8705_s3 + $0xd0] sm:$0xff]  ;;  %v5400_v15 = vld [vmem:[%s8707_s5 + $0xc0] sm:$0xff]  ;;  %v5383_v16 = vld [vmem:[%s8705_s3 + $0xf8] sm:$0xff] }
  0x2c   : > { %v5382_v13 = vld [vmem:[%s8705_s3 + $0xf0] sm:$0xff]  ;;  %v5401_v18 = vld [vmem:[%s8707_s5 + $0xc8] sm:$0xff]  ;;  %v5403_v20 = vld [vmem:[%s8707_s5 + $0xd8] sm:$0xff] }
  0x2d   : > { %638 = vperm.xlu1 %7001, %v608_v22   ;;  %v5402_v17 = vld [vmem:[%s8707_s5 + $0xd0] sm:$0xff]  ;;  %v5405_v22 = vld [vmem:[%s8707_s5 + $0xe8] sm:$0xff]  ;;  %v5455_v45 = vld [vmem:[%s8707_s5 + $0x100] sm:$0xff] }
  0x2e   : > { %6004 = vmatmul.mubr.msk.f32.gmra.mrb[6].mxu1 %vm449_vm0, %v400_v19  ;;  %633 = vperm.xlu0 %7000, %v607_v23   ;;  %v5404_v19 = vld [vmem:[%s8707_s5 + $0xe0] sm:$0xff]  ;;  %v5406_v21 = vld [vmem:[%s8707_s5 + $0xf0] sm:$0xff]  ;;  %v5422_v23 = vld [vmem:[%s8724_s1 + $0x18] sm:$0xff] }
  0x2f   : > { %6022 = vmatprep.mubr.msk.f32.mxu1 %vm651_vm4, %v595_v10  ;;  %vm2731_vm5 = vcmp.gt.f32.partialorder %v5422_v23, 0.5  ;;  %v5487_v3 = vld [vmem:[%s8705_s3 + $0x148] sm:$0xff] }
  0x30   : > { %v5491_v10 = vld [vmem:[%s8705_s3 + $0x168] sm:$0xff] }
  0x31   : > { %648 = vperm.xlu1 %7001, %v610_v24   ;;  %v5417_v24 = vld [vmem:[%s8709_s7 + $0x18] sm:$0xff]  ;;  %v5515_v23 = vld [vmem:[%s8707_s5 + $0x168] sm:$0xff] }
  0x32   : > { %643 = vperm.xlu0 %7000, %v609_v25   ;;  %v5407_v25 = vld [vmem:[%s8707_s5 + $0xf8] sm:$0xff] }
  0x35   : > { %881 = vperm.xlu1 %7001, %v878_v27  }
  0x36   : > { %801 = vperm.xlu0 %7000, %v798_v28   ;;  %v2737_v28 = vsel %vm2731_vm5, 1, %v7115_v2 }
  0x39   : > { %997 = vperm.xlu1 %7001, %v5266_v29   ;;  %v5420_v29 = vld [vmem:[%s8711_s9 + $0x18] sm:$0xff] }
  0x3a   : > { %966 = vperm.xlu0 %7000, %v964_v30  }
  0x3d   : > { %1007 = vperm.xlu1 %7001, %v5268_v31   ;;  %v5432_v31 = vld [vmem:[%s8705_s3 + $0x108] sm:$0xff] }
  0x3e   : > { %1002 = vperm.xlu0 %7000, %v5267_v32   ;;  %v5431_v32 = vld [vmem:[%s8705_s3 + $0x100] sm:$0xff] }
  0x41   : > { %1017 = vperm.xlu1 %7001, %v5270_v33  }
  0x42   : > { %1012 = vperm.xlu0 %7000, %v5269_v34   ;;  %v5434_v34 = vld [vmem:[%s8705_s3 + $0x118] sm:$0xff] }
  0x45   : > { %1027 = vperm.xlu1 %7001, %v5272_v35   ;;  %v5433_v35 = vld [vmem:[%s8705_s3 + $0x110] sm:$0xff] }
  0x46   : > { %1022 = vperm.xlu0 %7000, %v5271_v36  }
  0x49   : > { %1200 = vperm.xlu1 %7001, %v5290_v37  }
  0x4a   : > { %1032 = vperm.xlu0 %7000, %v5273_v38   ;;  %v5436_v38 = vld [vmem:[%s8705_s3 + $0x128] sm:$0xff] }
  0x4d   : > { %1210 = vperm.xlu1 %7001, %v5292_v39   ;;  %v5435_v39 = vld [vmem:[%s8705_s3 + $0x120] sm:$0xff] }
  0x4e   : > { %1205 = vperm.xlu0 %7000, %v5291_v40  }
  0x51   : > { %1220 = vperm.xlu1 %7001, %v5294_v41   ;;  %v5438_v41 = vld [vmem:[%s8705_s3 + $0x138] sm:$0xff] }
  0x52   : > { %1215 = vperm.xlu0 %7000, %v5293_v42   ;;  %v5437_v42 = vld [vmem:[%s8705_s3 + $0x130] sm:$0xff] }
  0x55   : > { %1230 = vperm.xlu1 %7001, %v5296_v43  }
  0x56   : > { %1225 = vperm.xlu0 %7000, %v5295_v44   ;;  %v5456_v44 = vld [vmem:[%s8707_s5 + $0x108] sm:$0xff] }
  0x59   : > { %1389 = vperm.xlu1 %7001, %v5307_v46  }
  0x5a   : > { %1235 = vperm.xlu0 %7000, %v5297_v47  }
  0x5d   : > { %1557 = vperm.xlu1 %7001, %v1555_v48   ;;  %v5458_v48 = vld [vmem:[%s8707_s5 + $0x118] sm:$0xff] }
  0x5e   : > { %1471 = vperm.xlu0 %7000, %v5310_v49   ;;  %v5457_v49 = vld [vmem:[%s8707_s5 + $0x110] sm:$0xff] }
  0x61   : > { %1593 = vperm.xlu1 %7001, %v5322_v50  }
  0x62   : > { %1588 = vperm.xlu0 %7000, %v5321_v51   ;;  %v5460_v51 = vld [vmem:[%s8707_s5 + $0x128] sm:$0xff] }
  0x65   : > { %1603 = vperm.xlu1 %7001, %v5324_v52   ;;  %v5459_v52 = vld [vmem:[%s8707_s5 + $0x120] sm:$0xff] }
  0x66   : > { %1598 = vperm.xlu0 %7000, %v5323_v53  }
  0x69   : > { %1613 = vperm.xlu1 %7001, %v5326_v54   ;;  %v5462_v54 = vld [vmem:[%s8707_s5 + $0x138] sm:$0xff] }
  0x6a   : > { %1608 = vperm.xlu0 %7000, %v5325_v55   ;;  %v5461_v55 = vld [vmem:[%s8707_s5 + $0x130] sm:$0xff] }
  0x6d   : > { %1623 = vperm.xlu1 %7001, %v5328_v56  }
  0x6e   : > { %1618 = vperm.xlu0 %7000, %v5327_v57   ;;  %v5477_v57 = vld [vmem:[%s8724_s1 + $0x20] sm:$0xff] }
  0x6f   : > { %vm3322_vm6 = vcmp.gt.f32.partialorder %v5477_v57, 0.5  ;;  %v5542_v57 = vld [vmem:[%s8705_s3 + $0x188] sm:$0xff] }
  0x71   : > { %1796 = vperm.xlu1 %7001, %v5346_v58  }
  0x72   : > { %1791 = vperm.xlu0 %7000, %v5345_v59   ;;  %v5475_v59 = vld [vmem:[%s8711_s9 + $0x20] sm:$0xff] }
  0x75   : > { %1806 = vperm.xlu1 %7001, %v5348_v60   ;;  %v5472_v60 = vld [vmem:[%s8709_s7 + $0x20] sm:$0xff] }
  0x76   : > { %1801 = vperm.xlu0 %7000, %v5347_v61  }
  0x79   : > { %1816 = vperm.xlu1 %7001, %v5350_v62   ;;  %v5486_v62 = vld [vmem:[%s8705_s3 + $0x140] sm:$0xff] }
  0x7a   : > { %1811 = vperm.xlu0 %7000, %v5349_v63   ;;  %v3328_v63 = vsel %vm3322_vm6, 1, %v7115_v2 }
  0x7d   : > { %1826 = vperm.xlu1 %7001, %v5352_v0  }
  0x7e   : > { %1821 = vperm.xlu0 %7000, %v5351_v1   ;;  %v5488_v1 = vld [vmem:[%s8705_s3 + $0x150] sm:$0xff] }
  0x81   : > { %2062 = vperm.xlu1 %7001, %v5365_v4  }
  0x82   : > { %1980 = vperm.xlu0 %7000, %v5362_v5  }
  0x85   : > { %2179 = vperm.xlu1 %7001, %v5376_v6   ;;  %v5490_v6 = vld [vmem:[%s8705_s3 + $0x160] sm:$0xff] }
  0x86   : > { %2148 = vperm.xlu0 %7000, %v2146_v7   ;;  %v5489_v7 = vld [vmem:[%s8705_s3 + $0x158] sm:$0xff] }
  0x89   : > { %2189 = vperm.xlu1 %7001, %v5378_v8  }
  0x8a   : > { %2184 = vperm.xlu0 %7000, %v5377_v9   ;;  %v5492_v9 = vld [vmem:[%s8705_s3 + $0x170] sm:$0xff] }
  0x8d   : > { %2199 = vperm.xlu1 %7001, %v5380_v11  }
  0x8e   : > { %2194 = vperm.xlu0 %7000, %v5379_v12   ;;  %v5510_v12 = vld [vmem:[%s8707_s5 + $0x140] sm:$0xff] }
  0x91   : > { %2209 = vperm.xlu1 %7001, %v5382_v13   ;;  %v5493_v13 = vld [vmem:[%s8705_s3 + $0x178] sm:$0xff] }
  0x92   : > { %2204 = vperm.xlu0 %7000, %v5381_v14  }
  0x94   : > { %v7503_v26 = vpop.permute.xlu1 %421  ;;  %v7505_v27 = vpop.permute.xlu0 %411 }
  0x95   : > { %2382 = vperm.xlu1 %7001, %v5400_v15  }
  0x96   : > { %2214 = vperm.xlu0 %7000, %v5383_v16   ;;  %v5512_v16 = vld [vmem:[%s8707_s5 + $0x150] sm:$0xff] }
  0x98   : > { %v7511_v30 = vpop.permute.xlu1 %426  ;;  %v7519_v33 = vpop.permute.xlu0 %416 }
  0x99   : > { %2392 = vperm.xlu1 %7001, %v5402_v17   ;;  %v5511_v17 = vld [vmem:[%s8707_s5 + $0x148] sm:$0xff] }
  0x9a   : > { %2387 = vperm.xlu0 %7000, %v5401_v18  }
  0x9c   : > { %v7527_v36 = vpop.permute.xlu1 %436  ;;  %v7529_v37 = vpop.permute.xlu0 %431 }
  0x9d   : > { %2402 = vperm.xlu1 %7001, %v5404_v19   ;;  %v5514_v19 = vld [vmem:[%s8707_s5 + $0x160] sm:$0xff] }
  0x9e   : > { %2397 = vperm.xlu0 %7000, %v5403_v20   ;;  %v5513_v20 = vld [vmem:[%s8707_s5 + $0x158] sm:$0xff] }
  0xa0   : > { %v7537_v40 = vpop.permute.xlu1 %446 }
  0xa1   : > { %2412 = vperm.xlu1 %7001, %v5406_v21   ;;  %v7545_v43 = vpop.permute.xlu0 %441 }
  0xa2   : > { %2407 = vperm.xlu0 %7000, %v5405_v22   ;;  %v5516_v22 = vld [vmem:[%s8707_s5 + $0x170] sm:$0xff] }
  0xa4   : > { %v7553_v46 = vpop.permute.xlu1 %618 }
  0xa5   : > { %2571 = vperm.xlu1 %7001, %v5417_v24   ;;  %v7555_v47 = vpop.permute.xlu0 %613 }
  0xa6   : > { %2417 = vperm.xlu0 %7000, %v5407_v25   ;;  %v5532_v25 = vld [vmem:[%s8724_s1 + $0x28] sm:$0xff] }
  0xa7   : > { %vm3913_vm7 = vcmp.gt.f32.partialorder %v5532_v25, 0.5 }
  0xa8   : > { %v7563_v50 = vpop.permute.xlu1 %628 }
  0xa9   : > { %2739 = vperm.xlu1 %7001, %v2737_v28   ;;  %v7571_v53 = vpop.permute.xlu0 %623 }
  0xaa   : > { %2653 = vperm.xlu0 %7000, %v5420_v29   ;;  %v5527_v29 = vld [vmem:[%s8709_s7 + $0x28] sm:$0xff] }
  0xac   : > { %v7579_v56 = vpop.permute.xlu1 %638 }
  0xad   : > { %2775 = vperm.xlu1 %7001, %v5432_v31   ;;  %v7584_v58 = vpop.permute.xlu0 %633  ;;  %v5517_v31 = vld [vmem:[%s8707_s5 + $0x178] sm:$0xff] }
  0xae   : > { %2770 = vperm.xlu0 %7000, %v5431_v32  }
  0xb0   : > { %v7592_v61 = vpop.permute.xlu1 %648 }
  0xb1   : > { %2785 = vperm.xlu1 %7001, %v5434_v34   ;;  %v7598_v0 = vpop.permute.xlu0 %643 }
  0xb2   : > { %2780 = vperm.xlu0 %7000, %v5433_v35  }
  0xb4   : > { %v7606_v4 = vpop.permute.xlu1 %881 }
  0xb5   : > { %2795 = vperm.xlu1 %7001, %v5436_v38   ;;  %v7608_v5 = vpop.permute.xlu0 %801 }
  0xb6   : > { %2790 = vperm.xlu0 %7000, %v5435_v39  }
  0xb8   : > { %v7616_v8 = vpop.permute.xlu1 %997 }
  0xb9   : > { %2805 = vperm.xlu1 %7001, %v5438_v41   ;;  %v7624_v11 = vpop.permute.xlu0 %966 }
  0xba   : > { %2800 = vperm.xlu0 %7000, %v5437_v42   ;;  %v3919_v42 = vsel %vm3913_vm7, 1, %v7115_v2  ;;  %vm968_vm11 = vcmp.eq.s32.totalorder %v7624_v11, 1  ;;  %v5262_v11 = vld [vmem:[%s8704_s2 + $0x60] sm:$0xff] }
  0xbc   : > { %v7632_v14 = vpop.permute.xlu1 %1007 }
  0xbd   : > { %2978 = vperm.xlu1 %7001, %v5456_v44   ;;  %v7634_v15 = vpop.permute.xlu0 %1002  ;;  %v5530_v44 = vld [vmem:[%s8711_s9 + $0x28] sm:$0xff] }
  0xbe   : > { %2973 = vperm.xlu0 %7000, %v5455_v45  }
  0xc0   : > { %v7642_v18 = vpop.permute.xlu1 %1017 }
  0xc1   : > { %2988 = vperm.xlu1 %7001, %v5458_v48   ;;  %v7650_v21 = vpop.permute.xlu0 %1012 }
  0xc2   : > { %2983 = vperm.xlu0 %7000, %v5457_v49  }
  0xc4   : > { %v7658_v24 = vpop.permute.xlu1 %1027 }
  0xc5   : > { %2998 = vperm.xlu1 %7001, %v5460_v51   ;;  %v7663_v28 = vpop.permute.xlu0 %1022 }
  0xc6   : > { %2993 = vperm.xlu0 %7000, %v5459_v52  }
  0xc8   : > { %v7672_v38 = vpop.permute.xlu1 %1200 }
  0xc9   : > { %3008 = vperm.xlu1 %7001, %v5462_v54   ;;  %v7679_v45 = vpop.permute.xlu0 %1032 }
  0xca   : > { %3003 = vperm.xlu0 %7000, %v5461_v55  }
  0xcd   : > { %3244 = vperm.xlu1 %7001, %v5475_v59   ;;  %v5541_v59 = vld [vmem:[%s8705_s3 + $0x180] sm:$0xff] }
  0xce   : > { %3162 = vperm.xlu0 %7000, %v5472_v60  }
  0xd1   : > { %3361 = vperm.xlu1 %7001, %v5486_v62   ;;  %v7689_v62 = vpop.permute.xlu1 %1210 }
  0xd2   : > { %3330 = vperm.xlu0 %7000, %v3328_v63  }
  0xd5   : > { %3371 = vperm.xlu1 %7001, %v5488_v1  }
  0xd6   : > { %3366 = vperm.xlu0 %7000, %v5487_v3  }
  0xd9   : > { %3381 = vperm.xlu1 %7001, %v5490_v6   ;;  %v7692_v6 = vpop.permute.xlu0 %1205 }
  0xda   : > { %3376 = vperm.xlu0 %7000, %v5489_v7  }
  0xdd   : > { %3391 = vperm.xlu1 %7001, %v5492_v9  }
  0xde   : > { %3386 = vperm.xlu0 %7000, %v5491_v10  }
  0xe1   : > { %3564 = vperm.xlu1 %7001, %v5510_v12   ;;  %v5544_v12 = vld [vmem:[%s8705_s3 + $0x198] sm:$0xff] }
  0xe2   : > { %3396 = vperm.xlu0 %7000, %v5493_v13   ;;  %v5543_v13 = vld [vmem:[%s8705_s3 + $0x190] sm:$0xff] }
  0xe5   : > { %3574 = vperm.xlu1 %7001, %v5512_v16  }
  0xe6   : > { %3569 = vperm.xlu0 %7000, %v5511_v17  }
  0xe9   : > { %3584 = vperm.xlu1 %7001, %v5514_v19  }
  0xea   : > { %3579 = vperm.xlu0 %7000, %v5513_v20  }
  0xed   : > { %3594 = vperm.xlu1 %7001, %v5516_v22  }
  0xee   : > { %3589 = vperm.xlu0 %7000, %v5515_v23  }
  0xf1   : > { %3753 = vperm.xlu1 %7001, %v5527_v29   ;;  %v5546_v29 = vld [vmem:[%s8705_s3 + $0x1a8] sm:$0xff] }
  0xf2   : > { %3599 = vperm.xlu0 %7000, %v5517_v31   ;;  %v5545_v31 = vld [vmem:[%s8705_s3 + $0x1a0] sm:$0xff] }
  0xf5   : > { %v5996_v32 = vpop.f32.mrb[0].mxu1  ;;  %3921 = vperm.xlu1 %7001, %v3919_v42   ;;  %v5547_v42 = vld [vmem:[%s8705_s3 + $0x1b0] sm:$0xff] }
  0xf6   : > { %v546_v34 = vadd.f32 %v5996_v32, %v7519_v33  ;;  %v540_v35 = vpop.f32.mrb[1].mxu1  ;;  %3835 = vperm.xlu0 %7000, %v5530_v44   ;;  %v7709_v32 = vpop.permute.xlu1 %1220 }
  0xf7   : > { %v541_v41 = vadd.f32 %v540_v35, %v7505_v27 }
  0xf8   : > { %v580_v39 = vmul.f32 0.01, %v546_v34 }
  0xf9   : > { %v5999_v48 = vpop.f32.mrb[2].mxu1  ;;  %v579_v51 = vmul.f32 0.01, %v541_v41  ;;  %3957 = vperm.xlu1 %7001, %v5542_v57  }
  0xfa   : > { %v588_v49 = vmax.f32 %v546_v34, %v580_v39  ;;  %v556_v33 = vadd.f32 %v5999_v48, %v7511_v30  ;;  %v550_v52 = vpop.f32.mrb[3].mxu1  ;;  %3952 = vperm.xlu0 %7000, %v5541_v59   ;;  %v7719_v48 = vpop.permute.xlu1 %1230 }
  0xfb   : > { %v587_v54 = vmax.f32 %v541_v41, %v579_v51  ;;  %v551_v27 = vadd.f32 %v550_v52, %v7503_v26  ;;  %v5548_v41 = vld [vmem:[%s8705_s3 + $0x1b8] sm:$0xff]  ;;  %v5566_v51 = vld [vmem:[%s8707_s5 + $0x188] sm:$0xff] }
  0xfc   : > { %v582_v55 = vmul.f32 0.01, %v556_v33  ;;  %v596_v52 = vld [vmem:[%s8706_s4 + $0x8] sm:$0xff] }
  0xfd   : > { %v6002_v60 = vpop.f32.mrb[4].mxu1  ;;  %v581_v30 = vmul.f32 0.01, %v551_v27  ;;  %v6632_v3 = vpack.c.bf16 %v588_v49, %v587_v54  ;;  %3967 = vperm.xlu1 %7001, %v5544_v12   ;;  %v597_v54 = vld [vmem:[%s8706_s4 + $0x10] sm:$0xff] }
  0xfe   : > { %v590_v63 = vmax.f32 %v556_v33, %v582_v55  ;;  %v566_v1 = vadd.f32 %v6002_v60, %v7527_v36  ;;  %v560_v7 = vpop.f32.mrb[5].mxu1  ;;  %3962 = vperm.xlu0 %7000, %v5543_v13   ;;  %v5565_v33 = vld [vmem:[%s8707_s5 + $0x180] sm:$0xff]  ;;  %v5568_v55 = vld [vmem:[%s8707_s5 + $0x198] sm:$0xff]  ;;  %v7742_v57 = vpop.permute.xlu1 %1389  ;;  %v5571_v12 = vld [vmem:[%s8707_s5 + $0x1b0] sm:$0xff] }
  0xff   : > { %v589_v26 = vmax.f32 %v551_v27, %v581_v30  ;;  %v561_v10 = vadd.f32 %v560_v7, %v7529_v37  ;;  %6633 = vmatprep.subr.bf16.mxu1 %v6632_v3  ;;  %v5567_v27 = vld [vmem:[%s8707_s5 + $0x190] sm:$0xff]  ;;  %v598_v60 = vld [vmem:[%s8706_s4 + $0x18] sm:$0xff]  ;;  %v5570_v30 = vld [vmem:[%s8707_s5 + $0x1a8] sm:$0xff] }
 0x100   : > { %v584_v9 = vmul.f32 0.01, %v566_v1  ;;  %6635 = vmatpush3.bf16.msra.mxu1 %v6632_v3  ;;  %v600_v3 = vld [vmem:[%s8706_s4 + $0x28] sm:$0xff]  ;;  %v601_v7 = vld [vmem:[%s8706_s4 + $0x30] sm:$0xff]  ;;  %v602_v13 = vld [vmem:[%s8706_s4 + $0x38] sm:$0xff] }
 0x101   : > { %v6005_v36 = vpop.f32.mrb[6].mxu1  ;;  %v583_v17 = vmul.f32 0.01, %v561_v10  ;;  %v6636_v20 = vpack.c.bf16 %v590_v63, %v589_v26  ;;  %3977 = vperm.xlu1 %7001, %v5546_v29   ;;  %v599_v63 = vld [vmem:[%s8706_s4 + $0x20] sm:$0xff]  ;;  %v5598_v29 = vld [vmem:[%s8705_s3 + $0x1d0] sm:$0xff] }
 0x102   : > { %v592_v16 = vmax.f32 %v566_v1, %v584_v9  ;;  %v576_v19 = vadd.f32 %v6005_v36, %v7537_v40  ;;  %v570_v22 = vpop.f32.mrb[7].mxu1  ;;  %v7711_v40 = vpop.permute.xlu0 %1215  ;;  %3972 = vperm.xlu0 %7000, %v5545_v31   ;;  %v5569_v1 = vld [vmem:[%s8707_s5 + $0x1a0] sm:$0xff]  ;;  %v5587_v36 = vld [vmem:[%s8724_s1 + $0x30] sm:$0xff]  ;;  %v5597_v31 = vld [vmem:[%s8705_s3 + $0x1c8] sm:$0xff] }
 0x103   : > { %v591_v37 = vmax.f32 %v561_v10, %v583_v17  ;;  %v571_v25 = vadd.f32 %v570_v22, %v7545_v43  ;;  %6637 = vmatprep.subr.bf16.mxu1 %v6636_v20  ;;  %v7767_v26 = vpop.permute.xlu1 %1557  ;;  %v5572_v10 = vld [vmem:[%s8707_s5 + $0x1b8] sm:$0xff]  ;;  %v5582_v17 = vld [vmem:[%s8709_s7 + $0x30] sm:$0xff]  ;;  %vm4504_vm8 = vcmp.gt.f32.partialorder %v5587_v36, 0.5  ;;  %v5596_v22 = vld [vmem:[%s8705_s3 + $0x1c0] sm:$0xff] }
 0x104   : > { %v586_v23 = vmul.f32 0.01, %v576_v19  ;;  %6639 = vmatpush3.bf16.msra.mxu1 %v6636_v20  ;;  %v5627_v36 = vld [vmem:[%s8707_s5 + $0x1f8] sm:$0xff]  ;;  %vm1559_vm12 = vcmp.eq.s32.totalorder %v7767_v26, 1 }
 0x105   : > { %v585_v35 = vmul.f32 0.01, %v571_v25  ;;  %v6640_v39 = vpack.c.bf16 %v592_v16, %v591_v37  ;;  %3987 = vperm.xlu1 %7001, %v5548_v41   ;;  %v5585_v16 = vld [vmem:[%s8711_s9 + $0x30] sm:$0xff]  ;;  %v4510_v37 = vsel %vm4504_vm8, 1, %v7115_v2  ;;  %v5316_v26 = vld [vmem:[%s8704_s2 + $0x98] sm:$0xff] }
 0x106   : > { %v594_v34 = vmax.f32 %v576_v19, %v586_v23  ;;  %v7721_v49 = vpop.permute.xlu0 %1225  ;;  %3982 = vperm.xlu0 %7000, %v5547_v42   ;;  %v5602_v41 = vld [vmem:[%s8705_s3 + $0x1f0] sm:$0xff]  ;;  %v5601_v42 = vld [vmem:[%s8705_s3 + $0x1e8] sm:$0xff] }
 0x107   : > { %v593_v43 = vmax.f32 %v571_v25, %v585_v35  ;;  %6641 = vmatprep.subr.bf16.mxu1 %v6640_v39  ;;  %v7792_v19 = vpop.permute.xlu1 %1593  ;;  %v5599_v35 = vld [vmem:[%s8705_s3 + $0x1d8] sm:$0xff] }
 0x108   : > { %6643 = vmatpush3.bf16.msra.mxu1 %v6640_v39 }
 0x109   : > { %v6644_v44 = vpack.c.bf16 %v594_v34, %v593_v43  ;;  %4160 = vperm.xlu1 %7001, %v5566_v51   ;;  %v5600_v34 = vld [vmem:[%s8705_s3 + $0x1e0] sm:$0xff] }
 0x10a   : > { %4155 = vperm.xlu0 %7000, %v5565_v33   ;;  %v7744_v59 = vpop.permute.xlu0 %1235  ;;  %v5620_v33 = vld [vmem:[%s8707_s5 + $0x1c0] sm:$0xff] }
 0x10b   : > { %6645 = vmatprep.subr.bf16.mxu1 %v6644_v44  ;;  %v7800_v23 = vpop.permute.xlu1 %1603 }
 0x10c   : > { %6647 = vmatpush3.bf16.msra.mxu1 %v6644_v44 }
 0x10d   : > { %4170 = vperm.xlu1 %7001, %v5568_v55   ;;  %v5621_v55 = vld [vmem:[%s8707_s5 + $0x1c8] sm:$0xff] }
 0x10e   : > { %4165 = vperm.xlu0 %7000, %v5567_v27   ;;  %v7769_v9 = vpop.permute.xlu0 %1471 }
 0x10f   : > { %6023 = vmatmul.mubr.msk.f32.vlgmr.msra.gmra.mrb[8].mxu1 %vm651_vm4, %v596_v52  ;;  %v7816_v39 = vpop.permute.xlu1 %1613  ;;  %v5603_v52 = vld [vmem:[%s8705_s3 + $0x1f8] sm:$0xff] }
 0x110   : > { %6025 = vmatprep.mubr.msk.f32.mxu1 %vm651_vm4, %v597_v54  ;;  %v5622_v54 = vld [vmem:[%s8707_s5 + $0x1d0] sm:$0xff] }
 0x111   : > { %4180 = vperm.xlu1 %7001, %v5570_v30   ;;  %v5623_v30 = vld [vmem:[%s8707_s5 + $0x1d8] sm:$0xff] }
 0x112   : > { %4175 = vperm.xlu0 %7000, %v5569_v1   ;;  %v7794_v20 = vpop.permute.xlu0 %1588 }
 0x113   : > { %6026 = vmatmul.mubr.msk.f32.gmra.mrb[10].mxu1 %vm651_vm4, %v598_v60  ;;  %v7826_v44 = vpop.permute.xlu1 %1623 }
 0x114   : > { %6028 = vmatprep.mubr.msk.f32.mxu1 %vm651_vm4, %v599_v63  ;;  %v5624_v63 = vld [vmem:[%s8707_s5 + $0x1e0] sm:$0xff] }
 0x115   : > { %4190 = vperm.xlu1 %7001, %v5572_v10   ;;  %v5625_v10 = vld [vmem:[%s8707_s5 + $0x1e8] sm:$0xff] }
 0x116   : > { %4185 = vperm.xlu0 %7000, %v5571_v12   ;;  %v7802_v25 = vpop.permute.xlu0 %1598  ;;  %v5642_v12 = vld [vmem:[%s8724_s1 + $0x38] sm:$0xff] }
 0x117   : > { %6029 = vmatmul.mubr.msk.f32.gmra.mrb[12].mxu1 %vm651_vm4, %v600_v3  ;;  %v7842_v27 = vpop.permute.xlu1 %1796  ;;  %vm5095_vm9 = vcmp.gt.f32.partialorder %v5642_v12, 0.5 }
 0x118   : > { %6031 = vmatprep.mubr.msk.f32.mxu1 %vm651_vm4, %v601_v7  ;;  %v5626_v7 = vld [vmem:[%s8707_s5 + $0x1f0] sm:$0xff] }
 0x119   : > { %4426 = vperm.xlu1 %7001, %v5585_v16  }
 0x11a   : > { %4344 = vperm.xlu0 %7000, %v5582_v17   ;;  %v7818_v43 = vpop.permute.xlu0 %1608 }
 0x11b   : > { %6032 = vmatmul.mubr.msk.f32.gmra.mrb[14].mxu1 %vm651_vm4, %v602_v13  ;;  %v7852_v1 = vpop.permute.xlu1 %1806  ;;  %v5637_v13 = vld [vmem:[%s8709_s7 + $0x38] sm:$0xff] }
 0x11d   : > { %4543 = vperm.xlu1 %7001, %v5596_v22   ;;  %v5101_v22 = vsel %vm5095_vm9, 1, %v7115_v2 }
 0x11e   : > { %4512 = vperm.xlu0 %7000, %v4510_v37   ;;  %v7828_v51 = vpop.permute.xlu0 %1618  ;;  %v5640_v37 = vld [vmem:[%s8711_s9 + $0x38] sm:$0xff] }
 0x11f   : > { %v7871_v16 = vpop.permute.xlu1 %1816 }
 0x121   : > { %4553 = vperm.xlu1 %7001, %v5598_v29  }
 0x122   : > { %4548 = vperm.xlu0 %7000, %v5597_v31   ;;  %v7844_v60 = vpop.permute.xlu0 %1791 }
 0x123   : > { %v7879_v29 = vpop.permute.xlu1 %1826 }
 0x125   : > { %4563 = vperm.xlu1 %7001, %v5600_v34   ;;  %v8716_v34 = vmov 0.0|0.0  }
 0x126   : > { %4558 = vperm.xlu0 %7000, %v5599_v35   ;;  %v7854_v3 = vpop.permute.xlu0 %1801  ;;  %6648 = vmatprep.subr.bf16.mxu0 %v8716_v34  ;;  %v8714_v35 = vmov 0.0  }
 0x127   : > { %6660 = vmatprep.subr.bf16.mxu1 %v8716_v34  ;;  %6050 = vmatprep.mubr.msk.f32.mxu0 %vm7117_vm10, %v8714_v35 }
 0x128   : > { %6069 = vmatprep.mubr.msk.f32.mxu1 %vm7117_vm10, %v8714_v35 }
 0x129   : > { %4573 = vperm.xlu1 %7001, %v5602_v41  }
 0x12a   : > { %4568 = vperm.xlu0 %7000, %v5601_v42   ;;  %v7873_v17 = vpop.permute.xlu0 %1811 }
 0x12d   : > { %4746 = vperm.xlu1 %7001, %v5620_v33  }
 0x12e   : > { %4578 = vperm.xlu0 %7000, %v5603_v52   ;;  %v7881_v31 = vpop.permute.xlu0 %1821 }
 0x131   : > { %4756 = vperm.xlu1 %7001, %v5622_v54  }
 0x132   : > { %4751 = vperm.xlu0 %7000, %v5621_v55  }
 0x135   : > { %4766 = vperm.xlu1 %7001, %v5624_v63  }
 0x136   : > { %4761 = vperm.xlu0 %7000, %v5623_v30  }
 0x139   : > { %4776 = vperm.xlu1 %7001, %v5626_v7  }
 0x13a   : > { %4771 = vperm.xlu0 %7000, %v5625_v10  }
 0x13d   : > { %4935 = vperm.xlu1 %7001, %v5637_v13  }
 0x13e   : > { %4781 = vperm.xlu0 %7000, %v5627_v36  }
 0x141   : > { %5103 = vperm.xlu1 %7001, %v5101_v22  }
 0x142   : > { %5017 = vperm.xlu0 %7000, %v5640_v37  }
 0x1e2   : > { %v6024_v2 = vpop.f32.mrb[8].mxu1 }
 0x1e3   : > { %v748_v41 = vadd.f32 %v6024_v2, %v7553_v46  ;;  %v742_v42 = vpop.f32.mrb[9].mxu1 }
 0x1e4   : > { %v743_v33 = vadd.f32 %v742_v42, %v7555_v47  ;;  %v8725_v42 = vmov 0.0|0.0  }
 0x1e5   : > { %v782_v52 = vmul.f32 0.01, %v748_v41 }
 0x1e6   : > { %v781_v54 = vmul.f32 0.01, %v743_v33  ;;  %v6027_v55 = vpop.f32.mrb[10].mxu1 }
 0x1e7   : > { %v790_v63 = vmax.f32 %v748_v41, %v782_v52  ;;  %v758_v30 = vadd.f32 %v6027_v55, %v7563_v50  ;;  %v752_v7 = vpop.f32.mrb[11].mxu1 }
 0x1e8   : > { %v789_v10 = vmax.f32 %v743_v33, %v781_v54  ;;  %v753_v12 = vadd.f32 %v752_v7, %v7571_v53 }
 0x1e9   : > { %v784_v13 = vmul.f32 0.01, %v758_v30 }
 0x1ea   : > { %v783_v36 = vmul.f32 0.01, %v753_v12  ;;  %v6030_v22 = vpop.f32.mrb[12].mxu1  ;;  %v6649_v37 = vpack.c.bf16 %v790_v63, %v789_v10 }
 0x1eb   : > { %v792_v35 = vmax.f32 %v758_v30, %v784_v13  ;;  %v768_v46 = vadd.f32 %v6030_v22, %v7579_v56  ;;  %v762_v2 = vpop.f32.mrb[13].mxu1  ;;  %v5258_v13 = vld [vmem:[%s8704_s2 + $0x40] sm:$0xff] }
 0x1ec   : > { %v791_v34 = vmax.f32 %v753_v12, %v783_v36  ;;  %v763_v47 = vadd.f32 %v762_v2, %v7584_v58  ;;  %6650 = vmatpush3.bf16.msra.mxu0 %v6649_v37  ;;  %6662 = vmatpush3.bf16.msra.mxu1 %v6649_v37 }
 0x1ed   : > { %v786_v41 = vmul.f32 0.01, %v768_v46  ;;  %6651 = vmatprep.subr.bf16.mxu0 %v8725_v42  ;;  %6663 = vmatprep.subr.bf16.mxu1 %v8725_v42 }
 0x1ee   : > { %v785_v50 = vmul.f32 0.01, %v763_v47  ;;  %v6033_v53 = vpop.f32.mrb[14].mxu1  ;;  %v6652_v33 = vpack.c.bf16 %v792_v35, %v791_v34  ;;  %v877_v34 = vld [vmem:[%s8710_s8] sm:$0xff]  ;;  %v8726_v35 = vmov 0.0  }
 0x1ef   : > { %v794_v52 = vmax.f32 %v768_v46, %v786_v41  ;;  %v778_v54 = vadd.f32 %v6033_v53, %v7592_v61  ;;  %v772_v55 = vpop.f32.mrb[15].mxu1  ;;  %v7018_v53 = vld [vmem:[%s7252_s26] sm:$0xff]  ;;  %s8619_s26 = scalar_lea.hbm %s8713_s11, %s5645_s15  ;;  %s7119_s15 = smov [#allocation4]  }
 0x1f0   : > { %v793_v63 = vmax.f32 %v763_v47, %v785_v50  ;;  %v773_v56 = vadd.f32 %v772_v55, %v7598_v0  ;;  %6653 = vmatpush3.bf16.msra.mxu0 %v6652_v33  ;;  %6665 = vmatpush3.bf16.msra.mxu1 %v6652_v33  ;;  %v797_v0 = vld [vmem:[%s8708_s6] sm:$0xff]  ;;  %s7023_s16 = sshll.u32 %s7119_s15, 4  ;;  %s7024_s16 = int_to_ptr.vmem [resolvable:$false] %s7023_s16 }
 0x1f1   : > { %v788_v58 = vmul.f32 0.01, %v778_v54  ;;  %6654 = vmatprep.subr.bf16.mxu0 %v8725_v42  ;;  %6666 = vmatprep.subr.bf16.mxu1 %v8725_v42  ;;  %s7025_s1 = scalar_lea.vmem %s7024_s16, 32  ;;  %p7026_p0 = scmp.lt.s32.totalorder %s8621_s24, %s7024_s16 }
 0x1f2   : > { %v787_v30 = vmul.f32 0.01, %v773_v56  ;;  %v6655_v7 = vpack.c.bf16 %v794_v52, %v793_v63  ;;  %v5260_v63 = vld [vmem:[%s8704_s2 + $0x50] sm:$0xff]  ;;  %p7027_p1 = scmp.lt.s32.totalorder %s7025_s1, %s7019_s25 }
 0x1f3   : > { %v796_v10 = vmax.f32 %v778_v54, %v788_v58  ;;  %v5264_v58 = vld [vmem:[%s8704_s2 + $0x70] sm:$0xff] }
 0x1f4   : > { %v795_v12 = vmax.f32 %v773_v56, %v787_v30  ;;  %6656 = vmatpush3.bf16.msra.mxu0 %v6655_v7  ;;  %6668 = vmatpush3.bf16.msra.mxu1 %v6655_v7  ;;  %v5263_v56 = vld [vmem:[%s8704_s2 + $0x68] sm:$0xff]  ;;  %v5265_v30 = vld [vmem:[%s8704_s2 + $0x78] sm:$0xff]  ;;  %v5282_v7 = vld [vmem:[%s8706_s4 + $0x40] sm:$0xff]  ;;  %p7028_p2 = por %p7027_p1, %p7026_p0 }
 0x1f5   : > { %6657 = vmatprep.subr.bf16.mxu0 %v8725_v42  ;;  %6669 = vmatprep.subr.bf16.mxu1 %v8725_v42 }
 0x1f6   : > { %v6658_v61 = vpack.c.bf16 %v796_v10, %v795_v12  ;;  %p7029_p3 = pnand %p7028_p2, %p7022_p13 }
 0x1f8   : > { %6659 = vmatpush3.bf16.msra.mxu0 %v6658_v61  ;;  %6671 = vmatpush3.bf16.msra.mxu1 %v6658_v61 }
 0x1f9   : > { %6688 = vmatprep.subr.bf16.mxu1 %v8725_v42 }
 0x1fb   : > { %6051 = vmatmul.mubr.msk.f32.vlgmr.msra.gmra.mrb[0].mxu0 %vm651_vm4, %v797_v0  ;;  %6070 = vmatmul.mubr.msk.f32.vlgmr.msra.gmra.mrb[16].mxu1 %vm651_vm4, %v877_v34 }
 0x1fc   : > { %6130 = vmatprep.mubr.msk.f32.mxu1 %vm7117_vm10, %v8726_v35  ;;  %6074 = vmatprep.mubr.msk.f32.mxu0 %vm449_vm0, %v5258_v13 }
 0x2ce   : > { %v873_v36 = vpop.f32.mrb[0].mxu0  ;;  %v953_v22 = vpop.f32.mrb[16].mxu1 }
 0x2cf   : > { %v7919_v37 = vadd.f32 %v873_v36, %v7608_v5  ;;  %v6052_v46 = vpop.f32.mrb[1].mxu0  ;;  %v6071_v2 = vpop.f32.mrb[17].mxu1  ;;  %v954_v50 = vadd.f32 %v953_v22, %v7606_v4  ;;  %v5259_v5 = vld [vmem:[%s8704_s2 + $0x48] sm:$0xff]  ;;  %v5261_v4 = vld [vmem:[%s8704_s2 + $0x58] sm:$0xff] }
 0x2d1   : > { %v960_v47 = vsub.f32 0.0, %v7919_v37  ;;  %v959_v33 = vsub.f32 %v7018_v53, %v954_v50 }
 0x2d3   : > { %v961_v41 = vmul.f32 1.442695, %v960_v47 }
 0x2d5   : > { %7002 = vpow2.f32 %v961_v41 }
 0x2df   : > { %v7003_v52 = vpop.eup %7002 }
 0x2e0   : > { %v963_v54 = vmul.f32 %v7003_v52, %v959_v33 }
 0x2e2   : > { %v7925_v55 = vsel %vm968_vm11, %v7018_v53, %v963_v54 }
 0x2e3   : > { %6072 = vmatprep.subr.mxu0 %v7925_v55 }
 0x2e4   : > { %6073 = vmatpush3.msra.mxu0 %v7925_v55 }
 0x2e5   : > { %6075 = vmatmul.mubr.msk.f32.vlgmr.msra.gmra.mrb[2].mxu0 %vm449_vm0, %v5259_v5 }
 0x2e6   : > { %6077 = vmatprep.mubr.msk.f32.mxu0 %vm449_vm0, %v5260_v63 }
 0x2e9   : > { %6078 = vmatmul.mubr.msk.f32.gmra.mrb[4].mxu0 %vm449_vm0, %v5261_v4 }
 0x2ea   : > { %6080 = vmatprep.mubr.msk.f32.mxu0 %vm449_vm0, %v5262_v11 }
 0x2ed   : > { %6081 = vmatmul.mubr.msk.f32.gmra.mrb[6].mxu0 %vm449_vm0, %v5263_v56 }
 0x2ee   : > { %6083 = vmatprep.mubr.msk.f32.mxu0 %vm449_vm0, %v5264_v58 }
 0x2f1   : > { %6084 = vmatmul.mubr.msk.f32.gmra.mrb[8].mxu0 %vm449_vm0, %v5265_v30 }
 0x2f2   : > { %6102 = vmatprep.mubr.msk.f32.mxu0 %vm651_vm4, %v5282_v7 }
 0x3b8   : > { %v6076_v10 = vpop.f32.mrb[2].mxu0 }
 0x3b9   : > { %v1131_v12 = vadd.f32 %v6076_v10, %v7634_v15  ;;  %v1125_v61 = vpop.f32.mrb[3].mxu0 }
 0x3ba   : > { %v1126_v0 = vadd.f32 %v1125_v61, %v7616_v8 }
 0x3bb   : > { %v1165_v34 = vmul.f32 0.01, %v1131_v12 }
 0x3bc   : > { %v1164_v13 = vmul.f32 0.01, %v1126_v0  ;;  %v6079_v36 = vpop.f32.mrb[4].mxu0 }
 0x3bd   : > { %v1173_v22 = vmax.f32 %v1131_v12, %v1165_v34  ;;  %v1141_v46 = vadd.f32 %v6079_v36, %v7650_v21  ;;  %v1135_v2 = vpop.f32.mrb[5].mxu0  ;;  %v5286_v36 = vld [vmem:[%s8706_s4 + $0x60] sm:$0xff] }
 0x3be   : > { %v1172_v47 = vmax.f32 %v1126_v0, %v1164_v13  ;;  %v1136_v41 = vadd.f32 %v1135_v2, %v7632_v14  ;;  %v5285_v13 = vld [vmem:[%s8706_s4 + $0x58] sm:$0xff] }
 0x3bf   : > { %v1167_v50 = vmul.f32 0.01, %v1141_v46  ;;  %v5289_v2 = vld [vmem:[%s8706_s4 + $0x78] sm:$0xff] }
 0x3c0   : > { %v1166_v53 = vmul.f32 0.01, %v1136_v41  ;;  %v6082_v33 = vpop.f32.mrb[6].mxu0  ;;  %v6672_v52 = vpack.c.bf16 %v1173_v22, %v1172_v47  ;;  %v5287_v22 = vld [vmem:[%s8706_s4 + $0x68] sm:$0xff] }
 0x3c1   : > { %v1175_v54 = vmax.f32 %v1141_v46, %v1167_v50  ;;  %v1151_v15 = vadd.f32 %v6082_v33, %v7663_v28  ;;  %v1145_v5 = vpop.f32.mrb[7].mxu0  ;;  %v5288_v46 = vld [vmem:[%s8706_s4 + $0x70] sm:$0xff] }
 0x3c2   : > { %v1174_v63 = vmax.f32 %v1136_v41, %v1166_v53  ;;  %v1146_v8 = vadd.f32 %v1145_v5, %v7642_v18  ;;  %6673 = vmatprep.subr.bf16.mxu0 %v6672_v52 }
 0x3c3   : > { %v1169_v4 = vmul.f32 0.01, %v1151_v15  ;;  %6675 = vmatpush3.bf16.msra.mxu0 %v6672_v52 }
 0x3c4   : > { %v1168_v11 = vmul.f32 0.01, %v1146_v8  ;;  %v6085_v21 = vpop.f32.mrb[8].mxu0  ;;  %v6676_v56 = vpack.c.bf16 %v1175_v54, %v1174_v63 }
 0x3c5   : > { %v1177_v58 = vmax.f32 %v1151_v15, %v1169_v4  ;;  %v1161_v14 = vadd.f32 %v6085_v21, %v7679_v45  ;;  %v1155_v30 = vpop.f32.mrb[9].mxu0  ;;  %v5283_v45 = vld [vmem:[%s8706_s4 + $0x48] sm:$0xff] }
 0x3c6   : > { %v1176_v7 = vmax.f32 %v1146_v8, %v1168_v11  ;;  %v1156_v10 = vadd.f32 %v1155_v30, %v7658_v24  ;;  %6677 = vmatprep.subr.bf16.mxu0 %v6676_v56  ;;  %v5284_v24 = vld [vmem:[%s8706_s4 + $0x50] sm:$0xff] }
 0x3c7   : > { %v1171_v12 = vmul.f32 0.01, %v1161_v14  ;;  %6679 = vmatpush3.bf16.msra.mxu0 %v6676_v56 }
 0x3c8   : > { %v1170_v28 = vmul.f32 0.01, %v1156_v10  ;;  %v6680_v61 = vpack.c.bf16 %v1177_v58, %v1176_v7 }
 0x3c9   : > { %v1179_v0 = vmax.f32 %v1161_v14, %v1171_v12 }
 0x3ca   : > { %v1178_v18 = vmax.f32 %v1156_v10, %v1170_v28  ;;  %6681 = vmatprep.subr.bf16.mxu0 %v6680_v61 }
 0x3cb   : > { %6683 = vmatpush3.bf16.msra.mxu0 %v6680_v61 }
 0x3cc   : > { %v6684_v34 = vpack.c.bf16 %v1179_v0, %v1178_v18 }
 0x3ce   : > { %6685 = vmatprep.subr.bf16.mxu0 %v6684_v34 }
 0x3cf   : > { %6687 = vmatpush3.bf16.msra.mxu0 %v6684_v34 }
 0x3d0   : > { %6700 = vmatprep.subr.bf16.mxu0 %v8725_v42 }
 0x3d2   : > { %6103 = vmatmul.mubr.msk.f32.vlgmr.msra.gmra.mrb[10].mxu0 %vm651_vm4, %v5283_v45 }
 0x3d3   : > { %6105 = vmatprep.mubr.msk.f32.mxu0 %vm651_vm4, %v5284_v24 }
 0x3d6   : > { %6106 = vmatmul.mubr.msk.f32.gmra.mrb[12].mxu0 %vm651_vm4, %v5285_v13 }
 0x3d7   : > { %6108 = vmatprep.mubr.msk.f32.mxu0 %vm651_vm4, %v5286_v36  ;;  %v5309_v36 = vld [vmem:[%s8710_s8 + $0x8] sm:$0xff] }
 0x3da   : > { %6109 = vmatmul.mubr.msk.f32.gmra.mrb[14].mxu0 %vm651_vm4, %v5287_v22  ;;  %v5313_v22 = vld [vmem:[%s8704_s2 + $0x80] sm:$0xff] }
 0x3db   : > { %6111 = vmatprep.mubr.msk.f32.mxu0 %vm651_vm4, %v5288_v46  ;;  %v970_v46 = vrot.slane %v7919_v37, 4 }
 0x3de   : > { %6112 = vmatmul.mubr.msk.f32.gmra.mrb[16].mxu0 %vm651_vm4, %v5289_v2  ;;  %v971_v2 = vadd.f32 %v970_v46, %v7919_v37 }
 0x3df   : > { %6149 = vmatprep.mubr.msk.f32.mxu0 %vm7117_vm10, %v8726_v35 }
 0x4a5   : > { %v6104_v47 = vpop.f32.mrb[10].mxu0 }
 0x4a6   : > { %v1334_v41 = vadd.f32 %v6104_v47, %v7692_v6  ;;  %v1328_v50 = vpop.f32.mrb[11].mxu0  ;;  %v972_v47 = vrot.slane %v971_v2, 2 }
 0x4a7   : > { %v1329_v53 = vadd.f32 %v1328_v50, %v7672_v38 }
 0x4a8   : > { %v1368_v33 = vmul.f32 0.01, %v1334_v41 }
 0x4a9   : > { %v1367_v52 = vmul.f32 0.01, %v1329_v53  ;;  %v6107_v54 = vpop.f32.mrb[12].mxu0 }
 0x4aa   : > { %v1376_v15 = vmax.f32 %v1334_v41, %v1368_v33  ;;  %v1344_v5 = vadd.f32 %v6107_v54, %v7711_v40  ;;  %v1338_v63 = vpop.f32.mrb[13].mxu0 }
 0x4ab   : > { %v1375_v8 = vmax.f32 %v1329_v53, %v1367_v52  ;;  %v1339_v4 = vadd.f32 %v1338_v63, %v7689_v62  ;;  %v973_v53 = vadd.f32 %v972_v47, %v971_v2 }
 0x4ac   : > { %v1370_v11 = vmul.f32 0.01, %v1344_v5 }
 0x4ad   : > { %v6689_v21 = vpack.c.bf16 %v1376_v15, %v1375_v8  ;;  %v1369_v56 = vmul.f32 0.01, %v1339_v4  ;;  %v6110_v58 = vpop.f32.mrb[14].mxu0  ;;  %v974_v63 = vrot.slane %v973_v53, 1 }
 0x4ae   : > { %v1378_v14 = vmax.f32 %v1344_v5, %v1370_v11  ;;  %v1354_v6 = vadd.f32 %v6110_v58, %v7721_v49  ;;  %v1348_v30 = vpop.f32.mrb[15].mxu0 }
 0x4af   : > { %v1377_v7 = vmax.f32 %v1339_v4, %v1369_v56  ;;  %v1349_v38 = vadd.f32 %v1348_v30, %v7709_v32  ;;  %6690 = vmatpush3.bf16.msra.mxu1 %v6689_v21  ;;  %6702 = vmatpush3.bf16.msra.mxu0 %v6689_v21  ;;  %v975_v21 = vadd.f32 %v974_v63, %v973_v53 }
 0x4b0   : > { %v1372_v10 = vmul.f32 0.01, %v1354_v6  ;;  %6691 = vmatprep.subr.bf16.mxu1 %v8725_v42  ;;  %6703 = vmatprep.subr.bf16.mxu0 %v8725_v42 }
 0x4b1   : > { %v6692_v40 = vpack.c.bf16 %v1378_v14, %v1377_v7  ;;  %v1371_v62 = vmul.f32 0.01, %v1349_v38  ;;  %v6113_v12 = vpop.f32.mrb[16].mxu0  ;;  %v976_v14 = vsub.f32 0.0, %v975_v21 }
 0x4b2   : > { %v1380_v28 = vmax.f32 %v1354_v6, %v1372_v10  ;;  %v1364_v61 = vadd.f32 %v6113_v12, %v7744_v59  ;;  %v1358_v0 = vpop.f32.mrb[17].mxu0  ;;  %v5319_v12 = vld [vmem:[%s8704_s2 + $0xb0] sm:$0xff] }
 0x4b3   : > { %v1379_v18 = vmax.f32 %v1349_v38, %v1371_v62  ;;  %v1359_v49 = vadd.f32 %v1358_v0, %v7719_v48  ;;  %6693 = vmatpush3.bf16.msra.mxu1 %v6692_v40  ;;  %6705 = vmatpush3.bf16.msra.mxu0 %v6692_v40  ;;  %v5306_v48 = vld [vmem:[%s8708_s6 + $0x8] sm:$0xff] }
 0x4b4   : > { %v1374_v32 = vmul.f32 0.01, %v1364_v61  ;;  %6694 = vmatprep.subr.bf16.mxu1 %v8725_v42  ;;  %6706 = vmatprep.subr.bf16.mxu0 %v8725_v42  ;;  %v5314_v40 = vld [vmem:[%s8704_s2 + $0x88] sm:$0xff] }
 0x4b5   : > { %v6695_v34 = vpack.c.bf16 %v1380_v28, %v1379_v18  ;;  %v1373_v45 = vmul.f32 0.01, %v1359_v49  ;;  %v5318_v62 = vld [vmem:[%s8704_s2 + $0xa8] sm:$0xff]  ;;  %v5320_v28 = vld [vmem:[%s8704_s2 + $0xb8] sm:$0xff] }
 0x4b6   : > { %v1382_v24 = vmax.f32 %v1364_v61, %v1374_v32  ;;  %v5337_v61 = vld [vmem:[%s8706_s4 + $0x80] sm:$0xff] }
 0x4b7   : > { %v1381_v13 = vmax.f32 %v1359_v49, %v1373_v45  ;;  %6696 = vmatpush3.bf16.msra.mxu1 %v6695_v34  ;;  %6708 = vmatpush3.bf16.msra.mxu0 %v6695_v34 }
 0x4b8   : > { %6697 = vmatprep.subr.bf16.mxu1 %v8725_v42  ;;  %6709 = vmatprep.subr.bf16.mxu0 %v8725_v42 }
 0x4b9   : > { %v6698_v59 = vpack.c.bf16 %v1382_v24, %v1381_v13 }
 0x4bb   : > { %6699 = vmatpush3.bf16.msra.mxu1 %v6698_v59  ;;  %6711 = vmatpush3.bf16.msra.mxu0 %v6698_v59 }
 0x4bc   : > { %6728 = vmatprep.subr.bf16.mxu0 %v8725_v42 }
 0x4be   : > { %6131 = vmatmul.mubr.msk.f32.vlgmr.msra.gmra.mrb[18].mxu1 %vm651_vm4, %v5306_v48  ;;  %6150 = vmatmul.mubr.msk.f32.vlgmr.msra.gmra.mrb[18].mxu0 %vm651_vm4, %v5309_v36 }
 0x4bf   : > { %6210 = vmatprep.mubr.msk.f32.mxu0 %vm7117_vm10, %v8726_v35  ;;  %6154 = vmatprep.mubr.msk.f32.mxu1 %vm449_vm0, %v5313_v22 }
 0x591   : > { %v1461_v41 = vpop.f32.mrb[18].mxu1  ;;  %v1543_v50 = vpop.f32.mrb[18].mxu0 }
 0x592   : > { %v1462_v33 = vadd.f32 %v1461_v41, %v7742_v57  ;;  %v6132_v52 = vpop.f32.mrb[19].mxu1  ;;  %v6151_v54 = vpop.f32.mrb[19].mxu0  ;;  %v1544_v37 = vadd.f32 %v1543_v50, %v7769_v9  ;;  %v5315_v9 = vld [vmem:[%s8704_s2 + $0x90] sm:$0xff] }
 0x594   : > { %v1551_v15 = vsub.f32 0.0, %v1462_v33  ;;  %v1561_v5 = vrot.slane %v1462_v33, 4  ;;  %v1550_v57 = vsub.f32 %v7925_v55, %v1544_v37  ;;  %v5340_v37 = vld [vmem:[%s8706_s4 + $0x98] sm:$0xff] }
 0x596   : > { %v1552_v8 = vmul.f32 1.442695, %v1551_v15  ;;  %v1562_v4 = vadd.f32 %v1561_v5, %v1462_v33 }
 0x598   : > { %7004 = vpow2.f32 %v1552_v8  ;;  %v1563_v11 = vrot.slane %v1562_v4, 2 }
 0x59a   : > { %v1564_v56 = vadd.f32 %v1563_v11, %v1562_v4 }
 0x59c   : > { %v1565_v58 = vrot.slane %v1564_v56, 1 }
 0x59e   : > { %v1566_v6 = vadd.f32 %v1565_v58, %v1564_v56 }
 0x5a0   : > { %v8033_v30 = vsub.f32 %v976_v14, %v1566_v6  ;;  %v5341_v14 = vld [vmem:[%s8706_s4 + $0xa0] sm:$0xff]  ;;  %v5342_v6 = vld [vmem:[%s8706_s4 + $0xa8] sm:$0xff] }
 0x5a2   : > { %v7005_v7 = vpop.eup %7004 }
 0x5a3   : > { %v1554_v38 = vmul.f32 %v7005_v7, %v1550_v57  ;;  %v5343_v57 = vld [vmem:[%s8706_s4 + $0xb0] sm:$0xff]  ;;  %v5344_v7 = vld [vmem:[%s8706_s4 + $0xb8] sm:$0xff] }
 0x5a5   : > { %v8038_v10 = vsel %vm1559_vm12, %v7925_v55, %v1554_v38  ;;  %v5317_v55 = vld [vmem:[%s8704_s2 + $0xa0] sm:$0xff] }
 0x5a6   : > { %6152 = vmatprep.subr.mxu1 %v8038_v10 }
 0x5a7   : > { %6153 = vmatpush3.msra.mxu1 %v8038_v10 }
 0x5a8   : > { %6155 = vmatmul.mubr.msk.f32.vlgmr.msra.gmra.mrb[20].mxu1 %vm449_vm0, %v5314_v40 }
 0x5a9   : > { %6157 = vmatprep.mubr.msk.f32.mxu1 %vm449_vm0, %v5315_v9 }
 0x5ac   : > { %6158 = vmatmul.mubr.msk.f32.gmra.mrb[22].mxu1 %vm449_vm0, %v5316_v26 }
 0x5ad   : > { %6160 = vmatprep.mubr.msk.f32.mxu1 %vm449_vm0, %v5317_v55 }
 0x5b0   : > { %6161 = vmatmul.mubr.msk.f32.gmra.mrb[24].mxu1 %vm449_vm0, %v5318_v62 }
 0x5b1   : > { %6163 = vmatprep.mubr.msk.f32.mxu1 %vm449_vm0, %v5319_v12 }
 0x5b4   : > { %6164 = vmatmul.mubr.msk.f32.gmra.mrb[26].mxu1 %vm449_vm0, %v5320_v28 }
 0x5b5   : > { %6182 = vmatprep.mubr.msk.f32.mxu1 %vm651_vm4, %v5337_v61 }
 0x67b   : > { %v6156_v0 = vpop.f32.mrb[20].mxu1 }
 0x67c   : > { %v1722_v18 = vadd.f32 %v6156_v0, %v7792_v19  ;;  %v1716_v49 = vpop.f32.mrb[21].mxu1 }
 0x67d   : > { %v1717_v32 = vadd.f32 %v1716_v49, %v7794_v20 }
 0x67e   : > { %v1756_v34 = vmul.f32 0.01, %v1722_v18 }
 0x67f   : > { %v1755_v45 = vmul.f32 0.01, %v1717_v32  ;;  %v6159_v24 = vpop.f32.mrb[22].mxu1 }
 0x680   : > { %v1764_v13 = vmax.f32 %v1722_v18, %v1756_v34  ;;  %v1732_v59 = vadd.f32 %v6159_v24, %v7800_v23  ;;  %v1726_v48 = vpop.f32.mrb[23].mxu1 }
 0x681   : > { %v1763_v36 = vmax.f32 %v1717_v32, %v1755_v45  ;;  %v1727_v22 = vadd.f32 %v1726_v48, %v7802_v25 }
 0x682   : > { %v1758_v46 = vmul.f32 0.01, %v1732_v59 }
 0x683   : > { %v1757_v2 = vmul.f32 0.01, %v1727_v22  ;;  %v6162_v47 = vpop.f32.mrb[24].mxu1  ;;  %v6712_v41 = vpack.c.bf16 %v1764_v13, %v1763_v36 }
 0x684   : > { %v1766_v50 = vmax.f32 %v1732_v59, %v1758_v46  ;;  %v1742_v19 = vadd.f32 %v6162_v47, %v7816_v39  ;;  %v1736_v53 = vpop.f32.mrb[25].mxu1 }
 0x685   : > { %v1765_v33 = vmax.f32 %v1727_v22, %v1757_v2  ;;  %v1737_v20 = vadd.f32 %v1736_v53, %v7818_v43  ;;  %6713 = vmatprep.subr.bf16.mxu1 %v6712_v41 }
 0x686   : > { %v1760_v52 = vmul.f32 0.01, %v1742_v19  ;;  %6715 = vmatpush3.bf16.msra.mxu1 %v6712_v41 }
 0x687   : > { %v1759_v54 = vmul.f32 0.01, %v1737_v20  ;;  %v6165_v23 = vpop.f32.mrb[26].mxu1  ;;  %v6716_v15 = vpack.c.bf16 %v1766_v50, %v1765_v33 }
 0x688   : > { %v1768_v5 = vmax.f32 %v1742_v19, %v1760_v52  ;;  %v1752_v25 = vadd.f32 %v6165_v23, %v7826_v44  ;;  %v1746_v63 = vpop.f32.mrb[27].mxu1  ;;  %v5338_v44 = vld [vmem:[%s8706_s4 + $0x88] sm:$0xff]  ;;  %v5368_v52 = vld [vmem:[%s8704_s2 + $0xc0] sm:$0xff] }
 0x689   : > { %v1767_v8 = vmax.f32 %v1737_v20, %v1759_v54  ;;  %v1747_v4 = vadd.f32 %v1746_v63, %v7828_v51  ;;  %6717 = vmatprep.subr.bf16.mxu1 %v6716_v15  ;;  %v5339_v51 = vld [vmem:[%s8706_s4 + $0x90] sm:$0xff]  ;;  %v1981_v54 = vpop.permute.xlu0 %1980 }
 0x68a   : > { %v1762_v11 = vmul.f32 0.01, %v1752_v25  ;;  %6719 = vmatpush3.bf16.msra.mxu1 %v6716_v15  ;;  %v5364_v20 = vld [vmem:[%s8710_s8 + $0x10] sm:$0xff] }
 0x68b   : > { %v1761_v39 = vmul.f32 0.01, %v1747_v4  ;;  %v6720_v21 = vpack.c.bf16 %v1768_v5, %v1767_v8 }
 0x68c   : > { %v1770_v56 = vmax.f32 %v1752_v25, %v1762_v11 }
 0x68d   : > { %v1769_v43 = vmax.f32 %v1747_v4, %v1761_v39  ;;  %6721 = vmatprep.subr.bf16.mxu1 %v6720_v21 }
 0x68e   : > { %6723 = vmatpush3.bf16.msra.mxu1 %v6720_v21 }
 0x68f   : > { %v6724_v58 = vpack.c.bf16 %v1770_v56, %v1769_v43  ;;  %v2063_v43 = vpop.permute.xlu1 %2062 }
 0x691   : > { %6725 = vmatprep.subr.bf16.mxu1 %v6724_v58 }
 0x692   : > { %6727 = vmatpush3.bf16.msra.mxu1 %v6724_v58 }
 0x693   : > { %6740 = vmatprep.subr.bf16.mxu1 %v8725_v42 }
 0x695   : > { %6183 = vmatmul.mubr.msk.f32.vlgmr.msra.gmra.mrb[28].mxu1 %vm651_vm4, %v5338_v44 }
 0x696   : > { %6185 = vmatprep.mubr.msk.f32.mxu1 %vm651_vm4, %v5339_v51 }
 0x699   : > { %6186 = vmatmul.mubr.msk.f32.gmra.mrb[30].mxu1 %vm651_vm4, %v5340_v37 }
 0x69a   : > { %6188 = vmatprep.mubr.msk.f32.mxu1 %vm651_vm4, %v5341_v14  ;;  %v2149_v14 = vpop.permute.xlu0 %2148 }
 0x69b   : > { %vm2150_vm13 = vcmp.eq.s32.totalorder %v2149_v14, 1  ;;  %v5395_v14 = vld [vmem:[%s8706_s4 + $0xd8] sm:$0xff] }
 0x69d   : > { %6189 = vmatmul.mubr.msk.f32.gmra.mrb[32].mxu1 %vm651_vm4, %v5342_v6 }
 0x69e   : > { %6191 = vmatprep.mubr.msk.f32.mxu1 %vm651_vm4, %v5343_v57 }
 0x6a1   : > { %6192 = vmatmul.mubr.msk.f32.gmra.mrb[34].mxu1 %vm651_vm4, %v5344_v7 }
 0x6a2   : > { %6229 = vmatprep.mubr.msk.f32.mxu1 %vm7117_vm10, %v8726_v35 }
 0x768   : > { %v6184_v38 = vpop.f32.mrb[28].mxu1 }
 0x769   : > { %v1925_v40 = vadd.f32 %v6184_v38, %v7842_v27  ;;  %v1919_v9 = vpop.f32.mrb[29].mxu1 }
 0x76a   : > { %v1920_v26 = vadd.f32 %v1919_v9, %v7844_v60  ;;  %v5370_v9 = vld [vmem:[%s8704_s2 + $0xd0] sm:$0xff] }
 0x76b   : > { %v1959_v55 = vmul.f32 0.01, %v1925_v40 }
 0x76c   : > { %v1958_v62 = vmul.f32 0.01, %v1920_v26  ;;  %v6187_v12 = vpop.f32.mrb[30].mxu1 }
 0x76d   : > { %v1967_v28 = vmax.f32 %v1925_v40, %v1959_v55  ;;  %v1935_v61 = vadd.f32 %v6187_v12, %v7852_v1  ;;  %v1929_v0 = vpop.f32.mrb[31].mxu1  ;;  %v5369_v40 = vld [vmem:[%s8704_s2 + $0xc8] sm:$0xff]  ;;  %v5375_v12 = vld [vmem:[%s8704_s2 + $0xf8] sm:$0xff] }
 0x76e   : > { %v1966_v18 = vmax.f32 %v1920_v26, %v1958_v62  ;;  %v1930_v49 = vadd.f32 %v1929_v0, %v7854_v3  ;;  %v5372_v26 = vld [vmem:[%s8704_s2 + $0xe0] sm:$0xff]  ;;  %v5373_v55 = vld [vmem:[%s8704_s2 + $0xe8] sm:$0xff]  ;;  %v5374_v62 = vld [vmem:[%s8704_s2 + $0xf0] sm:$0xff]  ;;  %v2180_v0 = vpop.permute.xlu1 %2179 }
 0x76f   : > { %v1961_v32 = vmul.f32 0.01, %v1935_v61 }
 0x770   : > { %v6729_v34 = vpack.c.bf16 %v1967_v28, %v1966_v18  ;;  %v1960_v45 = vmul.f32 0.01, %v1930_v49  ;;  %v6190_v24 = vpop.f32.mrb[32].mxu1  ;;  %v5392_v28 = vld [vmem:[%s8706_s4 + $0xc0] sm:$0xff] }
 0x771   : > { %v1969_v13 = vmax.f32 %v1935_v61, %v1961_v32  ;;  %v1945_v27 = vadd.f32 %v6190_v24, %v7871_v16  ;;  %v1939_v59 = vpop.f32.mrb[33].mxu1  ;;  %v2185_v61 = vpop.permute.xlu0 %2184 }
 0x772   : > { %v1968_v48 = vmax.f32 %v1930_v49, %v1960_v45  ;;  %v1940_v60 = vadd.f32 %v1939_v59, %v7873_v17  ;;  %6730 = vmatpush3.bf16.msra.mxu0 %v6729_v34  ;;  %6742 = vmatpush3.bf16.msra.mxu1 %v6729_v34  ;;  %v2190_v32 = vpop.permute.xlu1 %2189 }
 0x773   : > { %v1963_v36 = vmul.f32 0.01, %v1945_v27  ;;  %6731 = vmatprep.subr.bf16.mxu0 %v8725_v42  ;;  %6743 = vmatprep.subr.bf16.mxu1 %v8725_v42 }
 0x774   : > { %v6732_v1 = vpack.c.bf16 %v1969_v13, %v1968_v48  ;;  %v1962_v3 = vmul.f32 0.01, %v1940_v60  ;;  %v6193_v22 = vpop.f32.mrb[34].mxu1 }
 0x775   : > { %v1971_v46 = vmax.f32 %v1945_v27, %v1963_v36  ;;  %v1955_v2 = vadd.f32 %v6193_v22, %v7879_v29  ;;  %v1949_v47 = vpop.f32.mrb[35].mxu1  ;;  %v2195_v18 = vpop.permute.xlu0 %2194 }
 0x776   : > { %v1970_v41 = vmax.f32 %v1940_v60, %v1962_v3  ;;  %v1950_v16 = vadd.f32 %v1949_v47, %v7881_v31  ;;  %6733 = vmatpush3.bf16.msra.mxu0 %v6732_v1  ;;  %6745 = vmatpush3.bf16.msra.mxu1 %v6732_v1  ;;  %v5361_v31 = vld [vmem:[%s8708_s6 + $0x10] sm:$0xff] }
 0x777   : > { %v1965_v17 = vmul.f32 0.01, %v1955_v2  ;;  %6734 = vmatprep.subr.bf16.mxu0 %v8725_v42  ;;  %6746 = vmatprep.subr.bf16.mxu1 %v8725_v42 }
 0x778   : > { %v6735_v50 = vpack.c.bf16 %v1971_v46, %v1970_v41  ;;  %v1964_v19 = vmul.f32 0.01, %v1950_v16  ;;  %v2200_v46 = vpop.permute.xlu1 %2199 }
 0x779   : > { %v1973_v53 = vmax.f32 %v1955_v2, %v1965_v17  ;;  %v2205_v1 = vpop.permute.xlu0 %2204 }
 0x77a   : > { %v1972_v33 = vmax.f32 %v1950_v16, %v1964_v19  ;;  %6736 = vmatpush3.bf16.msra.mxu0 %v6735_v50  ;;  %6748 = vmatpush3.bf16.msra.mxu1 %v6735_v50 }
 0x77b   : > { %6737 = vmatprep.subr.bf16.mxu0 %v8725_v42  ;;  %6749 = vmatprep.subr.bf16.mxu1 %v8725_v42 }
 0x77c   : > { %v6738_v29 = vpack.c.bf16 %v1973_v53, %v1972_v33 }
 0x77e   : > { %6739 = vmatpush3.bf16.msra.mxu0 %v6738_v29  ;;  %6751 = vmatpush3.bf16.msra.mxu1 %v6738_v29 }
 0x77f   : > { %6768 = vmatprep.subr.bf16.mxu1 %v8725_v42 }
 0x781   : > { %6211 = vmatmul.mubr.msk.f32.vlgmr.msra.gmra.mrb[20].mxu0 %vm651_vm4, %v5361_v31  ;;  %6230 = vmatmul.mubr.msk.f32.vlgmr.msra.gmra.mrb[36].mxu1 %vm651_vm4, %v5364_v20  ;;  %v2215_v31 = vpop.permute.xlu0 %2214 }
 0x782   : > { %6290 = vmatprep.mubr.msk.f32.mxu1 %vm7117_vm10, %v8726_v35  ;;  %6234 = vmatprep.mubr.msk.f32.mxu0 %vm449_vm0, %v5368_v52 }
 0x854   : > { %v2052_v23 = vpop.f32.mrb[20].mxu0  ;;  %v2134_v15 = vpop.f32.mrb[36].mxu1 }
 0x855   : > { %v2053_v5 = vadd.f32 %v2052_v23, %v1981_v54  ;;  %v6212_v25 = vpop.f32.mrb[21].mxu0  ;;  %v6231_v63 = vpop.f32.mrb[37].mxu1  ;;  %v2135_v44 = vadd.f32 %v2134_v15, %v2063_v43 }
 0x856   : > { %v2210_v23 = vpop.permute.xlu1 %2209 }
 0x857   : > { %v2142_v8 = vsub.f32 0.0, %v2053_v5  ;;  %v2152_v4 = vrot.slane %v2053_v5, 4  ;;  %v2141_v6 = vsub.f32 %v8038_v10, %v2135_v44  ;;  %v5394_v44 = vld [vmem:[%s8706_s4 + $0xd0] sm:$0xff] }
 0x859   : > { %v2143_v11 = vmul.f32 1.442695, %v2142_v8  ;;  %v2153_v39 = vadd.f32 %v2152_v4, %v2053_v5 }
 0x85b   : > { %7006 = vpow2.f32 %v2143_v11  ;;  %v2154_v21 = vrot.slane %v2153_v39, 2 }
 0x85d   : > { %v2155_v56 = vadd.f32 %v2154_v21, %v2153_v39 }
 0x85f   : > { %v2156_v58 = vrot.slane %v2155_v56, 1 }
 0x861   : > { %v8142_v51 = vadd.f32 %v2156_v58, %v2155_v56  ;;  %v5393_v58 = vld [vmem:[%s8706_s4 + $0xc8] sm:$0xff] }
 0x863   : > { %v2158_v37 = vsub.f32 %v8033_v30, %v8142_v51  ;;  %v5425_v30 = vld [vmem:[%s8704_s2 + $0x110] sm:$0xff]  ;;  %v5426_v51 = vld [vmem:[%s8704_s2 + $0x118] sm:$0xff] }
 0x865   : > { %v7007_v57 = vpop.eup %7006 }
 0x866   : > { %v2145_v7 = vmul.f32 %v7007_v57, %v2141_v6  ;;  %v5396_v6 = vld [vmem:[%s8706_s4 + $0xe0] sm:$0xff]  ;;  %v5397_v57 = vld [vmem:[%s8706_s4 + $0xe8] sm:$0xff] }
 0x868   : > { %v8148_v38 = vsel %vm2150_vm13, %v8038_v10, %v2145_v7  ;;  %v5371_v10 = vld [vmem:[%s8704_s2 + $0xd8] sm:$0xff]  ;;  %v5398_v7 = vld [vmem:[%s8706_s4 + $0xf0] sm:$0xff] }
 0x869   : > { %6232 = vmatprep.subr.mxu0 %v8148_v38 }
 0x86a   : > { %6233 = vmatpush3.msra.mxu0 %v8148_v38 }
 0x86b   : > { %6235 = vmatmul.mubr.msk.f32.vlgmr.msra.gmra.mrb[22].mxu0 %vm449_vm0, %v5369_v40  ;;  %v5399_v40 = vld [vmem:[%s8706_s4 + $0xf8] sm:$0xff] }
 0x86c   : > { %6237 = vmatprep.mubr.msk.f32.mxu0 %vm449_vm0, %v5370_v9  ;;  %v2388_v9 = vpop.permute.xlu0 %2387 }
 0x86f   : > { %6238 = vmatmul.mubr.msk.f32.gmra.mrb[24].mxu0 %vm449_vm0, %v5371_v10  ;;  %v2383_v10 = vpop.permute.xlu1 %2382 }
 0x870   : > { %6240 = vmatprep.mubr.msk.f32.mxu0 %vm449_vm0, %v5372_v26  ;;  %v2398_v26 = vpop.permute.xlu0 %2397 }
 0x873   : > { %6241 = vmatmul.mubr.msk.f32.gmra.mrb[26].mxu0 %vm449_vm0, %v5373_v55 }
 0x874   : > { %6243 = vmatprep.mubr.msk.f32.mxu0 %vm449_vm0, %v5374_v62  ;;  %v2393_v62 = vpop.permute.xlu1 %2392 }
 0x877   : > { %6244 = vmatmul.mubr.msk.f32.gmra.mrb[28].mxu0 %vm449_vm0, %v5375_v12 }
 0x878   : > { %6262 = vmatprep.mubr.msk.f32.mxu0 %vm651_vm4, %v5392_v28 }
 0x93e   : > { %v6236_v49 = vpop.f32.mrb[22].mxu0 }
 0x93f   : > { %v2313_v34 = vadd.f32 %v6236_v49, %v2185_v61  ;;  %v2307_v45 = vpop.f32.mrb[23].mxu0 }
 0x940   : > { %v2308_v24 = vadd.f32 %v2307_v45, %v2180_v0 }
 0x941   : > { %v2347_v13 = vmul.f32 0.01, %v2313_v34 }
 0x942   : > { %v2346_v27 = vmul.f32 0.01, %v2308_v24  ;;  %v6239_v59 = vpop.f32.mrb[24].mxu0 }
 0x943   : > { %v2355_v48 = vmax.f32 %v2313_v34, %v2347_v13  ;;  %v2323_v60 = vadd.f32 %v6239_v59, %v2195_v18  ;;  %v2317_v36 = vpop.f32.mrb[25].mxu0  ;;  %v2403_v59 = vpop.permute.xlu1 %2402 }
 0x944   : > { %v2354_v3 = vmax.f32 %v2308_v24, %v2346_v27  ;;  %v2318_v22 = vadd.f32 %v2317_v36, %v2190_v32  ;;  %v2408_v24 = vpop.permute.xlu0 %2407 }
 0x945   : > { %v2349_v2 = vmul.f32 0.01, %v2323_v60 }
 0x946   : > { %v2348_v47 = vmul.f32 0.01, %v2318_v22  ;;  %v6242_v41 = vpop.f32.mrb[26].mxu0  ;;  %v6752_v16 = vpack.c.bf16 %v2355_v48, %v2354_v3 }
 0x947   : > { %v2357_v17 = vmax.f32 %v2323_v60, %v2349_v2  ;;  %v2333_v50 = vadd.f32 %v6242_v41, %v2205_v1  ;;  %v2327_v19 = vpop.f32.mrb[27].mxu0 }
 0x948   : > { %v2356_v53 = vmax.f32 %v2318_v22, %v2348_v47  ;;  %v2328_v33 = vadd.f32 %v2327_v19, %v2200_v46  ;;  %6753 = vmatprep.subr.bf16.mxu0 %v6752_v16 }
 0x949   : > { %v2351_v29 = vmul.f32 0.01, %v2333_v50  ;;  %6755 = vmatpush3.bf16.msra.mxu0 %v6752_v16  ;;  %v2418_v16 = vpop.permute.xlu0 %2417 }
 0x94a   : > { %v2350_v20 = vmul.f32 0.01, %v2328_v33  ;;  %v6245_v52 = vpop.f32.mrb[28].mxu0  ;;  %v6756_v54 = vpack.c.bf16 %v2357_v17, %v2356_v53  ;;  %v2413_v53 = vpop.permute.xlu1 %2412 }
 0x94b   : > { %v2359_v15 = vmax.f32 %v2333_v50, %v2351_v29  ;;  %v2343_v5 = vadd.f32 %v6245_v52, %v2215_v31  ;;  %v2337_v25 = vpop.f32.mrb[29].mxu0 }
 0x94c   : > { %v2358_v63 = vmax.f32 %v2328_v33, %v2350_v20  ;;  %v2338_v8 = vadd.f32 %v2337_v25, %v2210_v23  ;;  %6757 = vmatprep.subr.bf16.mxu0 %v6756_v54 }
 0x94d   : > { %v2353_v4 = vmul.f32 0.01, %v2343_v5  ;;  %6759 = vmatpush3.bf16.msra.mxu0 %v6756_v54 }
 0x94e   : > { %v2352_v11 = vmul.f32 0.01, %v2338_v8  ;;  %v6760_v39 = vpack.c.bf16 %v2359_v15, %v2358_v63 }
 0x94f   : > { %v2361_v21 = vmax.f32 %v2343_v5, %v2353_v4  ;;  %v5419_v4 = vld [vmem:[%s8710_s8 + $0x18] sm:$0xff] }
 0x950   : > { %v2360_v56 = vmax.f32 %v2338_v8, %v2352_v11  ;;  %6761 = vmatprep.subr.bf16.mxu0 %v6760_v39  ;;  %v5416_v8 = vld [vmem:[%s8708_s6 + $0x18] sm:$0xff]  ;;  %v5423_v11 = vld [vmem:[%s8704_s2 + $0x100] sm:$0xff] }
 0x951   : > { %6763 = vmatpush3.bf16.msra.mxu0 %v6760_v39  ;;  %v2572_v39 = vpop.permute.xlu1 %2571 }
 0x952   : > { %v6764_v43 = vpack.c.bf16 %v2361_v21, %v2360_v56 }
 0x954   : > { %6765 = vmatprep.subr.bf16.mxu0 %v6764_v43 }
 0x955   : > { %6767 = vmatpush3.bf16.msra.mxu0 %v6764_v43 }
 0x956   : > { %6780 = vmatprep.subr.bf16.mxu0 %v8725_v42 }
 0x958   : > { %6263 = vmatmul.mubr.msk.f32.vlgmr.msra.gmra.mrb[30].mxu0 %vm651_vm4, %v5393_v58 }
 0x959   : > { %6265 = vmatprep.mubr.msk.f32.mxu0 %vm651_vm4, %v5394_v44 }
 0x95c   : > { %6266 = vmatmul.mubr.msk.f32.gmra.mrb[32].mxu0 %vm651_vm4, %v5395_v14 }
 0x95d   : > { %6268 = vmatprep.mubr.msk.f32.mxu0 %vm651_vm4, %v5396_v6 }
 0x960   : > { %6269 = vmatmul.mubr.msk.f32.gmra.mrb[34].mxu0 %vm651_vm4, %v5397_v57 }
 0x961   : > { %6271 = vmatprep.mubr.msk.f32.mxu0 %vm651_vm4, %v5398_v7 }
 0x964   : > { %6272 = vmatmul.mubr.msk.f32.gmra.mrb[36].mxu0 %vm651_vm4, %v5399_v40 }
 0x965   : > { %6309 = vmatprep.mubr.msk.f32.mxu0 %vm7117_vm10, %v8726_v35 }
 0xa2b   : > { %v6264_v55 = vpop.f32.mrb[30].mxu0 }
 0xa2c   : > { %v2516_v12 = vadd.f32 %v6264_v55, %v2388_v9  ;;  %v2510_v28 = vpop.f32.mrb[31].mxu0 }
 0xa2d   : > { %v2511_v61 = vadd.f32 %v2510_v28, %v2383_v10  ;;  %v2654_v10 = vpop.permute.xlu0 %2653  ;;  %v2740_v28 = vpop.permute.xlu1 %2739 }
 0xa2e   : > { %v2550_v0 = vmul.f32 0.01, %v2516_v12  ;;  %vm2741_vm14 = vcmp.eq.s32.totalorder %v2740_v28, 1  ;;  %v5452_v28 = vld [vmem:[%s8706_s4 + $0x128] sm:$0xff] }
 0xa2f   : > { %v2549_v18 = vmul.f32 0.01, %v2511_v61  ;;  %v6267_v49 = vpop.f32.mrb[32].mxu0 }
 0xa30   : > { %v2558_v32 = vmax.f32 %v2516_v12, %v2550_v0  ;;  %v2526_v34 = vadd.f32 %v6267_v49, %v2398_v26  ;;  %v2520_v45 = vpop.f32.mrb[33].mxu0 }
 0xa31   : > { %v2557_v13 = vmax.f32 %v2511_v61, %v2549_v18  ;;  %v2521_v27 = vadd.f32 %v2520_v45, %v2393_v62  ;;  %v5430_v45 = vld [vmem:[%s8704_s2 + $0x138] sm:$0xff] }
 0xa32   : > { %v2552_v48 = vmul.f32 0.01, %v2526_v34 }
 0xa33   : > { %v6769_v60 = vpack.c.bf16 %v2558_v32, %v2557_v13  ;;  %v2551_v36 = vmul.f32 0.01, %v2521_v27  ;;  %v6270_v1 = vpop.f32.mrb[34].mxu0  ;;  %v5424_v32 = vld [vmem:[%s8704_s2 + $0x108] sm:$0xff]  ;;  %v2776_v13 = vpop.permute.xlu1 %2775 }
 0xa34   : > { %v2560_v3 = vmax.f32 %v2526_v34, %v2552_v48  ;;  %v2536_v22 = vadd.f32 %v6270_v1, %v2408_v24  ;;  %v2530_v46 = vpop.f32.mrb[35].mxu0  ;;  %v5429_v34 = vld [vmem:[%s8704_s2 + $0x130] sm:$0xff]  ;;  %v5447_v24 = vld [vmem:[%s8706_s4 + $0x100] sm:$0xff] }
 0xa35   : > { %v2559_v2 = vmax.f32 %v2521_v27, %v2551_v36  ;;  %v2531_v47 = vadd.f32 %v2530_v46, %v2403_v59  ;;  %6770 = vmatpush3.bf16.msra.mxu1 %v6769_v60  ;;  %6782 = vmatpush3.bf16.msra.mxu0 %v6769_v60  ;;  %v2771_v27 = vpop.permute.xlu0 %2770 }
 0xa36   : > { %v2554_v41 = vmul.f32 0.01, %v2536_v22  ;;  %6771 = vmatprep.subr.bf16.mxu1 %v8725_v42  ;;  %6783 = vmatprep.subr.bf16.mxu0 %v8725_v42 }
 0xa37   : > { %v6772_v17 = vpack.c.bf16 %v2560_v3, %v2559_v2  ;;  %v2553_v50 = vmul.f32 0.01, %v2531_v47  ;;  %v6273_v19 = vpop.f32.mrb[36].mxu0  ;;  %v2786_v59 = vpop.permute.xlu1 %2785 }
 0xa38   : > { %v2562_v33 = vmax.f32 %v2536_v22, %v2554_v41  ;;  %v2546_v29 = vadd.f32 %v6273_v19, %v2418_v16  ;;  %v2540_v31 = vpop.f32.mrb[37].mxu0 }
 0xa39   : > { %v2561_v20 = vmax.f32 %v2531_v47, %v2553_v50  ;;  %v2541_v52 = vadd.f32 %v2540_v31, %v2413_v53  ;;  %6773 = vmatpush3.bf16.msra.mxu1 %v6772_v17  ;;  %6785 = vmatpush3.bf16.msra.mxu0 %v6772_v17  ;;  %v2781_v60 = vpop.permute.xlu0 %2780 }
 0xa3a   : > { %v2556_v54 = vmul.f32 0.01, %v2546_v29  ;;  %6774 = vmatprep.subr.bf16.mxu1 %v8725_v42  ;;  %6786 = vmatprep.subr.bf16.mxu0 %v8725_v42 }
 0xa3b   : > { %v6775_v23 = vpack.c.bf16 %v2562_v33, %v2561_v20  ;;  %v2555_v15 = vmul.f32 0.01, %v2541_v52  ;;  %v2796_v17 = vpop.permute.xlu1 %2795 }
 0xa3c   : > { %v2564_v5 = vmax.f32 %v2546_v29, %v2556_v54 }
 0xa3d   : > { %v2563_v25 = vmax.f32 %v2541_v52, %v2555_v15  ;;  %6776 = vmatpush3.bf16.msra.mxu1 %v6775_v23  ;;  %6788 = vmatpush3.bf16.msra.mxu0 %v6775_v23  ;;  %v2791_v53 = vpop.permute.xlu0 %2790 }
 0xa3e   : > { %6777 = vmatprep.subr.bf16.mxu1 %v8725_v42  ;;  %6789 = vmatprep.subr.bf16.mxu0 %v8725_v42 }
 0xa3f   : > { %v6778_v63 = vpack.c.bf16 %v2564_v5, %v2563_v25 }
 0xa41   : > { %6779 = vmatpush3.bf16.msra.mxu1 %v6778_v63  ;;  %6791 = vmatpush3.bf16.msra.mxu0 %v6778_v63  ;;  %v2806_v63 = vpop.permute.xlu1 %2805 }
 0xa42   : > { %6808 = vmatprep.subr.bf16.mxu0 %v8725_v42 }
 0xa44   : > { %6291 = vmatmul.mubr.msk.f32.vlgmr.msra.gmra.mrb[38].mxu1 %vm651_vm4, %v5416_v8  ;;  %6310 = vmatmul.mubr.msk.f32.vlgmr.msra.gmra.mrb[38].mxu0 %vm651_vm4, %v5419_v4 }
 0xa45   : > { %6370 = vmatprep.mubr.msk.f32.mxu0 %vm7117_vm10, %v8726_v35  ;;  %6314 = vmatprep.mubr.msk.f32.mxu1 %vm449_vm0, %v5423_v11 }
 0xb17   : > { %v2643_v21 = vpop.f32.mrb[38].mxu1  ;;  %v2725_v56 = vpop.f32.mrb[38].mxu0 }
 0xb18   : > { %v2644_v43 = vadd.f32 %v2643_v21, %v2572_v39  ;;  %v6292_v58 = vpop.f32.mrb[39].mxu1  ;;  %v6311_v44 = vpop.f32.mrb[39].mxu0  ;;  %v2726_v55 = vadd.f32 %v2725_v56, %v2654_v10  ;;  %v5448_v10 = vld [vmem:[%s8706_s4 + $0x108] sm:$0xff] }
 0xb19   : > { %v2801_v39 = vpop.permute.xlu0 %2800 }
 0xb1a   : > { %v2733_v14 = vsub.f32 0.0, %v2644_v43  ;;  %v2743_v6 = vrot.slane %v2644_v43, 4  ;;  %v2732_v61 = vsub.f32 %v8148_v38, %v2726_v55  ;;  %v5450_v55 = vld [vmem:[%s8706_s4 + $0x118] sm:$0xff] }
 0xb1c   : > { %v2734_v57 = vmul.f32 1.442695, %v2733_v14  ;;  %v2744_v7 = vadd.f32 %v2743_v6, %v2644_v43 }
 0xb1e   : > { %7008 = vpow2.f32 %v2734_v57  ;;  %v2745_v40 = vrot.slane %v2744_v7, 2 }
 0xb20   : > { %v2746_v9 = vadd.f32 %v2745_v40, %v2744_v7 }
 0xb22   : > { %v2747_v26 = vrot.slane %v2746_v9, 1 }
 0xb24   : > { %v2748_v62 = vadd.f32 %v2747_v26, %v2746_v9  ;;  %v5449_v26 = vld [vmem:[%s8706_s4 + $0x110] sm:$0xff] }
 0xb26   : > { %v8239_v12 = vsub.f32 %v2158_v37, %v2748_v62  ;;  %v5427_v37 = vld [vmem:[%s8704_s2 + $0x120] sm:$0xff] }
 0xb27   : > { %v5451_v62 = vld [vmem:[%s8706_s4 + $0x120] sm:$0xff] }
 0xb28   : > { %v7009_v0 = vpop.eup %7008 }
 0xb29   : > { %v2736_v18 = vmul.f32 %v7009_v0, %v2732_v61  ;;  %v5453_v61 = vld [vmem:[%s8706_s4 + $0x130] sm:$0xff]  ;;  %v5454_v0 = vld [vmem:[%s8706_s4 + $0x138] sm:$0xff] }
 0xb2b   : > { %v8243_v49 = vsel %vm2741_vm14, %v8148_v38, %v2736_v18  ;;  %v5428_v38 = vld [vmem:[%s8704_s2 + $0x128] sm:$0xff]  ;;  %v2979_v18 = vpop.permute.xlu1 %2978 }
 0xb2c   : > { %6312 = vmatprep.subr.mxu1 %v8243_v49 }
 0xb2d   : > { %6313 = vmatpush3.msra.mxu1 %v8243_v49 }
 0xb2e   : > { %6315 = vmatmul.mubr.msk.f32.vlgmr.msra.gmra.mrb[40].mxu1 %vm449_vm0, %v5424_v32  ;;  %v2974_v32 = vpop.permute.xlu0 %2973 }
 0xb2f   : > { %6317 = vmatprep.mubr.msk.f32.mxu1 %vm449_vm0, %v5425_v30  ;;  %v2989_v30 = vpop.permute.xlu1 %2988 }
 0xb32   : > { %6318 = vmatmul.mubr.msk.f32.gmra.mrb[42].mxu1 %vm449_vm0, %v5426_v51 }
 0xb33   : > { %6320 = vmatprep.mubr.msk.f32.mxu1 %vm449_vm0, %v5427_v37  ;;  %v2984_v37 = vpop.permute.xlu0 %2983 }
 0xb36   : > { %6321 = vmatmul.mubr.msk.f32.gmra.mrb[44].mxu1 %vm449_vm0, %v5428_v38 }
 0xb37   : > { %6323 = vmatprep.mubr.msk.f32.mxu1 %vm449_vm0, %v5429_v34 }
 0xb3a   : > { %6324 = vmatmul.mubr.msk.f32.gmra.mrb[46].mxu1 %vm449_vm0, %v5430_v45 }
 0xb3b   : > { %6342 = vmatprep.mubr.msk.f32.mxu1 %vm651_vm4, %v5447_v24 }
 0xc01   : > { %v6316_v48 = vpop.f32.mrb[40].mxu1 }
 0xc02   : > { %v2904_v36 = vadd.f32 %v6316_v48, %v2776_v13  ;;  %v2898_v1 = vpop.f32.mrb[41].mxu1 }
 0xc03   : > { %v2899_v3 = vadd.f32 %v2898_v1, %v2771_v27 }
 0xc04   : > { %v2938_v22 = vmul.f32 0.01, %v2904_v36 }
 0xc05   : > { %v2937_v46 = vmul.f32 0.01, %v2899_v3  ;;  %v6319_v2 = vpop.f32.mrb[42].mxu1 }
 0xc06   : > { %v2946_v47 = vmax.f32 %v2904_v36, %v2938_v22  ;;  %v2914_v41 = vadd.f32 %v6319_v2, %v2786_v59  ;;  %v2908_v16 = vpop.f32.mrb[43].mxu1  ;;  %v2999_v36 = vpop.permute.xlu1 %2998 }
 0xc07   : > { %v2945_v50 = vmax.f32 %v2899_v3, %v2937_v46  ;;  %v2909_v19 = vadd.f32 %v2908_v16, %v2781_v60  ;;  %v2994_v22 = vpop.permute.xlu0 %2993 }
 0xc08   : > { %v2940_v33 = vmul.f32 0.01, %v2914_v41 }
 0xc09   : > { %v2939_v29 = vmul.f32 0.01, %v2909_v19  ;;  %v6322_v31 = vpop.f32.mrb[44].mxu1  ;;  %v6792_v20 = vpack.c.bf16 %v2946_v47, %v2945_v50 }
 0xc0a   : > { %v2948_v52 = vmax.f32 %v2914_v41, %v2940_v33  ;;  %v2924_v54 = vadd.f32 %v6322_v31, %v2796_v17  ;;  %v2918_v23 = vpop.f32.mrb[45].mxu1 }
 0xc0b   : > { %v2947_v15 = vmax.f32 %v2909_v19, %v2939_v29  ;;  %v2919_v5 = vadd.f32 %v2918_v23, %v2791_v53  ;;  %6793 = vmatprep.subr.bf16.mxu1 %v6792_v20  ;;  %v3009_v29 = vpop.permute.xlu1 %3008 }
 0xc0c   : > { %v2942_v25 = vmul.f32 0.01, %v2924_v54  ;;  %6795 = vmatpush3.bf16.msra.mxu1 %v6792_v20 }
 0xc0d   : > { %v2941_v8 = vmul.f32 0.01, %v2919_v5  ;;  %v6325_v4 = vpop.f32.mrb[46].mxu1  ;;  %v6796_v11 = vpack.c.bf16 %v2948_v52, %v2947_v15 }
 0xc0e   : > { %v2950_v21 = vmax.f32 %v2924_v54, %v2942_v25  ;;  %v2934_v56 = vadd.f32 %v6325_v4, %v2806_v63  ;;  %v2928_v43 = vpop.f32.mrb[47].mxu1  ;;  %v3004_v54 = vpop.permute.xlu0 %3003 }
 0xc0f   : > { %v2949_v58 = vmax.f32 %v2919_v5, %v2941_v8  ;;  %v2929_v44 = vadd.f32 %v2928_v43, %v2801_v39  ;;  %6797 = vmatprep.subr.bf16.mxu1 %v6796_v11  ;;  %v5471_v43 = vld [vmem:[%s8708_s6 + $0x20] sm:$0xff] }
 0xc10   : > { %v2944_v14 = vmul.f32 0.01, %v2934_v56  ;;  %6799 = vmatpush3.bf16.msra.mxu1 %v6796_v11 }
 0xc11   : > { %v2943_v6 = vmul.f32 0.01, %v2929_v44  ;;  %v6800_v57 = vpack.c.bf16 %v2950_v21, %v2949_v58  ;;  %v5474_v58 = vld [vmem:[%s8710_s8 + $0x20] sm:$0xff] }
 0xc12   : > { %v2952_v7 = vmax.f32 %v2934_v56, %v2944_v14  ;;  %v3163_v14 = vpop.permute.xlu0 %3162 }
 0xc13   : > { %v2951_v40 = vmax.f32 %v2929_v44, %v2943_v6  ;;  %6801 = vmatprep.subr.bf16.mxu1 %v6800_v57  ;;  %v5478_v44 = vld [vmem:[%s8704_s2 + $0x140] sm:$0xff] }
 0xc14   : > { %6803 = vmatpush3.bf16.msra.mxu1 %v6800_v57 }
 0xc15   : > { %v6804_v9 = vpack.c.bf16 %v2952_v7, %v2951_v40 }
 0xc17   : > { %6805 = vmatprep.subr.bf16.mxu1 %v6804_v9 }
 0xc18   : > { %6807 = vmatpush3.bf16.msra.mxu1 %v6804_v9 }
 0xc19   : > { %6820 = vmatprep.subr.bf16.mxu1 %v8725_v42 }
 0xc1b   : > { %6343 = vmatmul.mubr.msk.f32.vlgmr.msra.gmra.mrb[48].mxu1 %vm651_vm4, %v5448_v10 }
 0xc1c   : > { %6345 = vmatprep.mubr.msk.f32.mxu1 %vm651_vm4, %v5449_v26 }
 0xc1f   : > { %6346 = vmatmul.mubr.msk.f32.gmra.mrb[50].mxu1 %vm651_vm4, %v5450_v55 }
 0xc20   : > { %6348 = vmatprep.mubr.msk.f32.mxu1 %vm651_vm4, %v5451_v62 }
 0xc23   : > { %6349 = vmatmul.mubr.msk.f32.gmra.mrb[52].mxu1 %vm651_vm4, %v5452_v28 }
 0xc24   : > { %6351 = vmatprep.mubr.msk.f32.mxu1 %vm651_vm4, %v5453_v61 }
 0xc27   : > { %6352 = vmatmul.mubr.msk.f32.gmra.mrb[54].mxu1 %vm651_vm4, %v5454_v0  ;;  %v3245_v0 = vpop.permute.xlu1 %3244 }
 0xc28   : > { %6389 = vmatprep.mubr.msk.f32.mxu1 %vm7117_vm10, %v8726_v35 }
 0xcee   : > { %v6344_v51 = vpop.f32.mrb[48].mxu1 }
 0xcef   : > { %v3107_v38 = vadd.f32 %v6344_v51, %v2979_v18  ;;  %v3101_v34 = vpop.f32.mrb[49].mxu1 }
 0xcf0   : > { %v3102_v45 = vadd.f32 %v3101_v34, %v2974_v32 }
 0xcf1   : > { %v3141_v24 = vmul.f32 0.01, %v3107_v38 }
 0xcf2   : > { %v3140_v13 = vmul.f32 0.01, %v3102_v45  ;;  %v6347_v27 = vpop.f32.mrb[50].mxu1 }
 0xcf3   : > { %v3149_v59 = vmax.f32 %v3107_v38, %v3141_v24  ;;  %v3117_v48 = vadd.f32 %v6347_v27, %v2989_v30  ;;  %v3111_v60 = vpop.f32.mrb[51].mxu1  ;;  %v5480_v27 = vld [vmem:[%s8704_s2 + $0x150] sm:$0xff] }
 0xcf4   : > { %v3148_v1 = vmax.f32 %v3102_v45, %v3140_v13  ;;  %v3112_v3 = vadd.f32 %v3111_v60, %v2984_v37  ;;  %v3331_v37 = vpop.permute.xlu0 %3330  ;;  %v5479_v13 = vld [vmem:[%s8704_s2 + $0x148] sm:$0xff]  ;;  %v5484_v60 = vld [vmem:[%s8704_s2 + $0x170] sm:$0xff] }
 0xcf5   : > { %v3143_v46 = vmul.f32 0.01, %v3117_v48  ;;  %vm3332_vm15 = vcmp.eq.s32.totalorder %v3331_v37, 1  ;;  %v5505_v37 = vld [vmem:[%s8706_s4 + $0x158] sm:$0xff] }
 0xcf6   : > { %v6809_v2 = vpack.c.bf16 %v3149_v59, %v3148_v1  ;;  %v3142_v47 = vmul.f32 0.01, %v3112_v3  ;;  %v6350_v41 = vpop.f32.mrb[52].mxu1  ;;  %v5482_v59 = vld [vmem:[%s8704_s2 + $0x160] sm:$0xff] }
 0xcf7   : > { %v3151_v16 = vmax.f32 %v3117_v48, %v3143_v46  ;;  %v3127_v17 = vadd.f32 %v6350_v41, %v2999_v36  ;;  %v3121_v50 = vpop.f32.mrb[53].mxu1  ;;  %v5483_v48 = vld [vmem:[%s8704_s2 + $0x168] sm:$0xff]  ;;  %v5485_v36 = vld [vmem:[%s8704_s2 + $0x178] sm:$0xff]  ;;  %v5502_v1 = vld [vmem:[%s8706_s4 + $0x140] sm:$0xff] }
 0xcf8   : > { %v3150_v19 = vmax.f32 %v3112_v3, %v3142_v47  ;;  %v3122_v53 = vadd.f32 %v3121_v50, %v2994_v22  ;;  %6810 = vmatpush3.bf16.msra.mxu0 %v6809_v2  ;;  %6822 = vmatpush3.bf16.msra.mxu1 %v6809_v2  ;;  %v3367_v3 = vpop.permute.xlu0 %3366  ;;  %v3362_v22 = vpop.permute.xlu1 %3361 }
 0xcf9   : > { %v3145_v33 = vmul.f32 0.01, %v3127_v17  ;;  %6811 = vmatprep.subr.bf16.mxu0 %v8725_v42  ;;  %6823 = vmatprep.subr.bf16.mxu1 %v8725_v42 }
 0xcfa   : > { %v6812_v31 = vpack.c.bf16 %v3151_v16, %v3150_v19  ;;  %v3144_v20 = vmul.f32 0.01, %v3122_v53  ;;  %v6353_v52 = vpop.f32.mrb[54].mxu1 }
 0xcfb   : > { %v3153_v23 = vmax.f32 %v3127_v17, %v3145_v33  ;;  %v3137_v15 = vadd.f32 %v6353_v52, %v3009_v29  ;;  %v3131_v5 = vpop.f32.mrb[55].mxu1 }
 0xcfc   : > { %v3152_v25 = vmax.f32 %v3122_v53, %v3144_v20  ;;  %v3132_v63 = vadd.f32 %v3131_v5, %v3004_v54  ;;  %6813 = vmatpush3.bf16.msra.mxu0 %v6812_v31  ;;  %6825 = vmatpush3.bf16.msra.mxu1 %v6812_v31  ;;  %v3377_v46 = vpop.permute.xlu0 %3376  ;;  %v3372_v47 = vpop.permute.xlu1 %3371 }
 0xcfd   : > { %v3147_v8 = vmul.f32 0.01, %v3137_v15  ;;  %6814 = vmatprep.subr.bf16.mxu0 %v8725_v42  ;;  %6826 = vmatprep.subr.bf16.mxu1 %v8725_v42 }
 0xcfe   : > { %v6815_v4 = vpack.c.bf16 %v3153_v23, %v3152_v25  ;;  %v3146_v11 = vmul.f32 0.01, %v3132_v63 }
 0xcff   : > { %v3155_v39 = vmax.f32 %v3137_v15, %v3147_v8 }
 0xd00   : > { %v3154_v21 = vmax.f32 %v3132_v63, %v3146_v11  ;;  %6816 = vmatpush3.bf16.msra.mxu0 %v6815_v4  ;;  %6828 = vmatpush3.bf16.msra.mxu1 %v6815_v4  ;;  %v3387_v20 = vpop.permute.xlu0 %3386  ;;  %v3382_v23 = vpop.permute.xlu1 %3381 }
 0xd01   : > { %6817 = vmatprep.subr.bf16.mxu0 %v8725_v42  ;;  %6829 = vmatprep.subr.bf16.mxu1 %v8725_v42 }
 0xd02   : > { %v6818_v56 = vpack.c.bf16 %v3155_v39, %v3154_v21 }
 0xd04   : > { %6819 = vmatpush3.bf16.msra.mxu0 %v6818_v56  ;;  %6831 = vmatpush3.bf16.msra.mxu1 %v6818_v56 }
 0xd05   : > { %6848 = vmatprep.subr.bf16.mxu1 %v8725_v42 }
 0xd07   : > { %6371 = vmatmul.mubr.msk.f32.vlgmr.msra.gmra.mrb[40].mxu0 %vm651_vm4, %v5471_v43  ;;  %6390 = vmatmul.mubr.msk.f32.vlgmr.msra.gmra.mrb[56].mxu1 %vm651_vm4, %v5474_v58  ;;  %v3397_v43 = vpop.permute.xlu0 %3396 }
 0xd08   : > { %6450 = vmatprep.mubr.msk.f32.mxu1 %vm7117_vm10, %v8726_v35  ;;  %6394 = vmatprep.mubr.msk.f32.mxu0 %vm449_vm0, %v5478_v44 }
 0xdda   : > { %v3234_v6 = vpop.f32.mrb[40].mxu0  ;;  %v3316_v57 = vpop.f32.mrb[56].mxu1 }
 0xddb   : > { %v3235_v7 = vadd.f32 %v3234_v6, %v3163_v14  ;;  %v6372_v40 = vpop.f32.mrb[41].mxu0  ;;  %v6391_v9 = vpop.f32.mrb[57].mxu1  ;;  %v3317_v32 = vadd.f32 %v3316_v57, %v3245_v0 }
 0xddc   : > { %v3392_v6 = vpop.permute.xlu1 %3391 }
 0xddd   : > { %v3324_v10 = vsub.f32 0.0, %v3235_v7  ;;  %v3334_v26 = vrot.slane %v3235_v7, 4  ;;  %v3323_v38 = vsub.f32 %v8243_v49, %v3317_v32  ;;  %v5504_v32 = vld [vmem:[%s8706_s4 + $0x150] sm:$0xff] }
 0xddf   : > { %v3325_v55 = vmul.f32 1.442695, %v3324_v10  ;;  %v3335_v62 = vadd.f32 %v3334_v26, %v3235_v7 }
 0xde1   : > { %7010 = vpow2.f32 %v3325_v55  ;;  %v3336_v28 = vrot.slane %v3335_v62, 2 }
 0xde3   : > { %v3337_v61 = vadd.f32 %v3336_v28, %v3335_v62 }
 0xde5   : > { %v3338_v18 = vrot.slane %v3337_v61, 1 }
 0xde7   : > { %v8331_v30 = vadd.f32 %v3338_v18, %v3337_v61  ;;  %v5503_v18 = vld [vmem:[%s8706_s4 + $0x148] sm:$0xff] }
 0xde9   : > { %v3340_v51 = vsub.f32 %v8239_v12, %v8331_v30  ;;  %v5535_v12 = vld [vmem:[%s8704_s2 + $0x190] sm:$0xff]  ;;  %v5536_v30 = vld [vmem:[%s8704_s2 + $0x198] sm:$0xff] }
 0xdeb   : > { %v7011_v34 = vpop.eup %7010 }
 0xdec   : > { %v3327_v45 = vmul.f32 %v7011_v34, %v3323_v38  ;;  %v5506_v38 = vld [vmem:[%s8706_s4 + $0x160] sm:$0xff]  ;;  %v5507_v34 = vld [vmem:[%s8706_s4 + $0x168] sm:$0xff] }
 0xdee   : > { %v8337_v24 = vsel %vm3332_vm15, %v8243_v49, %v3327_v45  ;;  %v5481_v49 = vld [vmem:[%s8704_s2 + $0x158] sm:$0xff]  ;;  %v5508_v45 = vld [vmem:[%s8706_s4 + $0x170] sm:$0xff] }
 0xdef   : > { %6392 = vmatprep.subr.mxu0 %v8337_v24 }
 0xdf0   : > { %6393 = vmatpush3.msra.mxu0 %v8337_v24 }
 0xdf1   : > { %6395 = vmatmul.mubr.msk.f32.vlgmr.msra.gmra.mrb[42].mxu0 %vm449_vm0, %v5479_v13  ;;  %v5509_v13 = vld [vmem:[%s8706_s4 + $0x178] sm:$0xff] }
 0xdf2   : > { %6397 = vmatprep.mubr.msk.f32.mxu0 %vm449_vm0, %v5480_v27  ;;  %v3570_v27 = vpop.permute.xlu0 %3569 }
 0xdf5   : > { %6398 = vmatmul.mubr.msk.f32.gmra.mrb[44].mxu0 %vm449_vm0, %v5481_v49  ;;  %v3565_v49 = vpop.permute.xlu1 %3564 }
 0xdf6   : > { %6400 = vmatprep.mubr.msk.f32.mxu0 %vm449_vm0, %v5482_v59  ;;  %v3580_v59 = vpop.permute.xlu0 %3579 }
 0xdf9   : > { %6401 = vmatmul.mubr.msk.f32.gmra.mrb[46].mxu0 %vm449_vm0, %v5483_v48 }
 0xdfa   : > { %6403 = vmatprep.mubr.msk.f32.mxu0 %vm449_vm0, %v5484_v60  ;;  %v3575_v60 = vpop.permute.xlu1 %3574 }
 0xdfd   : > { %6404 = vmatmul.mubr.msk.f32.gmra.mrb[48].mxu0 %vm449_vm0, %v5485_v36 }
 0xdfe   : > { %6422 = vmatprep.mubr.msk.f32.mxu0 %vm651_vm4, %v5502_v1 }
 0xec4   : > { %v6396_v2 = vpop.f32.mrb[42].mxu0 }
 0xec5   : > { %v3495_v41 = vadd.f32 %v6396_v2, %v3367_v3  ;;  %v3489_v16 = vpop.f32.mrb[43].mxu0 }
 0xec6   : > { %v3490_v17 = vadd.f32 %v3489_v16, %v3362_v22 }
 0xec7   : > { %v3529_v50 = vmul.f32 0.01, %v3495_v41 }
 0xec8   : > { %v3528_v19 = vmul.f32 0.01, %v3490_v17  ;;  %v6399_v53 = vpop.f32.mrb[44].mxu0 }
 0xec9   : > { %v3537_v33 = vmax.f32 %v3495_v41, %v3529_v50  ;;  %v3505_v29 = vadd.f32 %v6399_v53, %v3377_v46  ;;  %v3499_v31 = vpop.f32.mrb[45].mxu0  ;;  %v3585_v53 = vpop.permute.xlu1 %3584 }
 0xeca   : > { %v3536_v52 = vmax.f32 %v3490_v17, %v3528_v19  ;;  %v3500_v54 = vadd.f32 %v3499_v31, %v3372_v47  ;;  %v3590_v17 = vpop.permute.xlu0 %3589 }
 0xecb   : > { %v3531_v15 = vmul.f32 0.01, %v3505_v29 }
 0xecc   : > { %v3530_v5 = vmul.f32 0.01, %v3500_v54  ;;  %v6402_v25 = vpop.f32.mrb[46].mxu0  ;;  %v6832_v63 = vpack.c.bf16 %v3537_v33, %v3536_v52 }
 0xecd   : > { %v3539_v8 = vmax.f32 %v3505_v29, %v3531_v15  ;;  %v3515_v4 = vadd.f32 %v6402_v25, %v3387_v20  ;;  %v3509_v11 = vpop.f32.mrb[47].mxu0 }
 0xece   : > { %v3538_v39 = vmax.f32 %v3500_v54, %v3530_v5  ;;  %v3510_v21 = vadd.f32 %v3509_v11, %v3382_v23  ;;  %6833 = vmatprep.subr.bf16.mxu0 %v6832_v63 }
 0xecf   : > { %v3533_v56 = vmul.f32 0.01, %v3515_v4  ;;  %6835 = vmatpush3.bf16.msra.mxu0 %v6832_v63  ;;  %v3600_v63 = vpop.permute.xlu0 %3599 }
 0xed0   : > { %v3532_v58 = vmul.f32 0.01, %v3510_v21  ;;  %v6405_v44 = vpop.f32.mrb[48].mxu0  ;;  %v6836_v14 = vpack.c.bf16 %v3539_v8, %v3538_v39  ;;  %v3595_v39 = vpop.permute.xlu1 %3594 }
 0xed1   : > { %v3541_v57 = vmax.f32 %v3515_v4, %v3533_v56  ;;  %v3525_v7 = vadd.f32 %v6405_v44, %v3397_v43  ;;  %v3519_v40 = vpop.f32.mrb[49].mxu0 }
 0xed2   : > { %v3540_v9 = vmax.f32 %v3510_v21, %v3532_v58  ;;  %v3520_v10 = vadd.f32 %v3519_v40, %v3392_v6  ;;  %6837 = vmatprep.subr.bf16.mxu0 %v6836_v14 }
 0xed3   : > { %v3535_v26 = vmul.f32 0.01, %v3525_v7  ;;  %6839 = vmatpush3.bf16.msra.mxu0 %v6836_v14 }
 0xed4   : > { %v3534_v55 = vmul.f32 0.01, %v3520_v10  ;;  %v6840_v62 = vpack.c.bf16 %v3541_v57, %v3540_v9 }
 0xed5   : > { %v3543_v28 = vmax.f32 %v3525_v7, %v3535_v26  ;;  %v5529_v26 = vld [vmem:[%s8710_s8 + $0x28] sm:$0xff] }
 0xed6   : > { %v3542_v61 = vmax.f32 %v3520_v10, %v3534_v55  ;;  %6841 = vmatprep.subr.bf16.mxu0 %v6840_v62  ;;  %v5526_v10 = vld [vmem:[%s8708_s6 + $0x28] sm:$0xff]  ;;  %v5533_v55 = vld [vmem:[%s8704_s2 + $0x180] sm:$0xff] }
 0xed7   : > { %6843 = vmatpush3.bf16.msra.mxu0 %v6840_v62  ;;  %v3754_v62 = vpop.permute.xlu1 %3753 }
 0xed8   : > { %v6844_v0 = vpack.c.bf16 %v3543_v28, %v3542_v61 }
 0xeda   : > { %6845 = vmatprep.subr.bf16.mxu0 %v6844_v0 }
 0xedb   : > { %6847 = vmatpush3.bf16.msra.mxu0 %v6844_v0 }
 0xedc   : > { %6860 = vmatprep.subr.bf16.mxu0 %v8725_v42 }
 0xede   : > { %6423 = vmatmul.mubr.msk.f32.vlgmr.msra.gmra.mrb[50].mxu0 %vm651_vm4, %v5503_v18 }
 0xedf   : > { %6425 = vmatprep.mubr.msk.f32.mxu0 %vm651_vm4, %v5504_v32 }
 0xee2   : > { %6426 = vmatmul.mubr.msk.f32.gmra.mrb[52].mxu0 %vm651_vm4, %v5505_v37 }
 0xee3   : > { %6428 = vmatprep.mubr.msk.f32.mxu0 %vm651_vm4, %v5506_v38 }
 0xee6   : > { %6429 = vmatmul.mubr.msk.f32.gmra.mrb[54].mxu0 %vm651_vm4, %v5507_v34 }
 0xee7   : > { %6431 = vmatprep.mubr.msk.f32.mxu0 %vm651_vm4, %v5508_v45 }
 0xeea   : > { %6432 = vmatmul.mubr.msk.f32.gmra.mrb[56].mxu0 %vm651_vm4, %v5509_v13 }
 0xeeb   : > { %6469 = vmatprep.mubr.msk.f32.mxu0 %vm7117_vm10, %v8726_v35 }
 0xfb1   : > { %v6424_v48 = vpop.f32.mrb[50].mxu0 }
 0xfb2   : > { %v3698_v36 = vadd.f32 %v6424_v48, %v3570_v27  ;;  %v3692_v1 = vpop.f32.mrb[51].mxu0 }
 0xfb3   : > { %v3693_v3 = vadd.f32 %v3692_v1, %v3565_v49  ;;  %v3836_v49 = vpop.permute.xlu0 %3835  ;;  %v3922_v1 = vpop.permute.xlu1 %3921 }
 0xfb4   : > { %v3732_v22 = vmul.f32 0.01, %v3698_v36  ;;  %vm3923_vm1 = vcmp.eq.s32.totalorder %v3922_v1, 1  ;;  %v5562_v1 = vld [vmem:[%s8706_s4 + $0x1a8] sm:$0xff] }
 0xfb5   : > { %v3731_v46 = vmul.f32 0.01, %v3693_v3  ;;  %v6427_v2 = vpop.f32.mrb[52].mxu0 }
 0xfb6   : > { %v3740_v47 = vmax.f32 %v3698_v36, %v3732_v22  ;;  %v3708_v41 = vadd.f32 %v6427_v2, %v3580_v59  ;;  %v3702_v16 = vpop.f32.mrb[53].mxu0 }
 0xfb7   : > { %v3739_v50 = vmax.f32 %v3693_v3, %v3731_v46  ;;  %v3703_v19 = vadd.f32 %v3702_v16, %v3575_v60  ;;  %v5540_v16 = vld [vmem:[%s8704_s2 + $0x1b8] sm:$0xff] }
 0xfb8   : > { %v3734_v33 = vmul.f32 0.01, %v3708_v41 }
 0xfb9   : > { %v6849_v29 = vpack.c.bf16 %v3740_v47, %v3739_v50  ;;  %v3733_v31 = vmul.f32 0.01, %v3703_v19  ;;  %v6430_v20 = vpop.f32.mrb[54].mxu0  ;;  %v5534_v47 = vld [vmem:[%s8704_s2 + $0x188] sm:$0xff]  ;;  %v3958_v50 = vpop.permute.xlu1 %3957 }
 0xfba   : > { %v3742_v52 = vmax.f32 %v3708_v41, %v3734_v33  ;;  %v3718_v54 = vadd.f32 %v6430_v20, %v3590_v17  ;;  %v3712_v23 = vpop.f32.mrb[55].mxu0  ;;  %v5539_v41 = vld [vmem:[%s8704_s2 + $0x1b0] sm:$0xff]  ;;  %v5557_v17 = vld [vmem:[%s8706_s4 + $0x180] sm:$0xff] }
 0xfbb   : > { %v3741_v15 = vmax.f32 %v3703_v19, %v3733_v31  ;;  %v3713_v5 = vadd.f32 %v3712_v23, %v3585_v53  ;;  %6850 = vmatpush3.bf16.msra.mxu1 %v6849_v29  ;;  %6862 = vmatpush3.bf16.msra.mxu0 %v6849_v29  ;;  %v3953_v19 = vpop.permute.xlu0 %3952 }
 0xfbc   : > { %v3736_v25 = vmul.f32 0.01, %v3718_v54  ;;  %6851 = vmatprep.subr.bf16.mxu1 %v8725_v42  ;;  %6863 = vmatprep.subr.bf16.mxu0 %v8725_v42 }
 0xfbd   : > { %v6852_v8 = vpack.c.bf16 %v3742_v52, %v3741_v15  ;;  %v3735_v4 = vmul.f32 0.01, %v3713_v5  ;;  %v6433_v11 = vpop.f32.mrb[56].mxu0  ;;  %v3968_v53 = vpop.permute.xlu1 %3967 }
 0xfbe   : > { %v3744_v21 = vmax.f32 %v3718_v54, %v3736_v25  ;;  %v3728_v56 = vadd.f32 %v6433_v11, %v3600_v63  ;;  %v3722_v43 = vpop.f32.mrb[57].mxu0 }
 0xfbf   : > { %v3743_v58 = vmax.f32 %v3713_v5, %v3735_v4  ;;  %v3723_v44 = vadd.f32 %v3722_v43, %v3595_v39  ;;  %6853 = vmatpush3.bf16.msra.mxu1 %v6852_v8  ;;  %6865 = vmatpush3.bf16.msra.mxu0 %v6852_v8  ;;  %v3963_v29 = vpop.permute.xlu0 %3962 }
 0xfc0   : > { %v3738_v14 = vmul.f32 0.01, %v3728_v56  ;;  %6854 = vmatprep.subr.bf16.mxu1 %v8725_v42  ;;  %6866 = vmatprep.subr.bf16.mxu0 %v8725_v42 }
 0xfc1   : > { %v6855_v6 = vpack.c.bf16 %v3744_v21, %v3743_v58  ;;  %v3737_v57 = vmul.f32 0.01, %v3723_v44  ;;  %v3978_v8 = vpop.permute.xlu1 %3977 }
 0xfc2   : > { %v3746_v7 = vmax.f32 %v3728_v56, %v3738_v14 }
 0xfc3   : > { %v3745_v40 = vmax.f32 %v3723_v44, %v3737_v57  ;;  %6856 = vmatpush3.bf16.msra.mxu1 %v6855_v6  ;;  %6868 = vmatpush3.bf16.msra.mxu0 %v6855_v6  ;;  %v3973_v39 = vpop.permute.xlu0 %3972 }
 0xfc4   : > { %6857 = vmatprep.subr.bf16.mxu1 %v8725_v42  ;;  %6869 = vmatprep.subr.bf16.mxu0 %v8725_v42 }
 0xfc5   : > { %v6858_v9 = vpack.c.bf16 %v3746_v7, %v3745_v40 }
 0xfc7   : > { %6859 = vmatpush3.bf16.msra.mxu1 %v6858_v9  ;;  %6871 = vmatpush3.bf16.msra.mxu0 %v6858_v9  ;;  %v3988_v9 = vpop.permute.xlu1 %3987 }
 0xfc8   : > { %6888 = vmatprep.subr.bf16.mxu0 %v8725_v42 }
 0xfca   : > { %6451 = vmatmul.mubr.msk.f32.vlgmr.msra.gmra.mrb[58].mxu1 %vm651_vm4, %v5526_v10  ;;  %6470 = vmatmul.mubr.msk.f32.vlgmr.msra.gmra.mrb[58].mxu0 %vm651_vm4, %v5529_v26 }
 0xfcb   : > { %6530 = vmatprep.mubr.msk.f32.mxu0 %vm7117_vm10, %v8726_v35  ;;  %6474 = vmatprep.mubr.msk.f32.mxu1 %vm449_vm0, %v5533_v55 }
0x109d   : > { %v3825_v28 = vpop.f32.mrb[58].mxu1  ;;  %v3907_v61 = vpop.f32.mrb[58].mxu0 }
0x109e   : > { %v3826_v0 = vadd.f32 %v3825_v28, %v3754_v62  ;;  %v6452_v18 = vpop.f32.mrb[59].mxu1  ;;  %v6471_v32 = vpop.f32.mrb[59].mxu0  ;;  %v3908_v48 = vadd.f32 %v3907_v61, %v3836_v49  ;;  %v5558_v49 = vld [vmem:[%s8706_s4 + $0x188] sm:$0xff] }
0x109f   : > { %v3983_v62 = vpop.permute.xlu0 %3982 }
0x10a0   : > { %v3915_v37 = vsub.f32 0.0, %v3826_v0  ;;  %v3925_v38 = vrot.slane %v3826_v0, 4  ;;  %v3914_v3 = vsub.f32 %v8337_v24, %v3908_v48  ;;  %v5560_v48 = vld [vmem:[%s8706_s4 + $0x198] sm:$0xff] }
0x10a2   : > { %v3916_v34 = vmul.f32 1.442695, %v3915_v37  ;;  %v3926_v45 = vadd.f32 %v3925_v38, %v3826_v0 }
0x10a4   : > { %7012 = vpow2.f32 %v3916_v34  ;;  %v3927_v13 = vrot.slane %v3926_v45, 2 }
0x10a6   : > { %v3928_v27 = vadd.f32 %v3927_v13, %v3926_v45 }
0x10a8   : > { %v3929_v59 = vrot.slane %v3928_v27, 1 }
0x10aa   : > { %v3930_v60 = vadd.f32 %v3929_v59, %v3928_v27  ;;  %v5559_v59 = vld [vmem:[%s8706_s4 + $0x190] sm:$0xff] }
0x10ac   : > { %v8428_v36 = vsub.f32 %v3340_v51, %v3930_v60  ;;  %v5537_v51 = vld [vmem:[%s8704_s2 + $0x1a0] sm:$0xff] }
0x10ad   : > { %v5561_v60 = vld [vmem:[%s8706_s4 + $0x1a0] sm:$0xff] }
0x10ae   : > { %v7013_v22 = vpop.eup %7012 }
0x10af   : > { %v3918_v46 = vmul.f32 %v7013_v22, %v3914_v3  ;;  %v5563_v3 = vld [vmem:[%s8706_s4 + $0x1b0] sm:$0xff]  ;;  %v5564_v22 = vld [vmem:[%s8706_s4 + $0x1b8] sm:$0xff] }
0x10b1   : > { %v8432_v2 = vsel %vm3923_vm1, %v8337_v24, %v3918_v46  ;;  %v5538_v24 = vld [vmem:[%s8704_s2 + $0x1a8] sm:$0xff]  ;;  %v4161_v46 = vpop.permute.xlu1 %4160 }
0x10b2   : > { %6472 = vmatprep.subr.mxu1 %v8432_v2 }
0x10b3   : > { %6473 = vmatpush3.msra.mxu1 %v8432_v2 }
0x10b4   : > { %6475 = vmatmul.mubr.msk.f32.vlgmr.msra.gmra.mrb[60].mxu1 %vm449_vm0, %v5534_v47  ;;  %v4156_v47 = vpop.permute.xlu0 %4155 }
0x10b5   : > { %6477 = vmatprep.mubr.msk.f32.mxu1 %vm449_vm0, %v5535_v12  ;;  %v4171_v12 = vpop.permute.xlu1 %4170 }
0x10b8   : > { %6478 = vmatmul.mubr.msk.f32.gmra.mrb[62].mxu1 %vm449_vm0, %v5536_v30 }
0x10b9   : > { %6480 = vmatprep.mubr.msk.f32.mxu1 %vm449_vm0, %v5537_v51  ;;  %v4166_v51 = vpop.permute.xlu0 %4165 }
0x10bc   : > { %6481 = vmatmul.mubr.msk.f32.gmra.mrb[64].mxu1 %vm449_vm0, %v5538_v24 }
0x10bd   : > { %6483 = vmatprep.mubr.msk.f32.mxu1 %vm449_vm0, %v5539_v41 }
0x10c0   : > { %6484 = vmatmul.mubr.msk.f32.gmra.mrb[66].mxu1 %vm449_vm0, %v5540_v16 }
0x10c1   : > { %6502 = vmatprep.mubr.msk.f32.mxu1 %vm651_vm4, %v5557_v17 }
0x1187   : > { %v6476_v33 = vpop.f32.mrb[60].mxu1 }
0x1188   : > { %v4086_v31 = vadd.f32 %v6476_v33, %v3958_v50  ;;  %v4080_v20 = vpop.f32.mrb[61].mxu1 }
0x1189   : > { %v4081_v52 = vadd.f32 %v4080_v20, %v3953_v19 }
0x118a   : > { %v4120_v54 = vmul.f32 0.01, %v4086_v31 }
0x118b   : > { %v4119_v23 = vmul.f32 0.01, %v4081_v52  ;;  %v6479_v15 = vpop.f32.mrb[62].mxu1 }
0x118c   : > { %v4128_v5 = vmax.f32 %v4086_v31, %v4120_v54  ;;  %v4096_v25 = vadd.f32 %v6479_v15, %v3968_v53  ;;  %v4090_v63 = vpop.f32.mrb[63].mxu1  ;;  %v4181_v31 = vpop.permute.xlu1 %4180 }
0x118d   : > { %v4127_v4 = vmax.f32 %v4081_v52, %v4119_v23  ;;  %v4091_v11 = vadd.f32 %v4090_v63, %v3963_v29  ;;  %v4176_v54 = vpop.permute.xlu0 %4175 }
0x118e   : > { %v4122_v21 = vmul.f32 0.01, %v4096_v25 }
0x118f   : > { %v4121_v56 = vmul.f32 0.01, %v4091_v11  ;;  %v6482_v43 = vpop.f32.mrb[64].mxu1  ;;  %v6872_v58 = vpack.c.bf16 %v4128_v5, %v4127_v4 }
0x1190   : > { %v4130_v44 = vmax.f32 %v4096_v25, %v4122_v21  ;;  %v4106_v14 = vadd.f32 %v6482_v43, %v3978_v8  ;;  %v4100_v6 = vpop.f32.mrb[65].mxu1 }
0x1191   : > { %v4129_v57 = vmax.f32 %v4091_v11, %v4121_v56  ;;  %v4101_v7 = vadd.f32 %v4100_v6, %v3973_v39  ;;  %6873 = vmatprep.subr.bf16.mxu1 %v6872_v58  ;;  %v4191_v56 = vpop.permute.xlu1 %4190 }
0x1192   : > { %v4124_v40 = vmul.f32 0.01, %v4106_v14  ;;  %6875 = vmatpush3.bf16.msra.mxu1 %v6872_v58 }
0x1193   : > { %v4123_v10 = vmul.f32 0.01, %v4101_v7  ;;  %v6485_v26 = vpop.f32.mrb[66].mxu1  ;;  %v6876_v55 = vpack.c.bf16 %v4130_v44, %v4129_v57 }
0x1194   : > { %v4132_v28 = vmax.f32 %v4106_v14, %v4124_v40  ;;  %v4116_v61 = vadd.f32 %v6485_v26, %v3988_v9  ;;  %v4110_v0 = vpop.f32.mrb[67].mxu1  ;;  %v4186_v14 = vpop.permute.xlu0 %4185 }
0x1195   : > { %v4131_v18 = vmax.f32 %v4101_v7, %v4123_v10  ;;  %v4111_v32 = vadd.f32 %v4110_v0, %v3983_v62  ;;  %6877 = vmatprep.subr.bf16.mxu1 %v6876_v55  ;;  %v5581_v0 = vld [vmem:[%s8708_s6 + $0x30] sm:$0xff] }
0x1196   : > { %v4126_v37 = vmul.f32 0.01, %v4116_v61  ;;  %6879 = vmatpush3.bf16.msra.mxu1 %v6876_v55 }
0x1197   : > { %v4125_v38 = vmul.f32 0.01, %v4111_v32  ;;  %v6880_v34 = vpack.c.bf16 %v4132_v28, %v4131_v18  ;;  %v5584_v18 = vld [vmem:[%s8710_s8 + $0x30] sm:$0xff] }
0x1198   : > { %v4134_v45 = vmax.f32 %v4116_v61, %v4126_v37  ;;  %v4345_v37 = vpop.permute.xlu0 %4344 }
0x1199   : > { %v4133_v13 = vmax.f32 %v4111_v32, %v4125_v38  ;;  %6881 = vmatprep.subr.bf16.mxu1 %v6880_v34  ;;  %v5588_v32 = vld [vmem:[%s8704_s2 + $0x1c0] sm:$0xff] }
0x119a   : > { %6883 = vmatpush3.bf16.msra.mxu1 %v6880_v34 }
0x119b   : > { %v6884_v27 = vpack.c.bf16 %v4134_v45, %v4133_v13 }
0x119d   : > { %6885 = vmatprep.subr.bf16.mxu1 %v6884_v27 }
0x119e   : > { %6887 = vmatpush3.bf16.msra.mxu1 %v6884_v27 }
0x119f   : > { %6900 = vmatprep.subr.bf16.mxu1 %v8725_v42 }
0x11a1   : > { %6503 = vmatmul.mubr.msk.f32.vlgmr.msra.gmra.mrb[68].mxu1 %vm651_vm4, %v5558_v49 }
0x11a2   : > { %6505 = vmatprep.mubr.msk.f32.mxu1 %vm651_vm4, %v5559_v59 }
0x11a5   : > { %6506 = vmatmul.mubr.msk.f32.gmra.mrb[70].mxu1 %vm651_vm4, %v5560_v48 }
0x11a6   : > { %6508 = vmatprep.mubr.msk.f32.mxu1 %vm651_vm4, %v5561_v60 }
0x11a9   : > { %6509 = vmatmul.mubr.msk.f32.gmra.mrb[72].mxu1 %vm651_vm4, %v5562_v1 }
0x11aa   : > { %6511 = vmatprep.mubr.msk.f32.mxu1 %vm651_vm4, %v5563_v3 }
0x11ad   : > { %6512 = vmatmul.mubr.msk.f32.gmra.mrb[74].mxu1 %vm651_vm4, %v5564_v22  ;;  %v4427_v22 = vpop.permute.xlu1 %4426 }
0x11ae   : > { %6549 = vmatprep.mubr.msk.f32.mxu1 %vm7117_vm10, %v8726_v35 }
0x1274   : > { %v6504_v30 = vpop.f32.mrb[68].mxu1 }
0x1275   : > { %v4289_v24 = vadd.f32 %v6504_v30, %v4161_v46  ;;  %v4283_v41 = vpop.f32.mrb[69].mxu1 }
0x1276   : > { %v4284_v16 = vadd.f32 %v4283_v41, %v4156_v47 }
0x1277   : > { %v4323_v17 = vmul.f32 0.01, %v4289_v24 }
0x1278   : > { %v4322_v50 = vmul.f32 0.01, %v4284_v16  ;;  %v6507_v19 = vpop.f32.mrb[70].mxu1 }
0x1279   : > { %v4331_v53 = vmax.f32 %v4289_v24, %v4323_v17  ;;  %v4299_v33 = vadd.f32 %v6507_v19, %v4171_v12  ;;  %v4293_v29 = vpop.f32.mrb[71].mxu1  ;;  %v5590_v19 = vld [vmem:[%s8704_s2 + $0x1d0] sm:$0xff] }
0x127a   : > { %v4330_v20 = vmax.f32 %v4284_v16, %v4322_v50  ;;  %v4294_v52 = vadd.f32 %v4293_v29, %v4166_v51  ;;  %v4513_v51 = vpop.permute.xlu0 %4512  ;;  %v5589_v50 = vld [vmem:[%s8704_s2 + $0x1c8] sm:$0xff]  ;;  %v5594_v29 = vld [vmem:[%s8704_s2 + $0x1f0] sm:$0xff] }
0x127b   : > { %v4325_v23 = vmul.f32 0.01, %v4299_v33  ;;  %vm4514_vm2 = vcmp.eq.s32.totalorder %v4513_v51, 1  ;;  %v5615_v51 = vld [vmem:[%s8706_s4 + $0x1d8] sm:$0xff] }
0x127c   : > { %v6889_v15 = vpack.c.bf16 %v4331_v53, %v4330_v20  ;;  %v4324_v5 = vmul.f32 0.01, %v4294_v52  ;;  %v6510_v25 = vpop.f32.mrb[72].mxu1  ;;  %v5592_v53 = vld [vmem:[%s8704_s2 + $0x1e0] sm:$0xff] }
0x127d   : > { %v4333_v63 = vmax.f32 %v4299_v33, %v4325_v23  ;;  %v4309_v8 = vadd.f32 %v6510_v25, %v4181_v31  ;;  %v4303_v4 = vpop.f32.mrb[73].mxu1  ;;  %v5593_v33 = vld [vmem:[%s8704_s2 + $0x1e8] sm:$0xff]  ;;  %v5595_v31 = vld [vmem:[%s8704_s2 + $0x1f8] sm:$0xff]  ;;  %v5612_v20 = vld [vmem:[%s8706_s4 + $0x1c0] sm:$0xff] }
0x127e   : > { %v4332_v11 = vmax.f32 %v4294_v52, %v4324_v5  ;;  %v4304_v39 = vadd.f32 %v4303_v4, %v4176_v54  ;;  %6890 = vmatpush3.bf16.msra.mxu0 %v6889_v15  ;;  %6902 = vmatpush3.bf16.msra.mxu1 %v6889_v15  ;;  %v4549_v52 = vpop.permute.xlu0 %4548  ;;  %v4544_v54 = vpop.permute.xlu1 %4543 }
0x127f   : > { %v4327_v21 = vmul.f32 0.01, %v4309_v8  ;;  %6891 = vmatprep.subr.bf16.mxu0 %v8725_v42  ;;  %6903 = vmatprep.subr.bf16.mxu1 %v8725_v42 }
0x1280   : > { %v6892_v43 = vpack.c.bf16 %v4333_v63, %v4332_v11  ;;  %v4326_v58 = vmul.f32 0.01, %v4304_v39  ;;  %v6513_v44 = vpop.f32.mrb[74].mxu1 }
0x1281   : > { %v4335_v6 = vmax.f32 %v4309_v8, %v4327_v21  ;;  %v4319_v57 = vadd.f32 %v6513_v44, %v4191_v56  ;;  %v4313_v7 = vpop.f32.mrb[75].mxu1 }
0x1282   : > { %v4334_v40 = vmax.f32 %v4304_v39, %v4326_v58  ;;  %v4314_v9 = vadd.f32 %v4313_v7, %v4186_v14  ;;  %6893 = vmatpush3.bf16.msra.mxu0 %v6892_v43  ;;  %6905 = vmatpush3.bf16.msra.mxu1 %v6892_v43  ;;  %v4559_v23 = vpop.permute.xlu0 %4558  ;;  %v4554_v5 = vpop.permute.xlu1 %4553 }
0x1283   : > { %v4329_v10 = vmul.f32 0.01, %v4319_v57  ;;  %6894 = vmatprep.subr.bf16.mxu0 %v8725_v42  ;;  %6906 = vmatprep.subr.bf16.mxu1 %v8725_v42 }
0x1284   : > { %v6895_v26 = vpack.c.bf16 %v4335_v6, %v4334_v40  ;;  %v4328_v55 = vmul.f32 0.01, %v4314_v9 }
0x1285   : > { %v4337_v62 = vmax.f32 %v4319_v57, %v4329_v10 }
0x1286   : > { %v4336_v28 = vmax.f32 %v4314_v9, %v4328_v55  ;;  %6896 = vmatpush3.bf16.msra.mxu0 %v6895_v26  ;;  %6908 = vmatpush3.bf16.msra.mxu1 %v6895_v26  ;;  %v4569_v58 = vpop.permute.xlu0 %4568  ;;  %v4564_v6 = vpop.permute.xlu1 %4563 }
0x1287   : > { %6897 = vmatprep.subr.bf16.mxu0 %v8725_v42  ;;  %6909 = vmatprep.subr.bf16.mxu1 %v8725_v42 }
0x1288   : > { %v6898_v61 = vpack.c.bf16 %v4337_v62, %v4336_v28 }
0x128a   : > { %6899 = vmatpush3.bf16.msra.mxu0 %v6898_v61  ;;  %6911 = vmatpush3.bf16.msra.mxu1 %v6898_v61 }
0x128b   : > { %6928 = vmatprep.subr.bf16.mxu1 %v8725_v42 }
0x128d   : > { %6531 = vmatmul.mubr.msk.f32.vlgmr.msra.gmra.mrb[60].mxu0 %vm651_vm4, %v5581_v0  ;;  %6550 = vmatmul.mubr.msk.f32.vlgmr.msra.gmra.mrb[76].mxu1 %vm651_vm4, %v5584_v18  ;;  %v4579_v0 = vpop.permute.xlu0 %4578 }
0x128e   : > { %6610 = vmatprep.mubr.msk.f32.mxu1 %vm7117_vm10, %v8726_v35  ;;  %6554 = vmatprep.mubr.msk.f32.mxu0 %vm449_vm0, %v5588_v32 }
0x1360   : > { %v4416_v38 = vpop.f32.mrb[60].mxu0  ;;  %v4498_v34 = vpop.f32.mrb[76].mxu1 }
0x1361   : > { %v4417_v45 = vadd.f32 %v4416_v38, %v4345_v37  ;;  %v6532_v13 = vpop.f32.mrb[61].mxu0  ;;  %v6551_v27 = vpop.f32.mrb[77].mxu1  ;;  %v4499_v47 = vadd.f32 %v4498_v34, %v4427_v22 }
0x1362   : > { %v4574_v38 = vpop.permute.xlu1 %4573 }
0x1363   : > { %v4506_v49 = vsub.f32 0.0, %v4417_v45  ;;  %v4516_v59 = vrot.slane %v4417_v45, 4  ;;  %v4505_v24 = vsub.f32 %v8432_v2, %v4499_v47  ;;  %v5614_v47 = vld [vmem:[%s8706_s4 + $0x1d0] sm:$0xff] }
0x1365   : > { %v4507_v48 = vmul.f32 1.442695, %v4506_v49  ;;  %v4517_v60 = vadd.f32 %v4516_v59, %v4417_v45 }
0x1367   : > { %7014 = vpow2.f32 %v4507_v48  ;;  %v4518_v1 = vrot.slane %v4517_v60, 2 }
0x1369   : > { %v4519_v3 = vadd.f32 %v4518_v1, %v4517_v60 }
0x136b   : > { %v4520_v46 = vrot.slane %v4519_v3, 1 }
0x136d   : > { %v8520_v12 = vadd.f32 %v4520_v46, %v4519_v3  ;;  %v5613_v46 = vld [vmem:[%s8706_s4 + $0x1c8] sm:$0xff] }
0x136f   : > { %v4522_v30 = vsub.f32 %v8428_v36, %v8520_v12 }
0x1371   : > { %v7015_v41 = vpop.eup %7014 }
0x1372   : > { %v4509_v16 = vmul.f32 %v7015_v41, %v4505_v24  ;;  %v5616_v24 = vld [vmem:[%s8706_s4 + $0x1e0] sm:$0xff]  ;;  %v5617_v41 = vld [vmem:[%s8706_s4 + $0x1e8] sm:$0xff] }
0x1374   : > { %v8526_v17 = vsel %vm4514_vm2, %v8432_v2, %v4509_v16  ;;  %v5591_v2 = vld [vmem:[%s8704_s2 + $0x1d8] sm:$0xff]  ;;  %v5618_v16 = vld [vmem:[%s8706_s4 + $0x1f0] sm:$0xff] }
0x1375   : > { %6552 = vmatprep.subr.mxu0 %v8526_v17 }
0x1376   : > { %6553 = vmatpush3.msra.mxu0 %v8526_v17 }
0x1377   : > { %6555 = vmatmul.mubr.msk.f32.vlgmr.msra.gmra.mrb[62].mxu0 %vm449_vm0, %v5589_v50  ;;  %v5619_v50 = vld [vmem:[%s8706_s4 + $0x1f8] sm:$0xff] }
0x1378   : > { %6557 = vmatprep.mubr.msk.f32.mxu0 %vm449_vm0, %v5590_v19  ;;  %v4752_v19 = vpop.permute.xlu0 %4751 }
0x137b   : > { %6558 = vmatmul.mubr.msk.f32.gmra.mrb[64].mxu0 %vm449_vm0, %v5591_v2  ;;  %v4747_v2 = vpop.permute.xlu1 %4746 }
0x137c   : > { %6560 = vmatprep.mubr.msk.f32.mxu0 %vm449_vm0, %v5592_v53  ;;  %v4762_v53 = vpop.permute.xlu0 %4761 }
0x137f   : > { %6561 = vmatmul.mubr.msk.f32.gmra.mrb[66].mxu0 %vm449_vm0, %v5593_v33 }
0x1380   : > { %6563 = vmatprep.mubr.msk.f32.mxu0 %vm449_vm0, %v5594_v29  ;;  %v4757_v29 = vpop.permute.xlu1 %4756 }
0x1383   : > { %6564 = vmatmul.mubr.msk.f32.gmra.mrb[68].mxu0 %vm449_vm0, %v5595_v31 }
0x1384   : > { %6582 = vmatprep.mubr.msk.f32.mxu0 %vm651_vm4, %v5612_v20 }
0x144a   : > { %v6556_v15 = vpop.f32.mrb[62].mxu0 }
0x144b   : > { %v4677_v25 = vadd.f32 %v6556_v15, %v4549_v52  ;;  %v4671_v63 = vpop.f32.mrb[63].mxu0 }
0x144c   : > { %v4672_v8 = vadd.f32 %v4671_v63, %v4544_v54 }
0x144d   : > { %v4711_v4 = vmul.f32 0.01, %v4677_v25 }
0x144e   : > { %v4710_v11 = vmul.f32 0.01, %v4672_v8  ;;  %v6559_v39 = vpop.f32.mrb[64].mxu0 }
0x144f   : > { %v4719_v21 = vmax.f32 %v4677_v25, %v4711_v4  ;;  %v4687_v56 = vadd.f32 %v6559_v39, %v4559_v23  ;;  %v4681_v43 = vpop.f32.mrb[65].mxu0  ;;  %v4767_v39 = vpop.permute.xlu1 %4766 }
0x1450   : > { %v4718_v44 = vmax.f32 %v4672_v8, %v4710_v11  ;;  %v4682_v14 = vadd.f32 %v4681_v43, %v4554_v5  ;;  %v4772_v8 = vpop.permute.xlu0 %4771 }
0x1451   : > { %v4713_v57 = vmul.f32 0.01, %v4687_v56 }
0x1452   : > { %v4712_v7 = vmul.f32 0.01, %v4682_v14  ;;  %v6562_v40 = vpop.f32.mrb[66].mxu0  ;;  %v6912_v9 = vpack.c.bf16 %v4719_v21, %v4718_v44 }
0x1453   : > { %v4721_v10 = vmax.f32 %v4687_v56, %v4713_v57  ;;  %v4697_v26 = vadd.f32 %v6562_v40, %v4569_v58  ;;  %v4691_v55 = vpop.f32.mrb[67].mxu0 }
0x1454   : > { %v4720_v62 = vmax.f32 %v4682_v14, %v4712_v7  ;;  %v4692_v28 = vadd.f32 %v4691_v55, %v4564_v6  ;;  %6913 = vmatprep.subr.bf16.mxu0 %v6912_v9  ;;  %v4782_v40 = vpop.permute.xlu0 %4781  ;;  %v4777_v55 = vpop.permute.xlu1 %4776 }
0x1455   : > { %v4715_v61 = vmul.f32 0.01, %v4697_v26  ;;  %6915 = vmatpush3.bf16.msra.mxu0 %v6912_v9 }
0x1456   : > { %v4714_v18 = vmul.f32 0.01, %v4692_v28  ;;  %v6565_v32 = vpop.f32.mrb[68].mxu0  ;;  %v6916_v37 = vpack.c.bf16 %v4721_v10, %v4720_v62 }
0x1457   : > { %v4723_v34 = vmax.f32 %v4697_v26, %v4715_v61  ;;  %v4707_v45 = vadd.f32 %v6565_v32, %v4579_v0  ;;  %v4701_v13 = vpop.f32.mrb[69].mxu0 }
0x1458   : > { %v4722_v27 = vmax.f32 %v4692_v28, %v4714_v18  ;;  %v4702_v49 = vadd.f32 %v4701_v13, %v4574_v38  ;;  %6917 = vmatprep.subr.bf16.mxu0 %v6916_v37 }
0x1459   : > { %v4717_v59 = vmul.f32 0.01, %v4707_v45  ;;  %6919 = vmatpush3.bf16.msra.mxu0 %v6916_v37 }
0x145a   : > { %v4716_v48 = vmul.f32 0.01, %v4702_v49  ;;  %v6920_v60 = vpack.c.bf16 %v4723_v34, %v4722_v27  ;;  %v5636_v27 = vld [vmem:[%s8708_s6 + $0x38] sm:$0xff] }
0x145b   : > { %v4725_v1 = vmax.f32 %v4707_v45, %v4717_v59  ;;  %v4936_v59 = vpop.permute.xlu1 %4935 }
0x145c   : > { %v4724_v3 = vmax.f32 %v4702_v49, %v4716_v48  ;;  %6921 = vmatprep.subr.bf16.mxu0 %v6920_v60  ;;  %v5639_v49 = vld [vmem:[%s8710_s8 + $0x38] sm:$0xff] }
0x145d   : > { %6923 = vmatpush3.bf16.msra.mxu0 %v6920_v60 }
0x145e   : > { %v6924_v22 = vpack.c.bf16 %v4725_v1, %v4724_v3 }
0x1460   : > { %6925 = vmatprep.subr.bf16.mxu0 %v6924_v22 }
0x1461   : > { %6927 = vmatpush3.bf16.msra.mxu0 %v6924_v22 }
0x1462   : > { %6940 = vmatprep.subr.bf16.mxu0 %v8725_v42 }
0x1464   : > { %6583 = vmatmul.mubr.msk.f32.vlgmr.msra.gmra.mrb[70].mxu0 %vm651_vm4, %v5613_v46 }
0x1465   : > { %6585 = vmatprep.mubr.msk.f32.mxu0 %vm651_vm4, %v5614_v47 }
0x1468   : > { %6586 = vmatmul.mubr.msk.f32.gmra.mrb[72].mxu0 %vm651_vm4, %v5615_v51 }
0x1469   : > { %6588 = vmatprep.mubr.msk.f32.mxu0 %vm651_vm4, %v5616_v24 }
0x146c   : > { %6589 = vmatmul.mubr.msk.f32.gmra.mrb[74].mxu0 %vm651_vm4, %v5617_v41 }
0x146d   : > { %6591 = vmatprep.mubr.msk.f32.mxu0 %vm651_vm4, %v5618_v16  ;;  %v5018_v16 = vpop.permute.xlu0 %5017 }
0x1470   : > { %6592 = vmatmul.mubr.msk.f32.gmra.mrb[76].mxu0 %vm651_vm4, %v5619_v50 }
0x1471   : > { %6629 = vmatprep.mubr.msk.f32.mxu0 %vm7117_vm10, %v8726_v35 }
0x1537   : > { %v6584_v33 = vpop.f32.mrb[70].mxu0 }
0x1538   : > { %v4880_v31 = vadd.f32 %v6584_v33, %v4752_v19  ;;  %v4874_v20 = vpop.f32.mrb[71].mxu0  ;;  %v5104_v33 = vpop.permute.xlu1 %5103 }
0x1539   : > { %v4875_v52 = vadd.f32 %v4874_v20, %v4747_v2 }
0x153a   : > { %v4914_v54 = vmul.f32 0.01, %v4880_v31 }
0x153b   : > { %v4913_v23 = vmul.f32 0.01, %v4875_v52  ;;  %v6587_v15 = vpop.f32.mrb[72].mxu0 }
0x153c   : > { %v4922_v5 = vmax.f32 %v4880_v31, %v4914_v54  ;;  %v4890_v25 = vadd.f32 %v6587_v15, %v4762_v53  ;;  %v4884_v63 = vpop.f32.mrb[73].mxu0 }
0x153d   : > { %v4921_v4 = vmax.f32 %v4875_v52, %v4913_v23  ;;  %v4885_v11 = vadd.f32 %v4884_v63, %v4757_v29 }
0x153e   : > { %v4916_v21 = vmul.f32 0.01, %v4890_v25 }
0x153f   : > { %v6929_v35 = vpack.c.bf16 %v4922_v5, %v4921_v4  ;;  %v4915_v56 = vmul.f32 0.01, %v4885_v11  ;;  %v6590_v43 = vpop.f32.mrb[74].mxu0 }
0x1540   : > { %v4924_v58 = vmax.f32 %v4890_v25, %v4916_v21  ;;  %v4900_v44 = vadd.f32 %v6590_v43, %v4772_v8  ;;  %v4894_v14 = vpop.f32.mrb[75].mxu0 }
0x1541   : > { %v4923_v6 = vmax.f32 %v4885_v11, %v4915_v56  ;;  %v4895_v57 = vadd.f32 %v4894_v14, %v4767_v39  ;;  %6930 = vmatpush3.bf16.msra.mxu1 %v6929_v35  ;;  %6942 = vmatpush3.bf16.msra.mxu0 %v6929_v35 }
0x1542   : > { %v4918_v7 = vmul.f32 0.01, %v4900_v44  ;;  %6931 = vmatprep.subr.bf16.mxu1 %v8725_v42  ;;  %6943 = vmatprep.subr.bf16.mxu0 %v8725_v42 }
0x1543   : > { %v6932_v9 = vpack.c.bf16 %v4924_v58, %v4923_v6  ;;  %v4917_v10 = vmul.f32 0.01, %v4895_v57  ;;  %v6593_v26 = vpop.f32.mrb[76].mxu0 }
0x1544   : > { %v4926_v62 = vmax.f32 %v4900_v44, %v4918_v7  ;;  %v4910_v28 = vadd.f32 %v6593_v26, %v4782_v40  ;;  %v4904_v61 = vpop.f32.mrb[77].mxu0 }
0x1545   : > { %v4925_v0 = vmax.f32 %v4895_v57, %v4917_v10  ;;  %v4905_v18 = vadd.f32 %v4904_v61, %v4777_v55  ;;  %6933 = vmatpush3.bf16.msra.mxu1 %v6932_v9  ;;  %6945 = vmatpush3.bf16.msra.mxu0 %v6932_v9 }
0x1546   : > { %v4920_v32 = vmul.f32 0.01, %v4910_v28  ;;  %6934 = vmatprep.subr.bf16.mxu1 %v8725_v42  ;;  %6946 = vmatprep.subr.bf16.mxu0 %v8725_v42 }
0x1547   : > { %v6935_v37 = vpack.c.bf16 %v4926_v62, %v4925_v0  ;;  %v4919_v38 = vmul.f32 0.01, %v4905_v18 }
0x1548   : > { %v4928_v34 = vmax.f32 %v4910_v28, %v4920_v32 }
0x1549   : > { %v4927_v45 = vmax.f32 %v4905_v18, %v4919_v38  ;;  %6936 = vmatpush3.bf16.msra.mxu1 %v6935_v37  ;;  %6948 = vmatpush3.bf16.msra.mxu0 %v6935_v37 }
0x154a   : > { %6937 = vmatprep.subr.bf16.mxu1 %v8725_v42  ;;  %6949 = vmatprep.subr.bf16.mxu0 %v8725_v42 }
0x154b   : > { %v6938_v13 = vpack.c.bf16 %v4928_v34, %v4927_v45 }
0x154d   : > { %6939 = vmatpush3.bf16.msra.mxu1 %v6938_v13  ;;  %6951 = vmatpush3.bf16.msra.mxu0 %v6938_v13 }
0x1550   : > { %6611 = vmatmul.mubr.msk.f32.vlgmr.msra.gmra.mrb[78].mxu1 %vm651_vm4, %v5636_v27  ;;  %6630 = vmatmul.mubr.msk.f32.vlgmr.msra.gmra.mrb[78].mxu0 %vm651_vm4, %v5639_v49 }
0x1623   : > { %v5007_v48 = vpop.f32.mrb[78].mxu1  ;;  %v5089_v60 = vpop.f32.mrb[78].mxu0 }
0x1624   : > { %v5008_v42 = vadd.f32 %v5007_v48, %v4936_v59  ;;  %v6612_v1 = vpop.f32.mrb[79].mxu1  ;;  %v6631_v3 = vpop.f32.mrb[79].mxu0  ;;  %v5090_v19 = vadd.f32 %v5089_v60, %v5018_v16 }
0x1626   : > { %v5097_v22 = vsub.f32 0.0, %v5008_v42  ;;  %v5107_v46 = vrot.slane %v5008_v42, 4  ;;  %v5096_v29 = vsub.f32 %v8526_v17, %v5090_v19 }
0x1628   : > { %v5098_v47 = vmul.f32 1.442695, %v5097_v22  ;;  %v5108_v51 = vadd.f32 %v5107_v46, %v5008_v42 }
0x162a   : > { %7016 = vpow2.f32 %v5098_v47  ;;  %v5109_v24 = vrot.slane %v5108_v51, 2 }
0x162c   : > { %v5110_v41 = vadd.f32 %v5109_v24, %v5108_v51 }
0x162e   : > { %v5111_v50 = vrot.slane %v5110_v41, 1 }
0x1630   : > { %v5112_v2 = vadd.f32 %v5111_v50, %v5110_v41 }
0x1632   : > { %v5113_v53 = vsub.f32 %v4522_v30, %v5112_v2 }
0x1634   : > { %v7017_v36 = vpop.eup %7016  ;;  %5115 = vst [vmem:[%s387_s22] sm:$0x1] %v5113_v53 }
0x1635   : > { %v5100_v12 = vmul.f32 %v7017_v36, %v5096_v29 }
0x1636   : > { %7032 = shalt.err (!%p7029_p3)
}
0x1637   : > { %s7033_s14 = scalar_lea.hbm %s8619_s26, 16  ;;  %s7037_s15 = scalar_lea.hbm %s8713_s11, 32 }
0x1638   : > { %p7034_p4 = scmp.ne.s32.totalorder %s8619_s26, %s7033_s14  ;;  %p7038_p9 = scmp.lt.u32.totalorder %s8619_s26, %s8713_s11 }
0x1639   : > { %p7039_p10 = scmp.lt.u32.totalorder %s7037_s15, %s7033_s14  ;;  %p7041_p12 = scmp.lt.u32.totalorder %s7033_s14, %s8619_s26 }
0x163a   : > { %p7035_p7 = pnand %p7034_p4, %p7219_p5 }
0x163b   : > { %p7040_p11 = por %p7039_p10, %p7038_p9 }
0x163c   : > { %p7036_p8 = pneg %p7035_p7 }
0x163d   : > { %p7042_p13 = por %p7041_p12, %p7040_p11 }
0x163f   : > { %p7043_p0 = pnand %p7042_p13, %p7036_p8 }
0x1641   : > { %7046 = shalt.err (!%p7043_p0)
}
0x1642   : > { %6953 = dma.vmem_to_hbm [thread:$0]  (%p7219_p5), %s8621_s24, 16, %s8619_s26, %s5122_s0   ;;  %vm5105_vm0 = vcmp.eq.s32.totalorder %v5104_v33, 1 }
0x1643   : > { %s8727_s1 = sshll.u32 %s7202_s21, 7  ;;  %s8728_s14 = sshll.u32 %s8625_s30, 4  ;;  %v5106_v30 = vsel %vm5105_vm0, %v8526_v17, %v5100_v12  ;;  %s8659_s14 = int_to_ptr.vmem [resolvable:$true] %s8728_s14 }
0x1644   : > { %s8655_s25 = scalar_lea.hbm %s8712_s10, %s8727_s1  ;;  %5114 = vst [vmem:[%s8625_s30] sm:$0xff] %v5106_v30  ;;  %s5117_s22 = scalar_lea.sflag [#allocation3], %s8608_s13 }
0x1645   : > { %s7047_s15 = scalar_lea.vmem %s8659_s14, 128  ;;  %s7120_s0 = smov [#allocation2]  }
0x1646   : > { %p7048_p1 = scmp.ne.s32.totalorder %s8659_s14, %s7047_s15  ;;  %s7051_s21 = sshll.u32 %s7120_s0, 4  ;;  %s7052_s21 = int_to_ptr.vmem [resolvable:$false] %s7051_s21 }
0x1647   : > { %s7053_s24 = scalar_lea.vmem %s7052_s21, 256  ;;  %p7054_p4 = scmp.lt.s32.totalorder %s8659_s14, %s7052_s21 }
0x1648   : > { %p7049_p2 = pnand %p7048_p1, %p7219_p5  ;;  %p7055_p7 = scmp.lt.s32.totalorder %s7053_s24, %s7047_s15 }
0x164a   : > { %p7050_p3 = pneg %p7049_p2  ;;  %p7056_p8 = por %p7055_p7, %p7054_p4 }
0x164c   : > { %p7057_p9 = pnand %p7056_p8, %p7050_p3 }
0x164e   : > { %7060 = shalt.err (!%p7057_p9)
}
0x164f   : > { %s7061_s13 = scalar_lea.hbm %s8655_s25, 128  ;;  %s7065_s16 = scalar_lea.hbm %s8712_s10, 256 }
0x1650   : > { %p7062_p10 = scmp.ne.s32.totalorder %s8655_s25, %s7061_s13  ;;  %p7066_p13 = scmp.lt.u32.totalorder %s8655_s25, %s8712_s10 }
0x1651   : > { %p7067_p0 = scmp.lt.u32.totalorder %s7065_s16, %s7061_s13  ;;  %p7069_p2 = scmp.lt.u32.totalorder %s7061_s13, %s8655_s25 }
0x1652   : > { %p7063_p11 = pnand %p7062_p10, %p7219_p5 }
0x1653   : > { %p7068_p1 = por %p7067_p0, %p7066_p13 }
0x1654   : > { %p7064_p12 = pneg %p7063_p11 }
0x1655   : > { %p7070_p3 = por %p7069_p2, %p7068_p1 }
0x1657   : > { %p7071_p4 = pnand %p7070_p3, %p7064_p12 }
0x1659   : > { %7074 = shalt.err (!%p7071_p4)
}
0x165a   : > { %6952 = dma.vmem_to_hbm [thread:$0]  (%p7219_p5), %s8659_s14, 128, %s8655_s25, %s5117_s22  }
0x165b PF: > { %p6963_p7 = scmp.ge.s32.totalorder %s7113_s20, 2  ;;  %s5159_s12 = sand.u32 1, %s7101_s17  }
0x165c   : > { %s5160_s15 = scalar_lea.sflag [#allocation3], %s5159_s12 }
0x165d   : > { %p6957_p8 = pnand %p6963_p7, %p7223_p6 }
0x165f   : > { %7092 = dma.done.wait (!%p6957_p8), %s5160_s15, 128  }
0x1660   : > { %7094 = vsyncadd (!%p6957_p8), %s5160_s15, 4294967168  ;;  %s5169_s0 = scalar_lea.sflag [#allocation5], %s5159_s12 }
0x1661   : > { %7096 = dma.done.wait (!%p6957_p8), %s5169_s0, 16  }
0x1662   : > { %7098 = vsyncadd (!%p6957_p8), %s5169_s0, 4294967280  ;;  %s8729_s27 = sld [smem:[#allocation8_spill]]  ;;  %p25_p5 = scmp.ge.s32.totalorder %s7206_s23, 4  }
0x1663   : > { %s8730_s17 = smov %s7105_s18  ;;  %s8731_s18 = smov %s7109_s19 }
0x1664   : > { %s8733_s20 = smov %s7206_s23  ;;  %27 = sbr.rel (!%p25_p5) target bundleno = 8 (0x8), region = 175 }
0x1668   : > { %s8732_s19 = smov %s8729_s27 }
0x166b   :  { %5173 = vsyncpa [#allocation3], 1 }
0x166c   :  { %5175 = vsyncpa [#allocation3 + $0x1], 1 }
0x166d   :  { %5176 = vsyncpa [#allocation5], 1 }
0x166e   :  { %5178 = vsyncpa [#allocation5 + $0x1], 1 }

</bundles_post_ra>
